<compile_context>
chip_gen: v6e
topology: v6e:2x2x1
jax: 0.10.0
libtpu: 0.0.40
codegen_flags: <defaults>
</compile_context>

<pallas_src>
import numpy as np
import jax
import jax.numpy as jnp
from jax.experimental import pallas as pl
from jax.experimental.pallas import tpu as pltpu

LEAK = 0.2
EPS = 1e-5


# --------------------------- fused conv GEMM kernel ---------------------------

def _conv_epilogue(acc, do_in, do_leaky):
    # acc: (Cout, M) f32, M = H*W on the lane axis
    if do_in:
        mean = jnp.mean(acc, axis=1, keepdims=True)
        var = jnp.mean((acc - mean) ** 2, axis=1, keepdims=True)
        acc = (acc - mean) * jax.lax.rsqrt(var + EPS)
    if do_leaky:
        acc = jnp.where(acc > 0, acc, LEAK * acc)
    return acc


def _make_conv_kernel(has_bias, do_in, do_leaky):
    if has_bias:
        def kernel(w_ref, p_ref, b_ref, o_ref):
            acc = jnp.dot(w_ref[...], p_ref[0],
                          preferred_element_type=jnp.float32)
            acc = acc + b_ref[...]
            o_ref[0] = _conv_epilogue(acc, do_in, do_leaky).astype(o_ref.dtype)
    else:
        def kernel(w_ref, p_ref, o_ref):
            acc = jnp.dot(w_ref[...], p_ref[0],
                          preferred_element_type=jnp.float32)
            o_ref[0] = _conv_epilogue(acc, do_in, do_leaky).astype(o_ref.dtype)
    return kernel


def conv_gemm(x_nchw, w_oihw, bias=None, *, stride=1, pad=0, pad_mode='zeros',
              do_in=False, do_leaky=False, out_dtype=jnp.bfloat16):
    """Conv2d (PyTorch semantics) as a per-sample Pallas GEMM:
         out[n] = W(Cout,K) @ im2col(x[n])(K, Ho*Wo)  [+bias] [+InstanceNorm] [+leaky]
       grid=(N,) 'parallel' so v7x shards the batch across its 2 TensorCores."""
    N, Cin, H, W = x_nchw.shape
    Cout, _, KH, KW = w_oihw.shape
    if pad > 0:
        mode = 'reflect' if pad_mode == 'reflect' else 'constant'
        xp = jnp.pad(x_nchw, ((0, 0), (0, 0), (pad, pad), (pad, pad)), mode=mode)
    else:
        xp = x_nchw
    Hp, Wp = xp.shape[2], xp.shape[3]
    Ho = (Hp - KH) // stride + 1
    Wo = (Wp - KW) // stride + 1
    # TODO(synk): im2col in glue still materializes a KH*KW-duplicated patch tensor
    # in HBM; in-kernel tap accumulation would cut that A-side traffic further.
    cols = []
    for dy in range(KH):
        for dx in range(KW):
            cols.append(xp[:, :, dy:dy + Ho * stride:stride,
                           dx:dx + Wo * stride:stride])
    K = Cin * KH * KW
    M = Ho * Wo
    patches = jnp.stack(cols, axis=2).reshape(N, K, M).astype(jnp.bfloat16)
    Wm = w_oihw.reshape(Cout, K).astype(jnp.bfloat16)

    has_bias = bias is not None
    kernel = _make_conv_kernel(has_bias, do_in, do_leaky)

    in_specs = [pl.BlockSpec((Cout, K), lambda n: (0, 0)),
                pl.BlockSpec((1, K, M), lambda n: (n, 0, 0))]
    args = [Wm, patches]
    if has_bias:
        in_specs.append(pl.BlockSpec((Cout, 1), lambda n: (0, 0)))
        args.append(bias.reshape(Cout, 1).astype(jnp.float32))

    out = pl.pallas_call(
        kernel,
        out_shape=jax.ShapeDtypeStruct((N, Cout, M), out_dtype),
        grid=(N,),
        in_specs=in_specs,
        out_specs=pl.BlockSpec((1, Cout, M), lambda n: (n, 0, 0)),
        compiler_params=pltpu.CompilerParams(
            dimension_semantics=("parallel",)),
    )(*args)
    return out.reshape(N, Cout, Ho, Wo)


# ------------------ fused tail: res_0..res_2 + "out" head ---------------------

# ReflectionPad2d(1) index map for a size-2 axis: padded index -> source index
_RI = np.array([1, 0, 1, 0], dtype=np.int64)


def _tap_map_2x2():
    # m[q, t, p] = 1 iff output position p's tap t reads input position q
    m = np.zeros((4, 9, 4), np.float32)
    for oy in range(2):
        for ox in range(2):
            p = oy * 2 + ox
            for dy in range(3):
                for dx in range(3):
                    t = dy * 3 + dx
                    q = _RI[oy + dy] * 2 + _RI[ox + dx]
                    m[q, t, p] = 1.0
    return m


_TAPMAP = _tap_map_2x2()


def _eff_weight_2x2(w):
    """3x3 conv with ReflectionPad(1) on a 2x2 feature map, expressed as a dense
       (4*Cin, 4*Cout) matrix acting on p-major flattened activations."""
    Cout, Cin = w.shape[0], w.shape[1]
    wr = w.reshape(Cout, Cin, 9)
    weff = jnp.einsum('qtp,oit->qipo', jnp.asarray(_TAPMAP), wr)  # (q, ci, p, co)
    return weff.reshape(4 * Cin, 4 * Cout)


def _make_tail_kernel(p_sp, c_out):
    def kernel(x_ref, rw1_ref, rb1_ref, rw2_ref, rb2_ref,
               ow0_ref, ow1_ref, ow2_ref, o_ref):
        x = x_ref[0].astype(jnp.float32)                         # (1, P*dim)
        # --- res_0 .. res_2 : y = conv2(leaky(conv1(x))); x = leaky(x + y) ---
        for r in range(3):
            y = jnp.dot(x.astype(jnp.bfloat16), rw1_ref[r],
                        preferred_element_type=jnp.float32) + rb1_ref[r]
            y = jnp.where(y > 0, y, LEAK * y)
            y = jnp.dot(y.astype(jnp.bfloat16), rw2_ref[r],
                        preferred_element_type=jnp.float32) + rb2_ref[r]
            x = x + y
            x = jnp.where(x > 0, x, LEAK * x)
        # --- out head: 3 x [SN-conv (eff) + InstanceNorm + LeakyReLU] ---
        h = x
        for ow_ref in (ow0_ref, ow1_ref, ow2_ref):
            h = jnp.dot(h.astype(jnp.bfloat16), ow_ref[...],
                        preferred_element_type=jnp.float32)      # (1, P*c_out)
            # InstanceNorm over the p_sp spatial positions, per channel.
            # p-major layout -> position p is the lane-aligned slice [p*c_out:(p+1)*c_out]
            parts = [h[:, i * c_out:(i + 1) * c_out] for i in range(p_sp)]
            m = parts[0]
            for q in range(1, p_sp):
                m = m + parts[q]
            mean = m * (1.0 / p_sp)
            devs = [pt - mean for pt in parts]
            v = devs[0] * devs[0]
            for q in range(1, p_sp):
                v = v + devs[q] * devs[q]
            inv = jax.lax.rsqrt(v * (1.0 / p_sp) + EPS)
            h = jnp.concatenate([d * inv for d in devs], axis=1)
            h = jnp.where(h > 0, h, LEAK * h)
        o_ref[0] = h.astype(o_ref.dtype)
    return kernel


def tail_forward(x5, params):
    """res_0..res_2 + 'out' head fused into ONE pallas_call (everything stays in VMEM).
       x5: (N, dim, 2, 2) output of layer5 (already instance-normalised)."""
    N, dim, H, W = x5.shape
    P = H * W                                                    # 4
    c_out = params['out_w0'].shape[0]                            # ch*32

    # p-major flatten: x_flat[n, p*dim + c]
    xf = jnp.transpose(x5.reshape(N, dim, P), (0, 2, 1)).reshape(N, 1, P * dim)
    xf = xf.astype(jnp.bfloat16)

    rw1 = jnp.stack([_eff_weight_2x2(params[f'res{r}_w1']) for r in range(3)]
                    ).astype(jnp.bfloat16)                       # (3, P*dim, P*dim)
    rw2 = jnp.stack([_eff_weight_2x2(params[f'res{r}_w2']) for r in range(3)]
                    ).astype(jnp.bfloat16)
    rb1 = jnp.stack([jnp.tile(params[f'res{r}_b1'], P) for r in range(3)]
                    ).reshape(3, 1, P * dim).astype(jnp.float32)
    rb2 = jnp.stack([jnp.tile(params[f'res{r}_b2'], P) for r in range(3)]
                    ).reshape(3, 1, P * dim).astype(jnp.float32)
    ow0 = _eff_weight_2x2(params['out_w0']).astype(jnp.bfloat16)  # (P*dim,   P*c_out)
    ow1 = _eff_weight_2x2(params['out_w1']).astype(jnp.bfloat16)  # (P*c_out, P*c_out)
    ow2 = _eff_weight_2x2(params['out_w2']).astype(jnp.bfloat16)

    def full(shape):
        return pl.BlockSpec(shape, lambda n: (0,) * len(shape))

    out = pl.pallas_call(
        _make_tail_kernel(P, c_out),
        out_shape=jax.ShapeDtypeStruct((N, 1, P * c_out), jnp.float32),
        grid=(N,),
        in_specs=[
            pl.BlockSpec((1, 1, P * dim), lambda n: (n, 0, 0)),
            full(rw1.shape), full(rb1.shape), full(rw2.shape), full(rb2.shape),
            full(ow0.shape), full(ow1.shape), full(ow2.shape),
        ],
        out_specs=pl.BlockSpec((1, 1, P * c_out), lambda n: (n, 0, 0)),
        compiler_params=pltpu.CompilerParams(
            dimension_semantics=("parallel",)),
    )(xf, rw1, rb1, rw2, rb2, ow0, ow1, ow2)

    # back to NCHW: (N, c_out, 2, 2)
    return jnp.transpose(out.reshape(N, P, c_out), (0, 2, 1)).reshape(N, c_out, H, W)


# --------------------------- parameters ---------------------------------------

def _spectral_normalize(w, iters=30):
    # TODO(synk): PyTorch spectral_norm keeps persistent power-iteration u/v buffers
    # (one step per forward); here sigma is converged once at setup time.
    cout = w.shape[0]
    wm = w.reshape(cout, -1)
    u = jnp.ones((cout,), jnp.float32) / jnp.sqrt(cout)
    v = None
    for _ in range(iters):
        v = wm.T @ u
        v = v / (jnp.linalg.norm(v) + 1e-12)
        u = wm @ v
        u = u / (jnp.linalg.norm(u) + 1e-12)
    sigma = u @ (wm @ v)
    return w / sigma


def make_params(key, ch=4):
    ks = jax.random.split(key, 24)
    i = 0

    def nxt():
        nonlocal i
        k = ks[i]
        i += 1
        return k

    def conv_w(cout, cin, k):
        return 0.05 * jax.random.normal(nxt(), (cout, cin, k, k), jnp.float32)

    def conv_b(cout):
        return 0.01 * jax.random.normal(nxt(), (cout,), jnp.float32)

    p = {}
    # spectral-norm + instance-norm layers (bias removed by the norm wrapper)
    p['w1'] = _spectral_normalize(conv_w(ch, 3, 3))
    p['w2'] = _spectral_normalize(conv_w(ch * 2, ch, 3))
    p['w3'] = _spectral_normalize(conv_w(ch * 4, ch * 2, 3))
    p['w4'] = _spectral_normalize(conv_w(ch * 8, ch * 4, 3))
    p['w5'] = _spectral_normalize(conv_w(ch * 16, ch * 8, 3))
    # plain 7x7 conv with bias
    p['w7'] = conv_w(ch, ch, 7)
    p['b7'] = conv_b(ch)
    # residual blocks (plain convs with bias)
    for r in range(3):
        p[f'res{r}_w1'] = conv_w(ch * 16, ch * 16, 3)
        p[f'res{r}_b1'] = conv_b(ch * 16)
        p[f'res{r}_w2'] = conv_w(ch * 16, ch * 16, 3)
        p[f'res{r}_b2'] = conv_b(ch * 16)
    # "out" head: three SN convs + instance norm (no bias)
    p['out_w0'] = _spectral_normalize(conv_w(ch * 32, ch * 16, 3))
    p['out_w1'] = _spectral_normalize(conv_w(ch * 32, ch * 32, 3))
    p['out_w2'] = _spectral_normalize(conv_w(ch * 32, ch * 32, 3))
    return p


# --------------------------- forward -------------------------------------------

def conv_encoder_forward(x_nchw, params):
    x = x_nchw.astype(jnp.float32)
    # layer1 (SN conv s2 p1 + IN); the LeakyReLU feeding conv_7x7 is fused here
    x = conv_gemm(x, params['w1'], None, stride=2, pad=1, pad_mode='zeros',
                  do_in=True, do_leaky=True)
    # conv_7x7(pad_3(.)) with bias; LeakyReLU feeding layer2 fused here
    x = conv_gemm(x, params['w7'], params['b7'], stride=1, pad=3,
                  pad_mode='reflect', do_in=False, do_leaky=True)
    # layer2..layer4: SN conv s2 p1 + IN (+ fused LeakyReLU feeding the next layer)
    x = conv_gemm(x, params['w2'], None, stride=2, pad=1, do_in=True, do_leaky=True)
    x = conv_gemm(x, params['w3'], None, stride=2, pad=1, do_in=True, do_leaky=True)
    x = conv_gemm(x, params['w4'], None, stride=2, pad=1, do_in=True, do_leaky=True)
    # layer5: SN conv s2 p1 + IN, no activation (res_0 consumes the raw IN output)
    x = conv_gemm(x, params['w5'], None, stride=2, pad=1, do_in=True, do_leaky=False)
    # fused tail: res_0..res_2 + out head (single pallas_call)
    return tail_forward(x, params)


# --------------------------- main ----------------------------------------------

if __name__ == "__main__":
    key = jax.random.PRNGKey(0)
    k_x, k_p = jax.random.split(key)

    ch = 4
    x = jax.random.normal(k_x, (2, 3, 64, 64), jnp.float32)     # NCHW like PyTorch
    params = make_params(k_p, ch=ch)

    fwd = jax.jit(conv_encoder_forward)
    mu = fwd(x, params)
    jax.block_until_ready(mu)

    assert mu.shape == (2, ch * 32, 2, 2), mu.shape
    assert bool(jnp.all(jnp.isfinite(mu)))
    print("KERNEL_OK")
</pallas_src>

<mosaic_0001>
module attributes {stable_mosaic.version = 11 : i64} {
  func.func @kernel(%arg0: i32, %arg1: memref<4x27xbf16, #tpu.memory_space<vmem>>, %arg2: memref<1x27x1024xbf16, #tpu.memory_space<vmem>>, %arg3: memref<1x4x1024xbf16, #tpu.memory_space<vmem>>) attributes {dimension_semantics = [#tpu.dimension_semantics<parallel>], iteration_bounds = array<i64: 2>, scalar_prefetch = 0 : i64, scratch_operands = 0 : i64, tpu.core_type = #tpu.core_type<tc>, window_params = [{pipeline_mode = #tpu.pipeline_mode<synchronous>, transform_indices = @transform_0, window_bounds = array<i64: 4, 27>}, {transform_indices = @transform_1, window_bounds = array<i64: 1, 27, 1024>}, {transform_indices = @transform_2, window_bounds = array<i64: 1, 4, 1024>}]} {
    %c0 = arith.constant 0 : index
    %c0_0 = arith.constant 0 : index
    %0 = vector.load %arg1[%c0, %c0_0] : memref<4x27xbf16, #tpu.memory_space<vmem>>, vector<4x27xbf16>
    %c0_1 = arith.constant 0 : index
    %c0_2 = arith.constant 0 : index
    %c0_3 = arith.constant 0 : index
    %1 = vector.load %arg2[%c0_1, %c0_2, %c0_3] : memref<1x27x1024xbf16, #tpu.memory_space<vmem>>, vector<1x27x1024xbf16>
    %2 = vector.shape_cast %1 : vector<1x27x1024xbf16> to vector<27x1024xbf16>
    %cst = arith.constant dense<0.000000e+00> : vector<4x1024xf32>
    %3 = tpu.matmul %0, %2, %cst {dimension_numbers = #tpu.dot_dimension_numbers<[1], [0], [0], [1], [0, 0, 1, 1], [], []>} : vector<4x27xbf16>, vector<27x1024xbf16>, vector<4x1024xf32> -> vector<4x1024xf32>
    %cst_4 = arith.constant dense<0.000000e+00> : vector<4xf32>
    %4 = vector.multi_reduction <add>, %3, %cst_4 [1] : vector<4x1024xf32> to vector<4xf32>
    %5 = vector.shape_cast %4 : vector<4xf32> to vector<4x1xf32>
    %cst_5 = arith.constant 1.024000e+03 : f32
    %6 = vector.broadcast %cst_5 : f32 to vector<4x1xf32>
    %7 = arith.divf %5, %6 : vector<4x1xf32>
    %8 = vector.broadcast %7 : vector<4x1xf32> to vector<4x1024xf32>
    %9 = arith.subf %3, %8 : vector<4x1024xf32>
    %10 = arith.mulf %9, %9 : vector<4x1024xf32>
    %cst_6 = arith.constant dense<0.000000e+00> : vector<4xf32>
    %11 = vector.multi_reduction <add>, %10, %cst_6 [1] : vector<4x1024xf32> to vector<4xf32>
    %12 = vector.shape_cast %11 : vector<4xf32> to vector<4x1xf32>
    %cst_7 = arith.constant 1.024000e+03 : f32
    %13 = vector.broadcast %cst_7 : f32 to vector<4x1xf32>
    %14 = arith.divf %12, %13 : vector<4x1xf32>
    %15 = vector.broadcast %7 : vector<4x1xf32> to vector<4x1024xf32>
    %16 = arith.subf %3, %15 : vector<4x1024xf32>
    %cst_8 = arith.constant 9.99999974E-6 : f32
    %17 = vector.broadcast %cst_8 : f32 to vector<4x1xf32>
    %18 = arith.addf %14, %17 : vector<4x1xf32>
    %19 = math.rsqrt %18 : vector<4x1xf32>
    %20 = vector.broadcast %19 : vector<4x1xf32> to vector<4x1024xf32>
    %21 = arith.mulf %16, %20 : vector<4x1024xf32>
    %cst_9 = arith.constant 0.000000e+00 : f32
    %22 = vector.broadcast %cst_9 : f32 to vector<4x1024xf32>
    %23 = arith.cmpf ogt, %21, %22 : vector<4x1024xf32>
    %cst_10 = arith.constant 2.000000e-01 : f32
    %24 = vector.broadcast %cst_10 : f32 to vector<4x1024xf32>
    %25 = arith.mulf %24, %21 : vector<4x1024xf32>
    %26 = arith.select %23, %21, %25 : vector<4x1024xi1>, vector<4x1024xf32>
    %27 = arith.truncf %26 : vector<4x1024xf32> to vector<4x1024xbf16>
    %c0_11 = arith.constant 0 : index
    %c0_12 = arith.constant 0 : index
    %c0_13 = arith.constant 0 : index
    %28 = vector.load %arg3[%c0_11, %c0_12, %c0_13] : memref<1x4x1024xbf16, #tpu.memory_space<vmem>>, vector<1x4x1024xbf16>
    %29 = vector.shape_cast %28 : vector<1x4x1024xbf16> to vector<4x1024xbf16>
    %30 = vector.shape_cast %27 : vector<4x1024xbf16> to vector<1x4x1024xbf16>
    tpu.vector_store %arg3[%c0_11, %c0_12, %c0_13], %30 {strides = array<i32>} : memref<1x4x1024xbf16, #tpu.memory_space<vmem>>, vector<1x4x1024xbf16>,
    return
  }
  func.func @transform_0(%arg0: i32) -> (i32, i32) {
    %c0_i32 = arith.constant 0 : i32
    %c0_i32_0 = arith.constant 0 : i32
    %c0_i32_1 = arith.constant 0 : i32
    return %c0_i32, %c0_i32_0 : i32, i32
  }
  func.func @transform_1(%arg0: i32) -> (i32, i32, i32) {
    %c0_i32 = arith.constant 0 : i32
    %c0_i32_0 = arith.constant 0 : i32
    %c0_i32_1 = arith.constant 0 : i32
    return %arg0, %c0_i32, %c0_i32_0 : i32, i32, i32
  }
  func.func @transform_2(%arg0: i32) -> (i32, i32, i32) {
    %c0_i32 = arith.constant 0 : i32
    %c0_i32_0 = arith.constant 0 : i32
    %c0_i32_1 = arith.constant 0 : i32
    return %arg0, %c0_i32, %c0_i32_0 : i32, i32, i32
  }
}

module attributes {stable_mosaic.version = 11 : i64} {
  func.func @kernel(%arg0: i32, %arg1: memref<4x196xbf16, #tpu.memory_space<vmem>>, %arg2: memref<1x196x1024xbf16, #tpu.memory_space<vmem>>, %arg3: memref<4x1xf32, #tpu.memory_space<vmem>>, %arg4: memref<1x4x1024xbf16, #tpu.memory_space<vmem>>) attributes {dimension_semantics = [#tpu.dimension_semantics<parallel>], iteration_bounds = array<i64: 2>, scalar_prefetch = 0 : i64, scratch_operands = 0 : i64, tpu.core_type = #tpu.core_type<tc>, window_params = [{pipeline_mode = #tpu.pipeline_mode<synchronous>, transform_indices = @transform_0, window_bounds = array<i64: 4, 196>}, {transform_indices = @transform_1, window_bounds = array<i64: 1, 196, 1024>}, {pipeline_mode = #tpu.pipeline_mode<synchronous>, transform_indices = @transform_2, window_bounds = array<i64: 4, 1>}, {transform_indices = @transform_3, window_bounds = array<i64: 1, 4, 1024>}]} {
    %c0 = arith.constant 0 : index
    %c0_0 = arith.constant 0 : index
    %0 = vector.load %arg1[%c0, %c0_0] : memref<4x196xbf16, #tpu.memory_space<vmem>>, vector<4x196xbf16>
    %c0_1 = arith.constant 0 : index
    %c0_2 = arith.constant 0 : index
    %c0_3 = arith.constant 0 : index
    %1 = vector.load %arg2[%c0_1, %c0_2, %c0_3] : memref<1x196x1024xbf16, #tpu.memory_space<vmem>>, vector<1x196x1024xbf16>
    %2 = vector.shape_cast %1 : vector<1x196x1024xbf16> to vector<196x1024xbf16>
    %cst = arith.constant dense<0.000000e+00> : vector<4x1024xf32>
    %3 = tpu.matmul %0, %2, %cst {dimension_numbers = #tpu.dot_dimension_numbers<[1], [0], [0], [1], [0, 0, 1, 1], [], []>} : vector<4x196xbf16>, vector<196x1024xbf16>, vector<4x1024xf32> -> vector<4x1024xf32>
    %c0_4 = arith.constant 0 : index
    %c0_5 = arith.constant 0 : index
    %4 = vector.load %arg3[%c0_4, %c0_5] : memref<4x1xf32, #tpu.memory_space<vmem>>, vector<4x1xf32>
    %5 = vector.broadcast %4 : vector<4x1xf32> to vector<4x1024xf32>
    %6 = arith.addf %3, %5 : vector<4x1024xf32>
    %cst_6 = arith.constant 0.000000e+00 : f32
    %7 = vector.broadcast %cst_6 : f32 to vector<4x1024xf32>
    %8 = arith.cmpf ogt, %6, %7 : vector<4x1024xf32>
    %cst_7 = arith.constant 2.000000e-01 : f32
    %9 = vector.broadcast %cst_7 : f32 to vector<4x1024xf32>
    %10 = arith.mulf %9, %6 : vector<4x1024xf32>
    %11 = arith.select %8, %6, %10 : vector<4x1024xi1>, vector<4x1024xf32>
    %12 = arith.truncf %11 : vector<4x1024xf32> to vector<4x1024xbf16>
    %c0_8 = arith.constant 0 : index
    %c0_9 = arith.constant 0 : index
    %c0_10 = arith.constant 0 : index
    %13 = vector.load %arg4[%c0_8, %c0_9, %c0_10] : memref<1x4x1024xbf16, #tpu.memory_space<vmem>>, vector<1x4x1024xbf16>
    %14 = vector.shape_cast %13 : vector<1x4x1024xbf16> to vector<4x1024xbf16>
    %15 = vector.shape_cast %12 : vector<4x1024xbf16> to vector<1x4x1024xbf16>
    tpu.vector_store %arg4[%c0_8, %c0_9, %c0_10], %15 {strides = array<i32>} : memref<1x4x1024xbf16, #tpu.memory_space<vmem>>, vector<1x4x1024xbf16>,
    return
  }
  func.func @transform_0(%arg0: i32) -> (i32, i32) {
    %c0_i32 = arith.constant 0 : i32
    %c0_i32_0 = arith.constant 0 : i32
    %c0_i32_1 = arith.constant 0 : i32
    return %c0_i32, %c0_i32_0 : i32, i32
  }
  func.func @transform_1(%arg0: i32) -> (i32, i32, i32) {
    %c0_i32 = arith.constant 0 : i32
    %c0_i32_0 = arith.constant 0 : i32
    %c0_i32_1 = arith.constant 0 : i32
    return %arg0, %c0_i32, %c0_i32_0 : i32, i32, i32
  }
  func.func @transform_2(%arg0: i32) -> (i32, i32) {
    %c0_i32 = arith.constant 0 : i32
    %c0_i32_0 = arith.constant 0 : i32
    %c0_i32_1 = arith.constant 0 : i32
    return %c0_i32, %c0_i32_0 : i32, i32
  }
  func.func @transform_3(%arg0: i32) -> (i32, i32, i32) {
    %c0_i32 = arith.constant 0 : i32
    %c0_i32_0 = arith.constant 0 : i32
    %c0_i32_1 = arith.constant 0 : i32
    return %arg0, %c0_i32, %c0_i32_0 : i32, i32, i32
  }
}

module attributes {stable_mosaic.version = 11 : i64} {
  func.func @kernel(%arg0: i32, %arg1: memref<8x36xbf16, #tpu.memory_space<vmem>>, %arg2: memref<1x36x256xbf16, #tpu.memory_space<vmem>>, %arg3: memref<1x8x256xbf16, #tpu.memory_space<vmem>>) attributes {dimension_semantics = [#tpu.dimension_semantics<parallel>], iteration_bounds = array<i64: 2>, scalar_prefetch = 0 : i64, scratch_operands = 0 : i64, tpu.core_type = #tpu.core_type<tc>, window_params = [{pipeline_mode = #tpu.pipeline_mode<synchronous>, transform_indices = @transform_0, window_bounds = array<i64: 8, 36>}, {transform_indices = @transform_1, window_bounds = array<i64: 1, 36, 256>}, {transform_indices = @transform_2, window_bounds = array<i64: 1, 8, 256>}]} {
    %c0 = arith.constant 0 : index
    %c0_0 = arith.constant 0 : index
    %0 = vector.load %arg1[%c0, %c0_0] : memref<8x36xbf16, #tpu.memory_space<vmem>>, vector<8x36xbf16>
    %c0_1 = arith.constant 0 : index
    %c0_2 = arith.constant 0 : index
    %c0_3 = arith.constant 0 : index
    %1 = vector.load %arg2[%c0_1, %c0_2, %c0_3] : memref<1x36x256xbf16, #tpu.memory_space<vmem>>, vector<1x36x256xbf16>
    %2 = vector.shape_cast %1 : vector<1x36x256xbf16> to vector<36x256xbf16>
    %cst = arith.constant dense<0.000000e+00> : vector<8x256xf32>
    %3 = tpu.matmul %0, %2, %cst {dimension_numbers = #tpu.dot_dimension_numbers<[1], [0], [0], [1], [0, 0, 1, 1], [], []>} : vector<8x36xbf16>, vector<36x256xbf16>, vector<8x256xf32> -> vector<8x256xf32>
    %cst_4 = arith.constant dense<0.000000e+00> : vector<8xf32>
    %4 = vector.multi_reduction <add>, %3, %cst_4 [1] : vector<8x256xf32> to vector<8xf32>
    %5 = vector.shape_cast %4 : vector<8xf32> to vector<8x1xf32>
    %cst_5 = arith.constant 2.560000e+02 : f32
    %6 = vector.broadcast %cst_5 : f32 to vector<8x1xf32>
    %7 = arith.divf %5, %6 : vector<8x1xf32>
    %8 = vector.broadcast %7 : vector<8x1xf32> to vector<8x256xf32>
    %9 = arith.subf %3, %8 : vector<8x256xf32>
    %10 = arith.mulf %9, %9 : vector<8x256xf32>
    %cst_6 = arith.constant dense<0.000000e+00> : vector<8xf32>
    %11 = vector.multi_reduction <add>, %10, %cst_6 [1] : vector<8x256xf32> to vector<8xf32>
    %12 = vector.shape_cast %11 : vector<8xf32> to vector<8x1xf32>
    %cst_7 = arith.constant 2.560000e+02 : f32
    %13 = vector.broadcast %cst_7 : f32 to vector<8x1xf32>
    %14 = arith.divf %12, %13 : vector<8x1xf32>
    %15 = vector.broadcast %7 : vector<8x1xf32> to vector<8x256xf32>
    %16 = arith.subf %3, %15 : vector<8x256xf32>
    %cst_8 = arith.constant 9.99999974E-6 : f32
    %17 = vector.broadcast %cst_8 : f32 to vector<8x1xf32>
    %18 = arith.addf %14, %17 : vector<8x1xf32>
    %19 = math.rsqrt %18 : vector<8x1xf32>
    %20 = vector.broadcast %19 : vector<8x1xf32> to vector<8x256xf32>
    %21 = arith.mulf %16, %20 : vector<8x256xf32>
    %cst_9 = arith.constant 0.000000e+00 : f32
    %22 = vector.broadcast %cst_9 : f32 to vector<8x256xf32>
    %23 = arith.cmpf ogt, %21, %22 : vector<8x256xf32>
    %cst_10 = arith.constant 2.000000e-01 : f32
    %24 = vector.broadcast %cst_10 : f32 to vector<8x256xf32>
    %25 = arith.mulf %24, %21 : vector<8x256xf32>
    %26 = arith.select %23, %21, %25 : vector<8x256xi1>, vector<8x256xf32>
    %27 = arith.truncf %26 : vector<8x256xf32> to vector<8x256xbf16>
    %c0_11 = arith.constant 0 : index
    %c0_12 = arith.constant 0 : index
    %c0_13 = arith.constant 0 : index
    %28 = vector.load %arg3[%c0_11, %c0_12, %c0_13] : memref<1x8x256xbf16, #tpu.memory_space<vmem>>, vector<1x8x256xbf16>
    %29 = vector.shape_cast %28 : vector<1x8x256xbf16> to vector<8x256xbf16>
    %30 = vector.shape_cast %27 : vector<8x256xbf16> to vector<1x8x256xbf16>
    tpu.vector_store %arg3[%c0_11, %c0_12, %c0_13], %30 {strides = array<i32>} : memref<1x8x256xbf16, #tpu.memory_space<vmem>>, vector<1x8x256xbf16>,
    return
  }
  func.func @transform_0(%arg0: i32) -> (i32, i32) {
    %c0_i32 = arith.constant 0 : i32
    %c0_i32_0 = arith.constant 0 : i32
    %c0_i32_1 = arith.constant 0 : i32
    return %c0_i32, %c0_i32_0 : i32, i32
  }
  func.func @transform_1(%arg0: i32) -> (i32, i32, i32) {
    %c0_i32 = arith.constant 0 : i32
    %c0_i32_0 = arith.constant 0 : i32
    %c0_i32_1 = arith.constant 0 : i32
    return %arg0, %c0_i32, %c0_i32_0 : i32, i32, i32
  }
  func.func @transform_2(%arg0: i32) -> (i32, i32, i32) {
    %c0_i32 = arith.constant 0 : i32
    %c0_i32_0 = arith.constant 0 : i32
    %c0_i32_1 = arith.constant 0 : i32
    return %arg0, %c0_i32, %c0_i32_0 : i32, i32, i32
  }
}

module attributes {stable_mosaic.version = 11 : i64} {
  func.func @kernel(%arg0: i32, %arg1: memref<16x72xbf16, #tpu.memory_space<vmem>>, %arg2: memref<1x72x64xbf16, #tpu.memory_space<vmem>>, %arg3: memref<1x16x64xbf16, #tpu.memory_space<vmem>>) attributes {dimension_semantics = [#tpu.dimension_semantics<parallel>], iteration_bounds = array<i64: 2>, scalar_prefetch = 0 : i64, scratch_operands = 0 : i64, tpu.core_type = #tpu.core_type<tc>, window_params = [{pipeline_mode = #tpu.pipeline_mode<synchronous>, transform_indices = @transform_0, window_bounds = array<i64: 16, 72>}, {transform_indices = @transform_1, window_bounds = array<i64: 1, 72, 64>}, {transform_indices = @transform_2, window_bounds = array<i64: 1, 16, 64>}]} {
    %c0 = arith.constant 0 : index
    %c0_0 = arith.constant 0 : index
    %0 = vector.load %arg1[%c0, %c0_0] : memref<16x72xbf16, #tpu.memory_space<vmem>>, vector<16x72xbf16>
    %c0_1 = arith.constant 0 : index
    %c0_2 = arith.constant 0 : index
    %c0_3 = arith.constant 0 : index
    %1 = vector.load %arg2[%c0_1, %c0_2, %c0_3] : memref<1x72x64xbf16, #tpu.memory_space<vmem>>, vector<1x72x64xbf16>
    %2 = vector.shape_cast %1 : vector<1x72x64xbf16> to vector<72x64xbf16>
    %cst = arith.constant dense<0.000000e+00> : vector<16x64xf32>
    %3 = tpu.matmul %0, %2, %cst {dimension_numbers = #tpu.dot_dimension_numbers<[1], [0], [0], [1], [0, 0, 1, 1], [], []>} : vector<16x72xbf16>, vector<72x64xbf16>, vector<16x64xf32> -> vector<16x64xf32>
    %cst_4 = arith.constant dense<0.000000e+00> : vector<16xf32>
    %4 = vector.multi_reduction <add>, %3, %cst_4 [1] : vector<16x64xf32> to vector<16xf32>
    %5 = vector.shape_cast %4 : vector<16xf32> to vector<16x1xf32>
    %cst_5 = arith.constant 6.400000e+01 : f32
    %6 = vector.broadcast %cst_5 : f32 to vector<16x1xf32>
    %7 = arith.divf %5, %6 : vector<16x1xf32>
    %8 = vector.broadcast %7 : vector<16x1xf32> to vector<16x64xf32>
    %9 = arith.subf %3, %8 : vector<16x64xf32>
    %10 = arith.mulf %9, %9 : vector<16x64xf32>
    %cst_6 = arith.constant dense<0.000000e+00> : vector<16xf32>
    %11 = vector.multi_reduction <add>, %10, %cst_6 [1] : vector<16x64xf32> to vector<16xf32>
    %12 = vector.shape_cast %11 : vector<16xf32> to vector<16x1xf32>
    %cst_7 = arith.constant 6.400000e+01 : f32
    %13 = vector.broadcast %cst_7 : f32 to vector<16x1xf32>
    %14 = arith.divf %12, %13 : vector<16x1xf32>
    %15 = vector.broadcast %7 : vector<16x1xf32> to vector<16x64xf32>
    %16 = arith.subf %3, %15 : vector<16x64xf32>
    %cst_8 = arith.constant 9.99999974E-6 : f32
    %17 = vector.broadcast %cst_8 : f32 to vector<16x1xf32>
    %18 = arith.addf %14, %17 : vector<16x1xf32>
    %19 = math.rsqrt %18 : vector<16x1xf32>
    %20 = vector.broadcast %19 : vector<16x1xf32> to vector<16x64xf32>
    %21 = arith.mulf %16, %20 : vector<16x64xf32>
    %cst_9 = arith.constant 0.000000e+00 : f32
    %22 = vector.broadcast %cst_9 : f32 to vector<16x64xf32>
    %23 = arith.cmpf ogt, %21, %22 : vector<16x64xf32>
    %cst_10 = arith.constant 2.000000e-01 : f32
    %24 = vector.broadcast %cst_10 : f32 to vector<16x64xf32>
    %25 = arith.mulf %24, %21 : vector<16x64xf32>
    %26 = arith.select %23, %21, %25 : vector<16x64xi1>, vector<16x64xf32>
    %27 = arith.truncf %26 : vector<16x64xf32> to vector<16x64xbf16>
    %c0_11 = arith.constant 0 : index
    %c0_12 = arith.constant 0 : index
    %c0_13 = arith.constant 0 : index
    %28 = vector.load %arg3[%c0_11, %c0_12, %c0_13] : memref<1x16x64xbf16, #tpu.memory_space<vmem>>, vector<1x16x64xbf16>
    %29 = vector.shape_cast %28 : vector<1x16x64xbf16> to vector<16x64xbf16>
    %30 = vector.shape_cast %27 : vector<16x64xbf16> to vector<1x16x64xbf16>
    tpu.vector_store %arg3[%c0_11, %c0_12, %c0_13], %30 {strides = array<i32>} : memref<1x16x64xbf16, #tpu.memory_space<vmem>>, vector<1x16x64xbf16>,
    return
  }
  func.func @transform_0(%arg0: i32) -> (i32, i32) {
    %c0_i32 = arith.constant 0 : i32
    %c0_i32_0 = arith.constant 0 : i32
    %c0_i32_1 = arith.constant 0 : i32
    return %c0_i32, %c0_i32_0 : i32, i32
  }
  func.func @transform_1(%arg0: i32) -> (i32, i32, i32) {
    %c0_i32 = arith.constant 0 : i32
    %c0_i32_0 = arith.constant 0 : i32
    %c0_i32_1 = arith.constant 0 : i32
    return %arg0, %c0_i32, %c0_i32_0 : i32, i32, i32
  }
  func.func @transform_2(%arg0: i32) -> (i32, i32, i32) {
    %c0_i32 = arith.constant 0 : i32
    %c0_i32_0 = arith.constant 0 : i32
    %c0_i32_1 = arith.constant 0 : i32
    return %arg0, %c0_i32, %c0_i32_0 : i32, i32, i32
  }
}

module attributes {stable_mosaic.version = 11 : i64} {
  func.func @kernel(%arg0: i32, %arg1: memref<32x144xbf16, #tpu.memory_space<vmem>>, %arg2: memref<1x144x16xbf16, #tpu.memory_space<vmem>>, %arg3: memref<1x32x16xbf16, #tpu.memory_space<vmem>>) attributes {dimension_semantics = [#tpu.dimension_semantics<parallel>], iteration_bounds = array<i64: 2>, scalar_prefetch = 0 : i64, scratch_operands = 0 : i64, tpu.core_type = #tpu.core_type<tc>, window_params = [{pipeline_mode = #tpu.pipeline_mode<synchronous>, transform_indices = @transform_0, window_bounds = array<i64: 32, 144>}, {transform_indices = @transform_1, window_bounds = array<i64: 1, 144, 16>}, {transform_indices = @transform_2, window_bounds = array<i64: 1, 32, 16>}]} {
    %c0 = arith.constant 0 : index
    %c0_0 = arith.constant 0 : index
    %0 = vector.load %arg1[%c0, %c0_0] : memref<32x144xbf16, #tpu.memory_space<vmem>>, vector<32x144xbf16>
    %c0_1 = arith.constant 0 : index
    %c0_2 = arith.constant 0 : index
    %c0_3 = arith.constant 0 : index
    %1 = vector.load %arg2[%c0_1, %c0_2, %c0_3] : memref<1x144x16xbf16, #tpu.memory_space<vmem>>, vector<1x144x16xbf16>
    %2 = vector.shape_cast %1 : vector<1x144x16xbf16> to vector<144x16xbf16>
    %cst = arith.constant dense<0.000000e+00> : vector<32x16xf32>
    %3 = tpu.matmul %0, %2, %cst {dimension_numbers = #tpu.dot_dimension_numbers<[1], [0], [0], [1], [0, 0, 1, 1], [], []>} : vector<32x144xbf16>, vector<144x16xbf16>, vector<32x16xf32> -> vector<32x16xf32>
    %cst_4 = arith.constant dense<0.000000e+00> : vector<32xf32>
    %4 = vector.multi_reduction <add>, %3, %cst_4 [1] : vector<32x16xf32> to vector<32xf32>
    %5 = vector.shape_cast %4 : vector<32xf32> to vector<32x1xf32>
    %cst_5 = arith.constant 1.600000e+01 : f32
    %6 = vector.broadcast %cst_5 : f32 to vector<32x1xf32>
    %7 = arith.divf %5, %6 : vector<32x1xf32>
    %8 = vector.broadcast %7 : vector<32x1xf32> to vector<32x16xf32>
    %9 = arith.subf %3, %8 : vector<32x16xf32>
    %10 = arith.mulf %9, %9 : vector<32x16xf32>
    %cst_6 = arith.constant dense<0.000000e+00> : vector<32xf32>
    %11 = vector.multi_reduction <add>, %10, %cst_6 [1] : vector<32x16xf32> to vector<32xf32>
    %12 = vector.shape_cast %11 : vector<32xf32> to vector<32x1xf32>
    %cst_7 = arith.constant 1.600000e+01 : f32
    %13 = vector.broadcast %cst_7 : f32 to vector<32x1xf32>
    %14 = arith.divf %12, %13 : vector<32x1xf32>
    %15 = vector.broadcast %7 : vector<32x1xf32> to vector<32x16xf32>
    %16 = arith.subf %3, %15 : vector<32x16xf32>
    %cst_8 = arith.constant 9.99999974E-6 : f32
    %17 = vector.broadcast %cst_8 : f32 to vector<32x1xf32>
    %18 = arith.addf %14, %17 : vector<32x1xf32>
    %19 = math.rsqrt %18 : vector<32x1xf32>
    %20 = vector.broadcast %19 : vector<32x1xf32> to vector<32x16xf32>
    %21 = arith.mulf %16, %20 : vector<32x16xf32>
    %cst_9 = arith.constant 0.000000e+00 : f32
    %22 = vector.broadcast %cst_9 : f32 to vector<32x16xf32>
    %23 = arith.cmpf ogt, %21, %22 : vector<32x16xf32>
    %cst_10 = arith.constant 2.000000e-01 : f32
    %24 = vector.broadcast %cst_10 : f32 to vector<32x16xf32>
    %25 = arith.mulf %24, %21 : vector<32x16xf32>
    %26 = arith.select %23, %21, %25 : vector<32x16xi1>, vector<32x16xf32>
    %27 = arith.truncf %26 : vector<32x16xf32> to vector<32x16xbf16>
    %c0_11 = arith.constant 0 : index
    %c0_12 = arith.constant 0 : index
    %c0_13 = arith.constant 0 : index
    %28 = vector.load %arg3[%c0_11, %c0_12, %c0_13] : memref<1x32x16xbf16, #tpu.memory_space<vmem>>, vector<1x32x16xbf16>
    %29 = vector.shape_cast %28 : vector<1x32x16xbf16> to vector<32x16xbf16>
    %30 = vector.shape_cast %27 : vector<32x16xbf16> to vector<1x32x16xbf16>
    tpu.vector_store %arg3[%c0_11, %c0_12, %c0_13], %30 {strides = array<i32>} : memref<1x32x16xbf16, #tpu.memory_space<vmem>>, vector<1x32x16xbf16>,
    return
  }
  func.func @transform_0(%arg0: i32) -> (i32, i32) {
    %c0_i32 = arith.constant 0 : i32
    %c0_i32_0 = arith.constant 0 : i32
    %c0_i32_1 = arith.constant 0 : i32
    return %c0_i32, %c0_i32_0 : i32, i32
  }
  func.func @transform_1(%arg0: i32) -> (i32, i32, i32) {
    %c0_i32 = arith.constant 0 : i32
    %c0_i32_0 = arith.constant 0 : i32
    %c0_i32_1 = arith.constant 0 : i32
    return %arg0, %c0_i32, %c0_i32_0 : i32, i32, i32
  }
  func.func @transform_2(%arg0: i32) -> (i32, i32, i32) {
    %c0_i32 = arith.constant 0 : i32
    %c0_i32_0 = arith.constant 0 : i32
    %c0_i32_1 = arith.constant 0 : i32
    return %arg0, %c0_i32, %c0_i32_0 : i32, i32, i32
  }
}

module attributes {stable_mosaic.version = 11 : i64} {
  func.func @kernel(%arg0: i32, %arg1: memref<64x288xbf16, #tpu.memory_space<vmem>>, %arg2: memref<1x288x4xbf16, #tpu.memory_space<vmem>>, %arg3: memref<1x64x4xbf16, #tpu.memory_space<vmem>>) attributes {dimension_semantics = [#tpu.dimension_semantics<parallel>], iteration_bounds = array<i64: 2>, scalar_prefetch = 0 : i64, scratch_operands = 0 : i64, tpu.core_type = #tpu.core_type<tc>, window_params = [{pipeline_mode = #tpu.pipeline_mode<synchronous>, transform_indices = @transform_0, window_bounds = array<i64: 64, 288>}, {transform_indices = @transform_1, window_bounds = array<i64: 1, 288, 4>}, {transform_indices = @transform_2, window_bounds = array<i64: 1, 64, 4>}]} {
    %c0 = arith.constant 0 : index
    %c0_0 = arith.constant 0 : index
    %0 = vector.load %arg1[%c0, %c0_0] : memref<64x288xbf16, #tpu.memory_space<vmem>>, vector<64x288xbf16>
    %c0_1 = arith.constant 0 : index
    %c0_2 = arith.constant 0 : index
    %c0_3 = arith.constant 0 : index
    %1 = vector.load %arg2[%c0_1, %c0_2, %c0_3] : memref<1x288x4xbf16, #tpu.memory_space<vmem>>, vector<1x288x4xbf16>
    %2 = vector.shape_cast %1 : vector<1x288x4xbf16> to vector<288x4xbf16>
    %cst = arith.constant dense<0.000000e+00> : vector<64x4xf32>
    %3 = tpu.matmul %0, %2, %cst {dimension_numbers = #tpu.dot_dimension_numbers<[1], [0], [0], [1], [0, 0, 1, 1], [], []>} : vector<64x288xbf16>, vector<288x4xbf16>, vector<64x4xf32> -> vector<64x4xf32>
    %cst_4 = arith.constant dense<0.000000e+00> : vector<64xf32>
    %4 = vector.multi_reduction <add>, %3, %cst_4 [1] : vector<64x4xf32> to vector<64xf32>
    %5 = vector.shape_cast %4 : vector<64xf32> to vector<64x1xf32>
    %cst_5 = arith.constant 4.000000e+00 : f32
    %6 = vector.broadcast %cst_5 : f32 to vector<64x1xf32>
    %7 = arith.divf %5, %6 : vector<64x1xf32>
    %8 = vector.broadcast %7 : vector<64x1xf32> to vector<64x4xf32>
    %9 = arith.subf %3, %8 : vector<64x4xf32>
    %10 = arith.mulf %9, %9 : vector<64x4xf32>
    %cst_6 = arith.constant dense<0.000000e+00> : vector<64xf32>
    %11 = vector.multi_reduction <add>, %10, %cst_6 [1] : vector<64x4xf32> to vector<64xf32>
    %12 = vector.shape_cast %11 : vector<64xf32> to vector<64x1xf32>
    %cst_7 = arith.constant 4.000000e+00 : f32
    %13 = vector.broadcast %cst_7 : f32 to vector<64x1xf32>
    %14 = arith.divf %12, %13 : vector<64x1xf32>
    %15 = vector.broadcast %7 : vector<64x1xf32> to vector<64x4xf32>
    %16 = arith.subf %3, %15 : vector<64x4xf32>
    %cst_8 = arith.constant 9.99999974E-6 : f32
    %17 = vector.broadcast %cst_8 : f32 to vector<64x1xf32>
    %18 = arith.addf %14, %17 : vector<64x1xf32>
    %19 = math.rsqrt %18 : vector<64x1xf32>
    %20 = vector.broadcast %19 : vector<64x1xf32> to vector<64x4xf32>
    %21 = arith.mulf %16, %20 : vector<64x4xf32>
    %22 = arith.truncf %21 : vector<64x4xf32> to vector<64x4xbf16>
    %c0_9 = arith.constant 0 : index
    %c0_10 = arith.constant 0 : index
    %c0_11 = arith.constant 0 : index
    %23 = vector.load %arg3[%c0_9, %c0_10, %c0_11] : memref<1x64x4xbf16, #tpu.memory_space<vmem>>, vector<1x64x4xbf16>
    %24 = vector.shape_cast %23 : vector<1x64x4xbf16> to vector<64x4xbf16>
    %25 = vector.shape_cast %22 : vector<64x4xbf16> to vector<1x64x4xbf16>
    tpu.vector_store %arg3[%c0_9, %c0_10, %c0_11], %25 {strides = array<i32>} : memref<1x64x4xbf16, #tpu.memory_space<vmem>>, vector<1x64x4xbf16>,
    return
  }
  func.func @transform_0(%arg0: i32) -> (i32, i32) {
    %c0_i32 = arith.constant 0 : i32
    %c0_i32_0 = arith.constant 0 : i32
    %c0_i32_1 = arith.constant 0 : i32
    return %c0_i32, %c0_i32_0 : i32, i32
  }
  func.func @transform_1(%arg0: i32) -> (i32, i32, i32) {
    %c0_i32 = arith.constant 0 : i32
    %c0_i32_0 = arith.constant 0 : i32
    %c0_i32_1 = arith.constant 0 : i32
    return %arg0, %c0_i32, %c0_i32_0 : i32, i32, i32
  }
  func.func @transform_2(%arg0: i32) -> (i32, i32, i32) {
    %c0_i32 = arith.constant 0 : i32
    %c0_i32_0 = arith.constant 0 : i32
    %c0_i32_1 = arith.constant 0 : i32
    return %arg0, %c0_i32, %c0_i32_0 : i32, i32, i32
  }
}

module attributes {stable_mosaic.version = 11 : i64} {
  func.func @kernel(%arg0: i32, %arg1: memref<1x1x256xbf16, #tpu.memory_space<vmem>>, %arg2: memref<3x256x256xbf16, #tpu.memory_space<vmem>>, %arg3: memref<3x1x256xf32, #tpu.memory_space<vmem>>, %arg4: memref<3x256x256xbf16, #tpu.memory_space<vmem>>, %arg5: memref<3x1x256xf32, #tpu.memory_space<vmem>>, %arg6: memref<256x512xbf16, #tpu.memory_space<vmem>>, %arg7: memref<512x512xbf16, #tpu.memory_space<vmem>>, %arg8: memref<512x512xbf16, #tpu.memory_space<vmem>>, %arg9: memref<1x1x512xf32, #tpu.memory_space<vmem>>) attributes {dimension_semantics = [#tpu.dimension_semantics<parallel>], iteration_bounds = array<i64: 2>, scalar_prefetch = 0 : i64, scratch_operands = 0 : i64, tpu.core_type = #tpu.core_type<tc>, window_params = [{transform_indices = @transform_0, window_bounds = array<i64: 1, 1, 256>}, {pipeline_mode = #tpu.pipeline_mode<synchronous>, transform_indices = @transform_1, window_bounds = array<i64: 3, 256, 256>}, {pipeline_mode = #tpu.pipeline_mode<synchronous>, transform_indices = @transform_2, window_bounds = array<i64: 3, 1, 256>}, {pipeline_mode = #tpu.pipeline_mode<synchronous>, transform_indices = @transform_3, window_bounds = array<i64: 3, 256, 256>}, {pipeline_mode = #tpu.pipeline_mode<synchronous>, transform_indices = @transform_4, window_bounds = array<i64: 3, 1, 256>}, {pipeline_mode = #tpu.pipeline_mode<synchronous>, transform_indices = @transform_5, window_bounds = array<i64: 256, 512>}, {pipeline_mode = #tpu.pipeline_mode<synchronous>, transform_indices = @transform_6, window_bounds = array<i64: 512, 512>}, {pipeline_mode = #tpu.pipeline_mode<synchronous>, transform_indices = @transform_7, window_bounds = array<i64: 512, 512>}, {transform_indices = @transform_8, window_bounds = array<i64: 1, 1, 512>}]} {
    %c0 = arith.constant 0 : index
    %c0_0 = arith.constant 0 : index
    %c0_1 = arith.constant 0 : index
    %0 = vector.load %arg1[%c0, %c0_0, %c0_1] : memref<1x1x256xbf16, #tpu.memory_space<vmem>>, vector<1x1x256xbf16>
    %1 = vector.shape_cast %0 : vector<1x1x256xbf16> to vector<1x256xbf16>
    %2 = arith.extf %1 : vector<1x256xbf16> to vector<1x256xf32>
    %3 = arith.truncf %2 : vector<1x256xf32> to vector<1x256xbf16>
    %c0_2 = arith.constant 0 : index
    %c0_3 = arith.constant 0 : index
    %c0_4 = arith.constant 0 : index
    %4 = vector.load %arg2[%c0_2, %c0_3, %c0_4] : memref<3x256x256xbf16, #tpu.memory_space<vmem>>, vector<1x256x256xbf16>
    %5 = vector.shape_cast %4 : vector<1x256x256xbf16> to vector<256x256xbf16>
    %cst = arith.constant dense<0.000000e+00> : vector<1x256xf32>
    %6 = tpu.matmul %3, %5, %cst {dimension_numbers = #tpu.dot_dimension_numbers<[1], [0], [0], [1], [0, 0, 1, 1], [], []>} : vector<1x256xbf16>, vector<256x256xbf16>, vector<1x256xf32> -> vector<1x256xf32>
    %c0_5 = arith.constant 0 : index
    %c0_6 = arith.constant 0 : index
    %c0_7 = arith.constant 0 : index
    %7 = vector.load %arg3[%c0_5, %c0_6, %c0_7] : memref<3x1x256xf32, #tpu.memory_space<vmem>>, vector<1x1x256xf32>
    %8 = vector.shape_cast %7 : vector<1x1x256xf32> to vector<1x256xf32>
    %9 = arith.addf %6, %8 : vector<1x256xf32>
    %cst_8 = arith.constant 0.000000e+00 : f32
    %10 = vector.broadcast %cst_8 : f32 to vector<1x256xf32>
    %11 = arith.cmpf ogt, %9, %10 : vector<1x256xf32>
    %cst_9 = arith.constant 2.000000e-01 : f32
    %12 = vector.broadcast %cst_9 : f32 to vector<1x256xf32>
    %13 = arith.mulf %12, %9 : vector<1x256xf32>
    %14 = arith.select %11, %9, %13 : vector<1x256xi1>, vector<1x256xf32>
    %15 = arith.truncf %14 : vector<1x256xf32> to vector<1x256xbf16>
    %c0_10 = arith.constant 0 : index
    %c0_11 = arith.constant 0 : index
    %c0_12 = arith.constant 0 : index
    %16 = vector.load %arg4[%c0_10, %c0_11, %c0_12] : memref<3x256x256xbf16, #tpu.memory_space<vmem>>, vector<1x256x256xbf16>
    %17 = vector.shape_cast %16 : vector<1x256x256xbf16> to vector<256x256xbf16>
    %cst_13 = arith.constant dense<0.000000e+00> : vector<1x256xf32>
    %18 = tpu.matmul %15, %17, %cst_13 {dimension_numbers = #tpu.dot_dimension_numbers<[1], [0], [0], [1], [0, 0, 1, 1], [], []>} : vector<1x256xbf16>, vector<256x256xbf16>, vector<1x256xf32> -> vector<1x256xf32>
    %c0_14 = arith.constant 0 : index
    %c0_15 = arith.constant 0 : index
    %c0_16 = arith.constant 0 : index
    %19 = vector.load %arg5[%c0_14, %c0_15, %c0_16] : memref<3x1x256xf32, #tpu.memory_space<vmem>>, vector<1x1x256xf32>
    %20 = vector.shape_cast %19 : vector<1x1x256xf32> to vector<1x256xf32>
    %21 = arith.addf %18, %20 : vector<1x256xf32>
    %22 = arith.addf %2, %21 : vector<1x256xf32>
    %cst_17 = arith.constant 0.000000e+00 : f32
    %23 = vector.broadcast %cst_17 : f32 to vector<1x256xf32>
    %24 = arith.cmpf ogt, %22, %23 : vector<1x256xf32>
    %cst_18 = arith.constant 2.000000e-01 : f32
    %25 = vector.broadcast %cst_18 : f32 to vector<1x256xf32>
    %26 = arith.mulf %25, %22 : vector<1x256xf32>
    %27 = arith.select %24, %22, %26 : vector<1x256xi1>, vector<1x256xf32>
    %28 = arith.truncf %27 : vector<1x256xf32> to vector<1x256xbf16>
    %c1 = arith.constant 1 : index
    %c0_19 = arith.constant 0 : index
    %c0_20 = arith.constant 0 : index
    %29 = vector.load %arg2[%c1, %c0_19, %c0_20] : memref<3x256x256xbf16, #tpu.memory_space<vmem>>, vector<1x256x256xbf16>
    %30 = vector.shape_cast %29 : vector<1x256x256xbf16> to vector<256x256xbf16>
    %cst_21 = arith.constant dense<0.000000e+00> : vector<1x256xf32>
    %31 = tpu.matmul %28, %30, %cst_21 {dimension_numbers = #tpu.dot_dimension_numbers<[1], [0], [0], [1], [0, 0, 1, 1], [], []>} : vector<1x256xbf16>, vector<256x256xbf16>, vector<1x256xf32> -> vector<1x256xf32>
    %c1_22 = arith.constant 1 : index
    %c0_23 = arith.constant 0 : index
    %c0_24 = arith.constant 0 : index
    %32 = vector.load %arg3[%c1_22, %c0_23, %c0_24] : memref<3x1x256xf32, #tpu.memory_space<vmem>>, vector<1x1x256xf32>
    %33 = vector.shape_cast %32 : vector<1x1x256xf32> to vector<1x256xf32>
    %34 = arith.addf %31, %33 : vector<1x256xf32>
    %cst_25 = arith.constant 0.000000e+00 : f32
    %35 = vector.broadcast %cst_25 : f32 to vector<1x256xf32>
    %36 = arith.cmpf ogt, %34, %35 : vector<1x256xf32>
    %cst_26 = arith.constant 2.000000e-01 : f32
    %37 = vector.broadcast %cst_26 : f32 to vector<1x256xf32>
    %38 = arith.mulf %37, %34 : vector<1x256xf32>
    %39 = arith.select %36, %34, %38 : vector<1x256xi1>, vector<1x256xf32>
    %40 = arith.truncf %39 : vector<1x256xf32> to vector<1x256xbf16>
    %c1_27 = arith.constant 1 : index
    %c0_28 = arith.constant 0 : index
    %c0_29 = arith.constant 0 : index
    %41 = vector.load %arg4[%c1_27, %c0_28, %c0_29] : memref<3x256x256xbf16, #tpu.memory_space<vmem>>, vector<1x256x256xbf16>
    %42 = vector.shape_cast %41 : vector<1x256x256xbf16> to vector<256x256xbf16>
    %cst_30 = arith.constant dense<0.000000e+00> : vector<1x256xf32>
    %43 = tpu.matmul %40, %42, %cst_30 {dimension_numbers = #tpu.dot_dimension_numbers<[1], [0], [0], [1], [0, 0, 1, 1], [], []>} : vector<1x256xbf16>, vector<256x256xbf16>, vector<1x256xf32> -> vector<1x256xf32>
    %c1_31 = arith.constant 1 : index
    %c0_32 = arith.constant 0 : index
    %c0_33 = arith.constant 0 : index
    %44 = vector.load %arg5[%c1_31, %c0_32, %c0_33] : memref<3x1x256xf32, #tpu.memory_space<vmem>>, vector<1x1x256xf32>
    %45 = vector.shape_cast %44 : vector<1x1x256xf32> to vector<1x256xf32>
    %46 = arith.addf %43, %45 : vector<1x256xf32>
    %47 = arith.addf %27, %46 : vector<1x256xf32>
    %cst_34 = arith.constant 0.000000e+00 : f32
    %48 = vector.broadcast %cst_34 : f32 to vector<1x256xf32>
    %49 = arith.cmpf ogt, %47, %48 : vector<1x256xf32>
    %cst_35 = arith.constant 2.000000e-01 : f32
    %50 = vector.broadcast %cst_35 : f32 to vector<1x256xf32>
    %51 = arith.mulf %50, %47 : vector<1x256xf32>
    %52 = arith.select %49, %47, %51 : vector<1x256xi1>, vector<1x256xf32>
    %53 = arith.truncf %52 : vector<1x256xf32> to vector<1x256xbf16>
    %c2 = arith.constant 2 : index
    %c0_36 = arith.constant 0 : index
    %c0_37 = arith.constant 0 : index
    %54 = vector.load %arg2[%c2, %c0_36, %c0_37] : memref<3x256x256xbf16, #tpu.memory_space<vmem>>, vector<1x256x256xbf16>
    %55 = vector.shape_cast %54 : vector<1x256x256xbf16> to vector<256x256xbf16>
    %cst_38 = arith.constant dense<0.000000e+00> : vector<1x256xf32>
    %56 = tpu.matmul %53, %55, %cst_38 {dimension_numbers = #tpu.dot_dimension_numbers<[1], [0], [0], [1], [0, 0, 1, 1], [], []>} : vector<1x256xbf16>, vector<256x256xbf16>, vector<1x256xf32> -> vector<1x256xf32>
    %c2_39 = arith.constant 2 : index
    %c0_40 = arith.constant 0 : index
    %c0_41 = arith.constant 0 : index
    %57 = vector.load %arg3[%c2_39, %c0_40, %c0_41] : memref<3x1x256xf32, #tpu.memory_space<vmem>>, vector<1x1x256xf32>
    %58 = vector.shape_cast %57 : vector<1x1x256xf32> to vector<1x256xf32>
    %59 = arith.addf %56, %58 : vector<1x256xf32>
    %cst_42 = arith.constant 0.000000e+00 : f32
    %60 = vector.broadcast %cst_42 : f32 to vector<1x256xf32>
    %61 = arith.cmpf ogt, %59, %60 : vector<1x256xf32>
    %cst_43 = arith.constant 2.000000e-01 : f32
    %62 = vector.broadcast %cst_43 : f32 to vector<1x256xf32>
    %63 = arith.mulf %62, %59 : vector<1x256xf32>
    %64 = arith.select %61, %59, %63 : vector<1x256xi1>, vector<1x256xf32>
    %65 = arith.truncf %64 : vector<1x256xf32> to vector<1x256xbf16>
    %c2_44 = arith.constant 2 : index
    %c0_45 = arith.constant 0 : index
    %c0_46 = arith.constant 0 : index
    %66 = vector.load %arg4[%c2_44, %c0_45, %c0_46] : memref<3x256x256xbf16, #tpu.memory_space<vmem>>, vector<1x256x256xbf16>
    %67 = vector.shape_cast %66 : vector<1x256x256xbf16> to vector<256x256xbf16>
    %cst_47 = arith.constant dense<0.000000e+00> : vector<1x256xf32>
    %68 = tpu.matmul %65, %67, %cst_47 {dimension_numbers = #tpu.dot_dimension_numbers<[1], [0], [0], [1], [0, 0, 1, 1], [], []>} : vector<1x256xbf16>, vector<256x256xbf16>, vector<1x256xf32> -> vector<1x256xf32>
    %c2_48 = arith.constant 2 : index
    %c0_49 = arith.constant 0 : index
    %c0_50 = arith.constant 0 : index
    %69 = vector.load %arg5[%c2_48, %c0_49, %c0_50] : memref<3x1x256xf32, #tpu.memory_space<vmem>>, vector<1x1x256xf32>
    %70 = vector.shape_cast %69 : vector<1x1x256xf32> to vector<1x256xf32>
    %71 = arith.addf %68, %70 : vector<1x256xf32>
    %72 = arith.addf %52, %71 : vector<1x256xf32>
    %cst_51 = arith.constant 0.000000e+00 : f32
    %73 = vector.broadcast %cst_51 : f32 to vector<1x256xf32>
    %74 = arith.cmpf ogt, %72, %73 : vector<1x256xf32>
    %cst_52 = arith.constant 2.000000e-01 : f32
    %75 = vector.broadcast %cst_52 : f32 to vector<1x256xf32>
    %76 = arith.mulf %75, %72 : vector<1x256xf32>
    %77 = arith.select %74, %72, %76 : vector<1x256xi1>, vector<1x256xf32>
    %78 = arith.truncf %77 : vector<1x256xf32> to vector<1x256xbf16>
    %c0_53 = arith.constant 0 : index
    %c0_54 = arith.constant 0 : index
    %79 = vector.load %arg6[%c0_53, %c0_54] : memref<256x512xbf16, #tpu.memory_space<vmem>>, vector<256x512xbf16>
    %cst_55 = arith.constant dense<0.000000e+00> : vector<1x512xf32>
    %80 = tpu.matmul %78, %79, %cst_55 {dimension_numbers = #tpu.dot_dimension_numbers<[1], [0], [0], [1], [0, 0, 1, 1], [], []>} : vector<1x256xbf16>, vector<256x512xbf16>, vector<1x512xf32> -> vector<1x512xf32>
    %81 = vector.extract_strided_slice %80 {offsets = [0, 0], sizes = [1, 128], strides = [1, 1]} : vector<1x512xf32> to vector<1x128xf32>
    %82 = vector.extract_strided_slice %80 {offsets = [0, 128], sizes = [1, 128], strides = [1, 1]} : vector<1x512xf32> to vector<1x128xf32>
    %83 = vector.extract_strided_slice %80 {offsets = [0, 256], sizes = [1, 128], strides = [1, 1]} : vector<1x512xf32> to vector<1x128xf32>
    %84 = vector.extract_strided_slice %80 {offsets = [0, 384], sizes = [1, 128], strides = [1, 1]} : vector<1x512xf32> to vector<1x128xf32>
    %85 = arith.addf %81, %82 : vector<1x128xf32>
    %86 = arith.addf %85, %83 : vector<1x128xf32>
    %87 = arith.addf %86, %84 : vector<1x128xf32>
    %cst_56 = arith.constant 2.500000e-01 : f32
    %88 = vector.broadcast %cst_56 : f32 to vector<1x128xf32>
    %89 = arith.mulf %87, %88 : vector<1x128xf32>
    %90 = arith.subf %81, %89 : vector<1x128xf32>
    %91 = arith.subf %82, %89 : vector<1x128xf32>
    %92 = arith.subf %83, %89 : vector<1x128xf32>
    %93 = arith.subf %84, %89 : vector<1x128xf32>
    %94 = arith.mulf %90, %90 : vector<1x128xf32>
    %95 = arith.mulf %91, %91 : vector<1x128xf32>
    %96 = arith.addf %94, %95 : vector<1x128xf32>
    %97 = arith.mulf %92, %92 : vector<1x128xf32>
    %98 = arith.addf %96, %97 : vector<1x128xf32>
    %99 = arith.mulf %93, %93 : vector<1x128xf32>
    %100 = arith.addf %98, %99 : vector<1x128xf32>
    %cst_57 = arith.constant 2.500000e-01 : f32
    %101 = vector.broadcast %cst_57 : f32 to vector<1x128xf32>
    %102 = arith.mulf %100, %101 : vector<1x128xf32>
    %cst_58 = arith.constant 9.99999974E-6 : f32
    %103 = vector.broadcast %cst_58 : f32 to vector<1x128xf32>
    %104 = arith.addf %102, %103 : vector<1x128xf32>
    %105 = math.rsqrt %104 : vector<1x128xf32>
    %106 = arith.mulf %90, %105 : vector<1x128xf32>
    %107 = arith.mulf %91, %105 : vector<1x128xf32>
    %108 = arith.mulf %92, %105 : vector<1x128xf32>
    %109 = arith.mulf %93, %105 : vector<1x128xf32>
    %110 = tpu.concatenate %106, %107, %108, %109 in 1 : vector<1x128xf32>, vector<1x128xf32>, vector<1x128xf32>, vector<1x128xf32> -> vector<1x512xf32>
    %cst_59 = arith.constant 0.000000e+00 : f32
    %111 = vector.broadcast %cst_59 : f32 to vector<1x512xf32>
    %112 = arith.cmpf ogt, %110, %111 : vector<1x512xf32>
    %cst_60 = arith.constant 2.000000e-01 : f32
    %113 = vector.broadcast %cst_60 : f32 to vector<1x512xf32>
    %114 = arith.mulf %113, %110 : vector<1x512xf32>
    %115 = arith.select %112, %110, %114 : vector<1x512xi1>, vector<1x512xf32>
    %116 = arith.truncf %115 : vector<1x512xf32> to vector<1x512xbf16>
    %c0_61 = arith.constant 0 : index
    %c0_62 = arith.constant 0 : index
    %117 = vector.load %arg7[%c0_61, %c0_62] : memref<512x512xbf16, #tpu.memory_space<vmem>>, vector<512x512xbf16>
    %cst_63 = arith.constant dense<0.000000e+00> : vector<1x512xf32>
    %118 = tpu.matmul %116, %117, %cst_63 {dimension_numbers = #tpu.dot_dimension_numbers<[1], [0], [0], [1], [0, 0, 1, 1], [], []>} : vector<1x512xbf16>, vector<512x512xbf16>, vector<1x512xf32> -> vector<1x512xf32>
    %119 = vector.extract_strided_slice %118 {offsets = [0, 0], sizes = [1, 128], strides = [1, 1]} : vector<1x512xf32> to vector<1x128xf32>
    %120 = vector.extract_strided_slice %118 {offsets = [0, 128], sizes = [1, 128], strides = [1, 1]} : vector<1x512xf32> to vector<1x128xf32>
    %121 = vector.extract_strided_slice %118 {offsets = [0, 256], sizes = [1, 128], strides = [1, 1]} : vector<1x512xf32> to vector<1x128xf32>
    %122 = vector.extract_strided_slice %118 {offsets = [0, 384], sizes = [1, 128], strides = [1, 1]} : vector<1x512xf32> to vector<1x128xf32>
    %123 = arith.addf %119, %120 : vector<1x128xf32>
    %124 = arith.addf %123, %121 : vector<1x128xf32>
    %125 = arith.addf %124, %122 : vector<1x128xf32>
    %cst_64 = arith.constant 2.500000e-01 : f32
    %126 = vector.broadcast %cst_64 : f32 to vector<1x128xf32>
    %127 = arith.mulf %125, %126 : vector<1x128xf32>
    %128 = arith.subf %119, %127 : vector<1x128xf32>
    %129 = arith.subf %120, %127 : vector<1x128xf32>
    %130 = arith.subf %121, %127 : vector<1x128xf32>
    %131 = arith.subf %122, %127 : vector<1x128xf32>
    %132 = arith.mulf %128, %128 : vector<1x128xf32>
    %133 = arith.mulf %129, %129 : vector<1x128xf32>
    %134 = arith.addf %132, %133 : vector<1x128xf32>
    %135 = arith.mulf %130, %130 : vector<1x128xf32>
    %136 = arith.addf %134, %135 : vector<1x128xf32>
    %137 = arith.mulf %131, %131 : vector<1x128xf32>
    %138 = arith.addf %136, %137 : vector<1x128xf32>
    %cst_65 = arith.constant 2.500000e-01 : f32
    %139 = vector.broadcast %cst_65 : f32 to vector<1x128xf32>
    %140 = arith.mulf %138, %139 : vector<1x128xf32>
    %cst_66 = arith.constant 9.99999974E-6 : f32
    %141 = vector.broadcast %cst_66 : f32 to vector<1x128xf32>
    %142 = arith.addf %140, %141 : vector<1x128xf32>
    %143 = math.rsqrt %142 : vector<1x128xf32>
    %144 = arith.mulf %128, %143 : vector<1x128xf32>
    %145 = arith.mulf %129, %143 : vector<1x128xf32>
    %146 = arith.mulf %130, %143 : vector<1x128xf32>
    %147 = arith.mulf %131, %143 : vector<1x128xf32>
    %148 = tpu.concatenate %144, %145, %146, %147 in 1 : vector<1x128xf32>, vector<1x128xf32>, vector<1x128xf32>, vector<1x128xf32> -> vector<1x512xf32>
    %cst_67 = arith.constant 0.000000e+00 : f32
    %149 = vector.broadcast %cst_67 : f32 to vector<1x512xf32>
    %150 = arith.cmpf ogt, %148, %149 : vector<1x512xf32>
    %cst_68 = arith.constant 2.000000e-01 : f32
    %151 = vector.broadcast %cst_68 : f32 to vector<1x512xf32>
    %152 = arith.mulf %151, %148 : vector<1x512xf32>
    %153 = arith.select %150, %148, %152 : vector<1x512xi1>, vector<1x512xf32>
    %154 = arith.truncf %153 : vector<1x512xf32> to vector<1x512xbf16>
    %c0_69 = arith.constant 0 : index
    %c0_70 = arith.constant 0 : index
    %155 = vector.load %arg8[%c0_69, %c0_70] : memref<512x512xbf16, #tpu.memory_space<vmem>>, vector<512x512xbf16>
    %cst_71 = arith.constant dense<0.000000e+00> : vector<1x512xf32>
    %156 = tpu.matmul %154, %155, %cst_71 {dimension_numbers = #tpu.dot_dimension_numbers<[1], [0], [0], [1], [0, 0, 1, 1], [], []>} : vector<1x512xbf16>, vector<512x512xbf16>, vector<1x512xf32> -> vector<1x512xf32>
    %157 = vector.extract_strided_slice %156 {offsets = [0, 0], sizes = [1, 128], strides = [1, 1]} : vector<1x512xf32> to vector<1x128xf32>
    %158 = vector.extract_strided_slice %156 {offsets = [0, 128], sizes = [1, 128], strides = [1, 1]} : vector<1x512xf32> to vector<1x128xf32>
    %159 = vector.extract_strided_slice %156 {offsets = [0, 256], sizes = [1, 128], strides = [1, 1]} : vector<1x512xf32> to vector<1x128xf32>
    %160 = vector.extract_strided_slice %156 {offsets = [0, 384], sizes = [1, 128], strides = [1, 1]} : vector<1x512xf32> to vector<1x128xf32>
    %161 = arith.addf %157, %158 : vector<1x128xf32>
    %162 = arith.addf %161, %159 : vector<1x128xf32>
    %163 = arith.addf %162, %160 : vector<1x128xf32>
    %cst_72 = arith.constant 2.500000e-01 : f32
    %164 = vector.broadcast %cst_72 : f32 to vector<1x128xf32>
    %165 = arith.mulf %163, %164 : vector<1x128xf32>
    %166 = arith.subf %157, %165 : vector<1x128xf32>
    %167 = arith.subf %158, %165 : vector<1x128xf32>
    %168 = arith.subf %159, %165 : vector<1x128xf32>
    %169 = arith.subf %160, %165 : vector<1x128xf32>
    %170 = arith.mulf %166, %166 : vector<1x128xf32>
    %171 = arith.mulf %167, %167 : vector<1x128xf32>
    %172 = arith.addf %170, %171 : vector<1x128xf32>
    %173 = arith.mulf %168, %168 : vector<1x128xf32>
    %174 = arith.addf %172, %173 : vector<1x128xf32>
    %175 = arith.mulf %169, %169 : vector<1x128xf32>
    %176 = arith.addf %174, %175 : vector<1x128xf32>
    %cst_73 = arith.constant 2.500000e-01 : f32
    %177 = vector.broadcast %cst_73 : f32 to vector<1x128xf32>
    %178 = arith.mulf %176, %177 : vector<1x128xf32>
    %cst_74 = arith.constant 9.99999974E-6 : f32
    %179 = vector.broadcast %cst_74 : f32 to vector<1x128xf32>
    %180 = arith.addf %178, %179 : vector<1x128xf32>
    %181 = math.rsqrt %180 : vector<1x128xf32>
    %182 = arith.mulf %166, %181 : vector<1x128xf32>
    %183 = arith.mulf %167, %181 : vector<1x128xf32>
    %184 = arith.mulf %168, %181 : vector<1x128xf32>
    %185 = arith.mulf %169, %181 : vector<1x128xf32>
    %186 = tpu.concatenate %182, %183, %184, %185 in 1 : vector<1x128xf32>, vector<1x128xf32>, vector<1x128xf32>, vector<1x128xf32> -> vector<1x512xf32>
    %cst_75 = arith.constant 0.000000e+00 : f32
    %187 = vector.broadcast %cst_75 : f32 to vector<1x512xf32>
    %188 = arith.cmpf ogt, %186, %187 : vector<1x512xf32>
    %cst_76 = arith.constant 2.000000e-01 : f32
    %189 = vector.broadcast %cst_76 : f32 to vector<1x512xf32>
    %190 = arith.mulf %189, %186 : vector<1x512xf32>
    %191 = arith.select %188, %186, %190 : vector<1x512xi1>, vector<1x512xf32>
    %c0_77 = arith.constant 0 : index
    %c0_78 = arith.constant 0 : index
    %c0_79 = arith.constant 0 : index
    %192 = vector.load %arg9[%c0_77, %c0_78, %c0_79] : memref<1x1x512xf32, #tpu.memory_space<vmem>>, vector<1x1x512xf32>
    %193 = vector.shape_cast %192 : vector<1x1x512xf32> to vector<1x512xf32>
    %194 = vector.shape_cast %191 : vector<1x512xf32> to vector<1x1x512xf32>
    tpu.vector_store %arg9[%c0_77, %c0_78, %c0_79], %194 {strides = array<i32>} : memref<1x1x512xf32, #tpu.memory_space<vmem>>, vector<1x1x512xf32>,
    return
  }
  func.func @transform_0(%arg0: i32) -> (i32, i32, i32) {
    %c0_i32 = arith.constant 0 : i32
    %c0_i32_0 = arith.constant 0 : i32
    %c0_i32_1 = arith.constant 0 : i32
    return %arg0, %c0_i32, %c0_i32_0 : i32, i32, i32
  }
  func.func @transform_1(%arg0: i32) -> (i32, i32, i32) {
    %c0_i32 = arith.constant 0 : i32
    %c0_i32_0 = arith.constant 0 : i32
    %c0_i32_1 = arith.constant 0 : i32
    %c0_i32_2 = arith.constant 0 : i32
    return %c0_i32, %c0_i32_0, %c0_i32_1 : i32, i32, i32
  }
  func.func @transform_2(%arg0: i32) -> (i32, i32, i32) {
    %c0_i32 = arith.constant 0 : i32
    %c0_i32_0 = arith.constant 0 : i32
    %c0_i32_1 = arith.constant 0 : i32
    %c0_i32_2 = arith.constant 0 : i32
    return %c0_i32, %c0_i32_0, %c0_i32_1 : i32, i32, i32
  }
  func.func @transform_3(%arg0: i32) -> (i32, i32, i32) {
    %c0_i32 = arith.constant 0 : i32
    %c0_i32_0 = arith.constant 0 : i32
    %c0_i32_1 = arith.constant 0 : i32
    %c0_i32_2 = arith.constant 0 : i32
    return %c0_i32, %c0_i32_0, %c0_i32_1 : i32, i32, i32
  }
  func.func @transform_4(%arg0: i32) -> (i32, i32, i32) {
    %c0_i32 = arith.constant 0 : i32
    %c0_i32_0 = arith.constant 0 : i32
    %c0_i32_1 = arith.constant 0 : i32
    %c0_i32_2 = arith.constant 0 : i32
    return %c0_i32, %c0_i32_0, %c0_i32_1 : i32, i32, i32
  }
  func.func @transform_5(%arg0: i32) -> (i32, i32) {
    %c0_i32 = arith.constant 0 : i32
    %c0_i32_0 = arith.constant 0 : i32
    %c0_i32_1 = arith.constant 0 : i32
    return %c0_i32, %c0_i32_0 : i32, i32
  }
  func.func @transform_6(%arg0: i32) -> (i32, i32) {
    %c0_i32 = arith.constant 0 : i32
    %c0_i32_0 = arith.constant 0 : i32
    %c0_i32_1 = arith.constant 0 : i32
    return %c0_i32, %c0_i32_0 : i32, i32
  }
  func.func @transform_7(%arg0: i32) -> (i32, i32) {
    %c0_i32 = arith.constant 0 : i32
    %c0_i32_0 = arith.constant 0 : i32
    %c0_i32_1 = arith.constant 0 : i32
    return %c0_i32, %c0_i32_0 : i32, i32
  }
  func.func @transform_8(%arg0: i32) -> (i32, i32, i32) {
    %c0_i32 = arith.constant 0 : i32
    %c0_i32_0 = arith.constant 0 : i32
    %c0_i32_1 = arith.constant 0 : i32
    return %arg0, %c0_i32, %c0_i32_0 : i32, i32, i32
  }
}

</mosaic_0001>

<bundles_post_ra>
// kernel: conv_encoder_forward.7
= control target key start
LH: loop header
LB: loop body
LE: loop exit
PB: predicated region body
PF: predicated region fallthrough
CT: control target
= control target key end

     0   :  { %s703_s9 = smov 0   ;;  %s777_s0 = inlined_call_operand.vmem [shape: bf16[4,27], index: 0, kind: input, shape index: {}]   ;;  %s778_s1 = inlined_call_operand.vmem [shape: bf16[2,27,1024], index: 1, kind: input, shape index: {}]   ;;  %s779_s2 = inlined_call_operand.vmem [shape: bf16[2,4,1024], index: 2, kind: output, shape index: {}]  }
   0x1 LB: > { %s627_s10 = sadd.s32 4294967295, %s683_s9   ;;  %p631_p0 = scmp.ge.s32.totalorder %s683_s9, 1  ;;  %s683_s9 = sphi %s703_s9, %s12_s9  }
   0x2   : > { %p112_p1 = scmp.lt.s32.totalorder %s683_s9, 3 }
   0x4   : > { %p113_p2 = pnand %p631_p0, %p112_p1 }
   0x5   : > { %p134_p3 = scmp.lt.s32.totalorder (!%p113_p2), %s627_s10, 1 }
   0x6   : > { %116 = sbr.rel (%p113_p2) target bundleno = 569 (0x239), region = 28 }
   0xb   : > { %vm238_vm0 = vcmask 1044480   ;;  %v685_v0 = vmov 0   ;;  %s781_s10 = smov (!%p134_p3, %s627_s10), 1  ;;  %vm239_vm1 = vcmask 1045504   ;;  %v686_v1 = vmov 65535  }
   0xc   : > { %298 = vmatprep.mubr.bf16.mxu0 %v685_v0  ;;  %339 = vmatprep.mubr.bf16.mxu1 %v685_v0  ;;  %v240_v2 = vsel %vm238_vm0, 4294967295, %v686_v1  ;;  %s662_s11 = sshll.u32 %s781_s10, 7  ;;  %v145_v38 = vld [vmem:[%s777_s0] sm:$0x3]  ;;  %vm234_vm2 = vcmask 220160   ;;  %vm430_vm3 = vcmask 1043456  }
   0xd   : > { %s719_s14 = scalar_lea.vmem %s778_s1, %s662_s11  ;;  %v241_v5 = vsel %vm239_vm1, %v240_v2, 0  ;;  %s663_s17 = sshll.u32 %s781_s10, 4 }
   0xe   : > { %v154_v3 = vld [vmem:[%s719_s14 + $0x40] sm:$0xff]  ;;  %v155_v6 = vld [vmem:[%s719_s14 + $0x48] sm:$0xff]  ;;  %v156_v16 = vld [vmem:[%s719_s14 + $0x50] sm:$0xff]  ;;  %s143_s20 = scalar_lea.vmem %s779_s2, %s663_s17 }
   0xf   : > { %v158_v4 = vld [vmem:[%s719_s14 + $0x60] sm:$0x33]  ;;  %v159_v8 = vld [vmem:[%s719_s14 + $0x68] sm:$0x33]  ;;  %v160_v20 = vld [vmem:[%s719_s14 + $0x70] sm:$0x33] }
  0x10   : > { %v645_v7 = vcombine.high %v154_v3, %v158_v4  ;;  %v644_v9 = vcombine.low %v154_v3, %v158_v4  ;;  %v146_v10 = vld [vmem:[%s719_s14] sm:$0xff]  ;;  %v647_v12 = vcombine.high %v155_v6, %v159_v8  ;;  %v646_v13 = vcombine.low %v155_v6, %v159_v8  ;;  %v147_v14 = vld [vmem:[%s719_s14 + $0x8] sm:$0xff]  ;;  %v157_v21 = vld [vmem:[%s719_s14 + $0x58] sm:$0xff] }
  0x11   : > { %v150_v11 = vld [vmem:[%s719_s14 + $0x20] sm:$0xff]  ;;  %v151_v15 = vld [vmem:[%s719_s14 + $0x28] sm:$0xff]  ;;  %v161_v22 = vld [vmem:[%s719_s14 + $0x78] sm:$0x33]  ;;  %v649_v26 = vcombine.high %v156_v16, %v160_v20  ;;  %v648_v29 = vcombine.low %v156_v16, %v160_v20 }
  0x12   : > { %v246_v17 = vand.u32 %v645_v7, %v241_v5  ;;  %v243_v18 = vand.u32 %v644_v9, %v241_v5  ;;  %v637_v19 = vcombine.high %v146_v10, %v150_v11  ;;  %v252_v23 = vand.u32 %v647_v12, %v241_v5  ;;  %v148_v34 = vld [vmem:[%s719_s14 + $0x10] sm:$0xff]  ;;  %v149_v36 = vld [vmem:[%s719_s14 + $0x18] sm:$0xff] }
  0x13   : > { %v249_v24 = vand.u32 %v646_v13, %v241_v5  ;;  %v639_v25 = vcombine.high %v147_v14, %v151_v15  ;;  %v651_v27 = vcombine.high %v157_v21, %v161_v22  ;;  %v636_v28 = vcombine.low %v146_v10, %v150_v11  ;;  %v152_v35 = vld [vmem:[%s719_s14 + $0x30] sm:$0xff]  ;;  %v153_v37 = vld [vmem:[%s719_s14 + $0x38] sm:$0xff] }
  0x14   : > { %278 = vmatprep.subr.bf16.mxu0 %v246_v17  ;;  %319 = vmatprep.subr.bf16.mxu1 %v252_v23  ;;  %v638_v30 = vcombine.low %v147_v14, %v151_v15  ;;  %v258_v31 = vand.u32 %v649_v26, %v241_v5  ;;  %v650_v32 = vcombine.low %v157_v21, %v161_v22 }
  0x15   : > { %279 = vmatpush1.bf16.msra.mxu0 %v243_v18  ;;  %320 = vmatpush1.bf16.msra.mxu1 %v249_v24  ;;  %v264_v33 = vand.u32 %v651_v27, %v241_v5  ;;  %v255_v39 = vand.u32 %v648_v29, %v241_v5  ;;  %v641_v41 = vcombine.high %v148_v34, %v152_v35 }
  0x16   : > { %280 = vmatprep.subr.bf16.mxu0 %v637_v19  ;;  %321 = vmatprep.subr.bf16.mxu1 %v639_v25  ;;  %v261_v40 = vand.u32 %v650_v32, %v241_v5  ;;  %v643_v42 = vcombine.high %v149_v36, %v153_v37  ;;  %v640_v43 = vcombine.low %v148_v34, %v152_v35 }
  0x17   : > { %v642_v44 = vcombine.low %v149_v36, %v153_v37 }
  0x19   : > { %281 = vmatpush1.bf16.msra.mxu0 %v636_v28  ;;  %322 = vmatpush1.bf16.msra.mxu1 %v638_v30 }
  0x1a   : > { %360 = vmatprep.subr.bf16.mxu0 %v258_v31  ;;  %401 = vmatprep.subr.bf16.mxu1 %v264_v33 }
  0x1c   : > { %652 = vmatmul.mubr.msk.bf16.vlgmr.msra.gmra.mxu0 %vm234_vm2, %v145_v38  ;;  %653 = vmatmul.mubr.msk.bf16.vlgmr.msra.gmra.mxu1 %vm234_vm2, %v145_v38 }
  0x1d   : > { %361 = vmatpush1.bf16.msra.mxu0 %v255_v39  ;;  %402 = vmatpush1.bf16.msra.mxu1 %v261_v40 }
  0x1e   : > { %362 = vmatprep.subr.bf16.mxu0 %v641_v41  ;;  %403 = vmatprep.subr.bf16.mxu1 %v643_v42 }
  0x1f   : > { %380 = vmatprep.mubr.bf16.mxu0 %v685_v0  ;;  %421 = vmatprep.mubr.bf16.mxu1 %v685_v0 }
  0x21   : > { %363 = vmatpush1.bf16.msra.mxu0 %v640_v43  ;;  %404 = vmatpush1.bf16.msra.mxu1 %v642_v44 }
  0x24   : > { %654 = vmatmul.mubr.msk.bf16.vlgmr.msra.gmra.mxu0 %vm234_vm2, %v145_v38  ;;  %655 = vmatmul.mubr.msk.bf16.vlgmr.msra.gmra.mxu1 %vm234_vm2, %v145_v38 }
  0xdc   : > { %v300_v45 = vpop.f32.mrf.mxu0  ;;  %v341_v46 = vpop.f32.mrf.mxu1 }
  0xdd   : > { %v431_v48 = vsel %vm430_vm3, %v300_v45, 0.0  ;;  %v434_v49 = vsel %vm430_vm3, %v341_v46, 0.0 }
  0xde   : > { %v302_v47 = vpop.f32.mrf.mxu0  ;;  %v343_v51 = vpop.f32.mrf.mxu1 }
  0xdf   : > { %v432_v50 = vsel %vm430_vm3, %v302_v47, 0.0  ;;  %v436_v57 = vsel %vm430_vm3, %v343_v51, 0.0 }
  0xe0   : > { %v433_v52 = vadd.f32 %v432_v50, %v431_v48  ;;  %v304_v53 = vpop.f32.mrf.mxu0  ;;  %v345_v54 = vpop.f32.mrf.mxu1  ;;  %v687_v48 = vmov 1983009808   ;;  %v539_v50 = vlaneseq }
  0xe2   : > { %v435_v55 = vadd.f32 %v434_v49, %v433_v52  ;;  %v305_v56 = vpop.f32.mrf.mxu0  ;;  %v346_v58 = vpop.f32.mrf.mxu1  ;;  %v537_v49 = vunpack.c.l.s4 %v687_v48  ;;  %v540_v53 = vshrl.u32 %v539_v50, 7 }
  0xe4   : > { %v437_v59 = vadd.f32 %v436_v57, %v435_v55  ;;  %v382_v60 = vpop.f32.mrf.mxu0  ;;  %v423_v62 = vpop.f32.mrf.mxu1  ;;  %v538_v52 = vunpack.c.0.s8 %v537_v49 }
  0xe5   : > { %v438_v61 = vsel %vm430_vm3, %v382_v60, 0.0  ;;  %v442_v1 = vsel %vm430_vm3, %v423_v62, 0.0 }
  0xe6   : > { %v439_v63 = vadd.f32 %v438_v61, %v437_v59  ;;  %v384_v0 = vpop.f32.mrf.mxu0  ;;  %v425_v3 = vpop.f32.mrf.mxu1 }
  0xe7   : > { %v440_v2 = vsel %vm430_vm3, %v384_v0, 0.0  ;;  %v444_v10 = vsel %vm430_vm3, %v425_v3, 0.0 }
  0xe8   : > { %v441_v4 = vadd.f32 %v440_v2, %v439_v63  ;;  %v386_v5 = vpop.f32.mrf.mxu0  ;;  %v427_v6 = vpop.f32.mrf.mxu1 }
  0xea   : > { %v387_v7 = vpop.f32.mrf.mxu0  ;;  %v443_v8 = vadd.f32 %v442_v1, %v441_v4  ;;  %v428_v9 = vpop.f32.mrf.mxu1  ;;  %v541_v1 = vsub.s32 %v538_v52, %v540_v53 }
  0xec   : > { %v445_v11 = vadd.f32 %v444_v10, %v443_v8 }
  0xee   : > { %446 = vadd.xlane.f32.xlu0 %v445_v11 }
 0x177   : > { %v447_v12 = vpop.xlane.xlu0 %446 }
 0x178   : > { %v449_v13 = vmul.f32 0.0009765625, %v447_v12 }
 0x17a   : > { %v450_v14 = vsub.f32 %v300_v45, %v449_v13  ;;  %v451_v15 = vsub.f32 %v302_v47, %v449_v13  ;;  %v452_v16 = vsub.f32 %v341_v46, %v449_v13  ;;  %v453_v17 = vsub.f32 %v343_v51, %v449_v13 }
 0x17b   : > { %v454_v18 = vsub.f32 %v382_v60, %v449_v13  ;;  %v455_v22 = vsub.f32 %v384_v0, %v449_v13  ;;  %v456_v27 = vsub.f32 %v423_v62, %v449_v13  ;;  %v457_v31 = vsub.f32 %v425_v3, %v449_v13 }
 0x17c   : > { %v458_v19 = vmul.f32 %v450_v14, %v450_v14  ;;  %v459_v20 = vmul.f32 %v451_v15, %v451_v15  ;;  %v460_v21 = vmul.f32 %v452_v16, %v452_v16  ;;  %v461_v23 = vmul.f32 %v453_v17, %v453_v17 }
 0x17d   : > { %v462_v28 = vmul.f32 %v454_v18, %v454_v18  ;;  %v463_v32 = vmul.f32 %v455_v22, %v455_v22  ;;  %v464_v35 = vmul.f32 %v456_v27, %v456_v27  ;;  %v465_v38 = vmul.f32 %v457_v31, %v457_v31 }
 0x17e   : > { %v466_v24 = vsel %vm430_vm3, %v458_v19, 0.0  ;;  %v467_v25 = vsel %vm430_vm3, %v459_v20, 0.0  ;;  %v469_v29 = vsel %vm430_vm3, %v460_v21, 0.0  ;;  %v471_v33 = vsel %vm430_vm3, %v461_v23, 0.0 }
 0x17f   : > { %v468_v26 = vadd.f32 %v467_v25, %v466_v24  ;;  %v473_v36 = vsel %vm430_vm3, %v462_v28, 0.0  ;;  %v475_v39 = vsel %vm430_vm3, %v463_v32, 0.0  ;;  %v477_v41 = vsel %vm430_vm3, %v464_v35, 0.0 }
 0x180   : > { %v479_v43 = vsel %vm430_vm3, %v465_v38, 0.0 }
 0x181   : > { %v470_v30 = vadd.f32 %v469_v29, %v468_v26 }
 0x183   : > { %v472_v34 = vadd.f32 %v471_v33, %v470_v30 }
 0x185   : > { %v474_v37 = vadd.f32 %v473_v36, %v472_v34 }
 0x187   : > { %v476_v40 = vadd.f32 %v475_v39, %v474_v37 }
 0x189   : > { %v478_v42 = vadd.f32 %v477_v41, %v476_v40 }
 0x18b   : > { %v480_v44 = vadd.f32 %v479_v43, %v478_v42 }
 0x18d   : > { %481 = vadd.xlane.f32.xlu0 %v480_v44 }
 0x216   : > { %v482_v45 = vpop.xlane.xlu0 %481 }
 0x217   : > { %v483_v46 = vmul.f32 0.0009765625, %v482_v45 }
 0x219   : > { %v484_v47 = vadd.f32 1e-05, %v483_v46 }
 0x21b   : > { %675 = vrsqrt.f32 %v484_v47 }
 0x228   : > { %v676_v51 = vpop.eup %675 }
 0x229   : > { %v486_v54 = vmul.f32 %v676_v51, %v450_v14  ;;  %v487_v55 = vmul.f32 %v676_v51, %v451_v15  ;;  %v488_v56 = vmul.f32 %v676_v51, %v452_v16  ;;  %v489_v57 = vmul.f32 %v676_v51, %v453_v17 }
 0x22a   : > { %v490_v58 = vmul.f32 %v676_v51, %v454_v18  ;;  %v491_v59 = vmul.f32 %v676_v51, %v455_v22  ;;  %v492_v60 = vmul.f32 %v676_v51, %v456_v27  ;;  %v493_v61 = vmul.f32 %v676_v51, %v457_v31 }
 0x22b   : > { %vm494_vm4 = vcmp.gt.f32.partialorder %v486_v54, 0.0  ;;  %vm495_vm5 = vcmp.gt.f32.partialorder %v487_v55, 0.0  ;;  %vm496_vm6 = vcmp.gt.f32.partialorder %v488_v56, 0.0  ;;  %vm497_vm7 = vcmp.gt.f32.partialorder %v489_v57, 0.0 }
 0x22c   : > { %vm498_vm8 = vcmp.gt.f32.partialorder %v490_v58, 0.0  ;;  %vm499_vm9 = vcmp.gt.f32.partialorder %v491_v59, 0.0  ;;  %vm500_vm10 = vcmp.gt.f32.partialorder %v492_v60, 0.0  ;;  %vm501_vm11 = vcmp.gt.f32.partialorder %v493_v61, 0.0 }
 0x22d   : > { %v502_v62 = vmul.f32 0.2, %v486_v54  ;;  %v503_v63 = vmul.f32 0.2, %v487_v55  ;;  %v504_v0 = vmul.f32 0.2, %v488_v56 }
 0x22e   : > { %v505_v2 = vmul.f32 0.2, %v489_v57  ;;  %v506_v3 = vmul.f32 0.2, %v490_v58  ;;  %v507_v4 = vmul.f32 0.2, %v491_v59 }
 0x22f   : > { %v508_v5 = vmul.f32 0.2, %v492_v60  ;;  %v509_v6 = vmul.f32 0.2, %v493_v61  ;;  %v510_v7 = vsel %vm494_vm4, %v486_v54, %v502_v62  ;;  %v511_v8 = vsel %vm495_vm5, %v487_v55, %v503_v63 }
 0x230   : > { %v512_v9 = vsel %vm496_vm6, %v488_v56, %v504_v0  ;;  %v513_v10 = vsel %vm497_vm7, %v489_v57, %v505_v2  ;;  %v514_v11 = vsel %vm498_vm8, %v490_v58, %v506_v3  ;;  %v515_v12 = vsel %vm499_vm9, %v491_v59, %v507_v4 }
 0x231   : > { %v516_v13 = vsel %vm500_vm10, %v492_v60, %v508_v5  ;;  %v517_v14 = vsel %vm501_vm11, %v493_v61, %v509_v6  ;;  %v656_v15 = vpack.c.bf16 %v511_v8, %v510_v7  ;;  %v657_v16 = vpack.c.bf16 %v513_v10, %v512_v9 }
 0x232   : > { %v658_v17 = vpack.c.bf16 %v515_v12, %v514_v11  ;;  %v659_v18 = vpack.c.bf16 %v517_v14, %v516_v13 }
 0x233   : > { %v542_v19 = vrot.slane %v656_v15, %v541_v1  ;;  %v549_v20 = vrot.slane %v657_v16, %v541_v1 }
 0x234   : > { %v559_v21 = vrot.slane %v658_v17, %v541_v1  ;;  %v566_v22 = vrot.slane %v659_v18, %v541_v1 }
 0x235   : > { %v550_v23 = vcombine.low %v542_v19, %v549_v20 }
 0x236   : > { %v567_v24 = vcombine.low %v559_v21, %v566_v22 }
 0x237   : > { %570 = vst [vmem:[%s143_s20] sm:$0xff] %v550_v23 }
 0x238   : > { %571 = vst [vmem:[%s143_s20 + $0x8] sm:$0xff] %v567_v24 }
 0x239 PF: > { %s12_s9 = sadd.s32 1, %s683_s9  }
 0x23a   : > { %p9_p4 = scmp.ge.s32.totalorder %s12_s9, 4  }
 0x23c   :  { %11 = sbr.rel (!%p9_p4) target bundleno = 1 (0x1), region = 58 }

// kernel: conv_encoder_forward.8
= control target key start
LH: loop header
LB: loop body
LE: loop exit
PB: predicated region body
PF: predicated region fallthrough
CT: control target
= control target key end

     0   :  { %s1293_s12 = smov 0   ;;  %s1452_s0 = inlined_call_operand.vmem [shape: bf16[4,196], index: 0, kind: input, shape index: {}]   ;;  %s1453_s1 = inlined_call_operand.vmem [shape: bf16[2,196,1024], index: 1, kind: input, shape index: {}]   ;;  %s1454_s2 = inlined_call_operand.vmem [shape: f32[4,1], index: 2, kind: input, shape index: {}]   ;;  %s1455_s3 = inlined_call_operand.vmem [shape: bf16[2,4,1024], index: 3, kind: output, shape index: {}]  }
   0x1 LB: > { %s1115_s13 = sadd.s32 4294967295, %s1269_s12   ;;  %p1119_p0 = scmp.ge.s32.totalorder %s1269_s12, 1  ;;  %s1269_s12 = sphi %s1293_s12, %s13_s12  }
   0x2   : > { %p137_p1 = scmp.lt.s32.totalorder %s1269_s12, 3 }
   0x4   : > { %p138_p2 = pnand %p1119_p0, %p137_p1 }
   0x5   : > { %p161_p3 = scmp.lt.s32.totalorder (!%p138_p2), %s1115_s13, 1 }
   0x6   : > { %141 = sbr.rel (%p138_p2) target bundleno = 331 (0x14b), region = 32 }
   0xb   : > { %v1304_v0 = vld.sshfl [vmem:[%s1452_s0] sm:$0x33 pattern:$0x76325410]  ;;  %vm789_vm0 = vcmask 556032   ;;  %s1457_s13 = smov (!%p161_p3, %s1115_s13), 1 }
   0xc   : > { %v1308_v1 = vcombine.high %v1304_v0, %v1304_v0  ;;  %v273_v2 = vld [vmem:[%s1454_s2] sm:$0xf]  ;;  %v1271_v3 = vmov 0   ;;  %s1243_s18 = smul.u32 800, %s1457_s13  ;;  %vm793_vm1 = vcmask 1041408   ;;  %s1242_s22 = sshll.u32 %s1457_s13, 4 }
   0xd   : > { %1254 = vset.pattern.permute.xlu0 %v1271_v3  ;;  %s1445_s25 = scalar_lea.vmem %s1455_s3, %s1242_s22 }
   0xe   : > { %1229 = vmatprep.mubr.msk.bf16.mxu0 %vm789_vm0, %v1308_v1  ;;  %1231 = vmatprep.mubr.msk.bf16.mxu1 %vm789_vm0, %v1308_v1  ;;  %s1323_s21 = scalar_lea.vmem %s1453_s1, %s1243_s18 }
   0xf   : > { %276 = vperm.xlu0 %1254, %v273_v2   ;;  %v229_v4 = vld [vmem:[%s1323_s21 + $0x1c0] sm:$0xff]  ;;  %v230_v6 = vld [vmem:[%s1323_s21 + $0x1c8] sm:$0xff] }
  0x10   : > { %v233_v5 = vld [vmem:[%s1323_s21 + $0x1e0] sm:$0xff]  ;;  %v234_v8 = vld [vmem:[%s1323_s21 + $0x1e8] sm:$0xff] }
  0x11   : > { %v1181_v7 = vcombine.high %v229_v4, %v233_v5  ;;  %v1180_v9 = vcombine.low %v229_v4, %v233_v5  ;;  %v221_v10 = vld [vmem:[%s1323_s21 + $0x180] sm:$0xff]  ;;  %v1183_v12 = vcombine.high %v230_v6, %v234_v8  ;;  %v1182_v13 = vcombine.low %v230_v6, %v234_v8  ;;  %v222_v15 = vld [vmem:[%s1323_s21 + $0x188] sm:$0xff] }
  0x12   : > { %v225_v11 = vld [vmem:[%s1323_s21 + $0x1a0] sm:$0xff]  ;;  %v226_v16 = vld [vmem:[%s1323_s21 + $0x1a8] sm:$0xff] }
  0x13   : > { %v1173_v14 = vcombine.high %v221_v10, %v225_v11  ;;  %v213_v17 = vld [vmem:[%s1323_s21 + $0x140] sm:$0xff]  ;;  %818 = vmatprep.subr.bf16.mxu0 %v1181_v7  ;;  %v1175_v18 = vcombine.high %v222_v15, %v226_v16  ;;  %v214_v20 = vld [vmem:[%s1323_s21 + $0x148] sm:$0xff]  ;;  %859 = vmatprep.subr.bf16.mxu1 %v1183_v12  ;;  %v1172_v22 = vcombine.low %v221_v10, %v225_v11 }
  0x14   : > { %v217_v19 = vld [vmem:[%s1323_s21 + $0x160] sm:$0xff]  ;;  %v218_v21 = vld [vmem:[%s1323_s21 + $0x168] sm:$0xff]  ;;  %819 = vmatpush1.bf16.msra.mxu0 %v1180_v9  ;;  %860 = vmatpush1.bf16.msra.mxu1 %v1182_v13  ;;  %v1174_v23 = vcombine.low %v222_v15, %v226_v16 }
  0x15   : > { %820 = vmatprep.subr.bf16.mxu0 %v1173_v14  ;;  %v1165_v24 = vcombine.high %v213_v17, %v217_v19  ;;  %861 = vmatprep.subr.bf16.mxu1 %v1175_v18  ;;  %v1167_v25 = vcombine.high %v214_v20, %v218_v21  ;;  %v205_v26 = vld [vmem:[%s1323_s21 + $0x100] sm:$0xff]  ;;  %v206_v28 = vld [vmem:[%s1323_s21 + $0x108] sm:$0xff]  ;;  %v1164_v30 = vcombine.low %v213_v17, %v217_v19 }
  0x16   : > { %v209_v27 = vld [vmem:[%s1323_s21 + $0x120] sm:$0xff]  ;;  %v210_v29 = vld [vmem:[%s1323_s21 + $0x128] sm:$0xff]  ;;  %v1166_v31 = vcombine.low %v214_v20, %v218_v21 }
  0x17   : > { %v1157_v32 = vcombine.high %v205_v26, %v209_v27  ;;  %v1159_v33 = vcombine.high %v206_v28, %v210_v29  ;;  %v197_v34 = vld [vmem:[%s1323_s21 + $0xc0] sm:$0xff]  ;;  %v198_v36 = vld [vmem:[%s1323_s21 + $0xc8] sm:$0xff]  ;;  %v1156_v38 = vcombine.low %v205_v26, %v209_v27  ;;  %v1158_v39 = vcombine.low %v206_v28, %v210_v29 }
  0x18   : > { %821 = vmatpush1.bf16.msra.mxu0 %v1172_v22  ;;  %862 = vmatpush1.bf16.msra.mxu1 %v1174_v23  ;;  %v201_v35 = vld [vmem:[%s1323_s21 + $0xe0] sm:$0xff]  ;;  %v202_v37 = vld [vmem:[%s1323_s21 + $0xe8] sm:$0xff] }
  0x19   : > { %822 = vmatprep.subr.bf16.mxu0 %v1165_v24  ;;  %863 = vmatprep.subr.bf16.mxu1 %v1167_v25  ;;  %v1149_v40 = vcombine.high %v197_v34, %v201_v35  ;;  %v1151_v41 = vcombine.high %v198_v36, %v202_v37  ;;  %v189_v42 = vld [vmem:[%s1323_s21 + $0x80] sm:$0xff]  ;;  %v190_v44 = vld [vmem:[%s1323_s21 + $0x88] sm:$0xff]  ;;  %v1148_v46 = vcombine.low %v197_v34, %v201_v35 }
  0x1a   : > { %v193_v43 = vld [vmem:[%s1323_s21 + $0xa0] sm:$0xff]  ;;  %v194_v45 = vld [vmem:[%s1323_s21 + $0xa8] sm:$0xff]  ;;  %v1150_v47 = vcombine.low %v198_v36, %v202_v37 }
  0x1b   : > { %v1141_v48 = vcombine.high %v189_v42, %v193_v43  ;;  %v1143_v49 = vcombine.high %v190_v44, %v194_v45  ;;  %v181_v50 = vld [vmem:[%s1323_s21 + $0x40] sm:$0xff]  ;;  %v182_v52 = vld [vmem:[%s1323_s21 + $0x48] sm:$0xff]  ;;  %v1140_v54 = vcombine.low %v189_v42, %v193_v43  ;;  %v1142_v55 = vcombine.low %v190_v44, %v194_v45  ;;  %v231_v44 = vld [vmem:[%s1323_s21 + $0x1d0] sm:$0xff] }
  0x1c   : > { %823 = vmatpush1.bf16.msra.mxu0 %v1164_v30  ;;  %864 = vmatpush1.bf16.msra.mxu1 %v1166_v31  ;;  %v185_v51 = vld [vmem:[%s1323_s21 + $0x60] sm:$0xff]  ;;  %v186_v53 = vld [vmem:[%s1323_s21 + $0x68] sm:$0xff]  ;;  %v235_v45 = vld [vmem:[%s1323_s21 + $0x1f0] sm:$0xff] }
  0x1d   : > { %824 = vmatprep.subr.bf16.mxu0 %v1157_v32  ;;  %865 = vmatprep.subr.bf16.mxu1 %v1159_v33  ;;  %v1133_v56 = vcombine.high %v181_v50, %v185_v51  ;;  %v1135_v57 = vcombine.high %v182_v52, %v186_v53  ;;  %v173_v58 = vld [vmem:[%s1323_s21] sm:$0xff]  ;;  %v174_v60 = vld [vmem:[%s1323_s21 + $0x8] sm:$0xff]  ;;  %v1132_v62 = vcombine.low %v181_v50, %v185_v51 }
  0x1e   : > { %v177_v59 = vld [vmem:[%s1323_s21 + $0x20] sm:$0xff]  ;;  %v178_v61 = vld [vmem:[%s1323_s21 + $0x28] sm:$0xff]  ;;  %v1134_v63 = vcombine.low %v182_v52, %v186_v53  ;;  %v1185_v50 = vcombine.high %v231_v44, %v235_v45  ;;  %v223_v52 = vld [vmem:[%s1323_s21 + $0x190] sm:$0xff] }
  0x1f   : > { %v1125_v2 = vcombine.high %v173_v58, %v177_v59  ;;  %v1127_v3 = vcombine.high %v174_v60, %v178_v61  ;;  %v269_v4 = vld [vmem:[%s1323_s21 + $0x300] sm:$0x33]  ;;  %v270_v5 = vld [vmem:[%s1323_s21 + $0x308] sm:$0x33]  ;;  %v1124_v6 = vcombine.low %v173_v58, %v177_v59  ;;  %v1126_v7 = vcombine.low %v174_v60, %v178_v61  ;;  %v227_v53 = vld [vmem:[%s1323_s21 + $0x1b0] sm:$0xff] }
  0x20   : > { %825 = vmatpush1.bf16.msra.mxu0 %v1156_v38  ;;  %866 = vmatpush1.bf16.msra.mxu1 %v1158_v39  ;;  %v1221_v8 = vcombine.high %v269_v4, %v269_v4  ;;  %v1220_v9 = vcombine.low %v269_v4, %v269_v4  ;;  %v1223_v10 = vcombine.high %v270_v5, %v270_v5  ;;  %v261_v12 = vld [vmem:[%s1323_s21 + $0x2c0] sm:$0xff]  ;;  %v262_v14 = vld [vmem:[%s1323_s21 + $0x2c8] sm:$0xff]  ;;  %v215_v60 = vld [vmem:[%s1323_s21 + $0x150] sm:$0xff] }
  0x21   : > { %826 = vmatprep.subr.bf16.mxu0 %v1149_v40  ;;  %867 = vmatprep.subr.bf16.mxu1 %v1151_v41  ;;  %v1222_v11 = vcombine.low %v270_v5, %v270_v5  ;;  %v265_v13 = vld [vmem:[%s1323_s21 + $0x2e0] sm:$0xff]  ;;  %v266_v15 = vld [vmem:[%s1323_s21 + $0x2e8] sm:$0xff]  ;;  %v1177_v58 = vcombine.high %v223_v52, %v227_v53  ;;  %v219_v61 = vld [vmem:[%s1323_s21 + $0x170] sm:$0xff] }
  0x22   : > { %v795_v16 = vsel %vm793_vm1, %v1220_v9, 0  ;;  %v1213_v17 = vcombine.high %v261_v12, %v265_v13  ;;  %v1215_v19 = vcombine.high %v262_v14, %v266_v15  ;;  %v253_v20 = vld [vmem:[%s1323_s21 + $0x280] sm:$0xff]  ;;  %v254_v22 = vld [vmem:[%s1323_s21 + $0x288] sm:$0xff]  ;;  %v1212_v24 = vcombine.low %v261_v12, %v265_v13  ;;  %v212_v9 = vld [vmem:[%s1323_s21 + $0x138] sm:$0xff] }
  0x23   : > { %v801_v18 = vsel %vm793_vm1, %v1222_v11, 0  ;;  %v257_v21 = vld [vmem:[%s1323_s21 + $0x2a0] sm:$0xff]  ;;  %v258_v23 = vld [vmem:[%s1323_s21 + $0x2a8] sm:$0xff]  ;;  %v1214_v25 = vcombine.low %v262_v14, %v266_v15  ;;  %v1169_v4 = vcombine.high %v215_v60, %v219_v61  ;;  %v199_v14 = vld [vmem:[%s1323_s21 + $0xd0] sm:$0xff] }
  0x24   : > { %827 = vmatpush1.bf16.msra.mxu0 %v1148_v46  ;;  %868 = vmatpush1.bf16.msra.mxu1 %v1150_v47  ;;  %v1205_v26 = vcombine.high %v253_v20, %v257_v21  ;;  %v1207_v27 = vcombine.high %v254_v22, %v258_v23  ;;  %v245_v28 = vld [vmem:[%s1323_s21 + $0x240] sm:$0xff]  ;;  %v246_v30 = vld [vmem:[%s1323_s21 + $0x248] sm:$0xff]  ;;  %v1204_v32 = vcombine.low %v253_v20, %v257_v21  ;;  %v232_v46 = vld [vmem:[%s1323_s21 + $0x1d8] sm:$0xff] }
  0x25   : > { %828 = vmatprep.subr.bf16.mxu0 %v1141_v48  ;;  %869 = vmatprep.subr.bf16.mxu1 %v1143_v49  ;;  %v249_v29 = vld [vmem:[%s1323_s21 + $0x260] sm:$0xff]  ;;  %v250_v31 = vld [vmem:[%s1323_s21 + $0x268] sm:$0xff]  ;;  %v1206_v33 = vcombine.low %v254_v22, %v258_v23  ;;  %v236_v47 = vld [vmem:[%s1323_s21 + $0x1f8] sm:$0xff] }
  0x26   : > { %v1197_v34 = vcombine.high %v245_v28, %v249_v29  ;;  %v1199_v35 = vcombine.high %v246_v30, %v250_v31  ;;  %v237_v36 = vld [vmem:[%s1323_s21 + $0x200] sm:$0xff]  ;;  %v238_v38 = vld [vmem:[%s1323_s21 + $0x208] sm:$0xff]  ;;  %v1196_v40 = vcombine.low %v245_v28, %v249_v29  ;;  %v1198_v41 = vcombine.low %v246_v30, %v250_v31  ;;  %v203_v15 = vld [vmem:[%s1323_s21 + $0xf0] sm:$0xff] }
  0x27   : > { %v241_v37 = vld [vmem:[%s1323_s21 + $0x220] sm:$0xff]  ;;  %v242_v39 = vld [vmem:[%s1323_s21 + $0x228] sm:$0xff]  ;;  %v1187_v51 = vcombine.high %v232_v46, %v236_v47  ;;  %v191_v21 = vld [vmem:[%s1323_s21 + $0x90] sm:$0xff] }
  0x28   : > { %829 = vmatpush1.bf16.msra.mxu0 %v1140_v54  ;;  %870 = vmatpush1.bf16.msra.mxu1 %v1142_v55  ;;  %v1189_v42 = vcombine.high %v237_v36, %v241_v37  ;;  %v1191_v43 = vcombine.high %v238_v38, %v242_v39  ;;  %v1188_v48 = vcombine.low %v237_v36, %v241_v37  ;;  %v224_v54 = vld [vmem:[%s1323_s21 + $0x198] sm:$0xff]  ;;  %v195_v22 = vld [vmem:[%s1323_s21 + $0xb0] sm:$0xff] }
  0x29   : > { %830 = vmatprep.subr.bf16.mxu0 %v1133_v56  ;;  %871 = vmatprep.subr.bf16.mxu1 %v1135_v57  ;;  %v1190_v49 = vcombine.low %v238_v38, %v242_v39  ;;  %v228_v55 = vld [vmem:[%s1323_s21 + $0x1b8] sm:$0xff]  ;;  %v1184_v56 = vcombine.low %v231_v44, %v235_v45  ;;  %v1186_v57 = vcombine.low %v232_v46, %v236_v47  ;;  %v183_v29 = vld [vmem:[%s1323_s21 + $0x50] sm:$0xff] }
  0x2a   : > { %v1179_v59 = vcombine.high %v224_v54, %v228_v55  ;;  %v192_v23 = vld [vmem:[%s1323_s21 + $0x98] sm:$0xff]  ;;  %v187_v30 = vld [vmem:[%s1323_s21 + $0x70] sm:$0xff] }
  0x2b   : > { %v184_v31 = vld [vmem:[%s1323_s21 + $0x58] sm:$0xff]  ;;  %v175_v37 = vld [vmem:[%s1323_s21 + $0x10] sm:$0xff] }
  0x2c   : > { %831 = vmatpush1.bf16.msra.mxu0 %v1132_v62  ;;  %872 = vmatpush1.bf16.msra.mxu1 %v1134_v63  ;;  %v216_v62 = vld [vmem:[%s1323_s21 + $0x158] sm:$0xff]  ;;  %v179_v38 = vld [vmem:[%s1323_s21 + $0x30] sm:$0xff] }
  0x2d   : > { %832 = vmatprep.subr.bf16.mxu0 %v1125_v2  ;;  %873 = vmatprep.subr.bf16.mxu1 %v1127_v3  ;;  %v220_v63 = vld [vmem:[%s1323_s21 + $0x178] sm:$0xff]  ;;  %v1176_v2 = vcombine.low %v223_v52, %v227_v53  ;;  %v1178_v3 = vcombine.low %v224_v54, %v228_v55  ;;  %v271_v45 = vld [vmem:[%s1323_s21 + $0x310] sm:$0x33]  ;;  %v1128_v47 = vcombine.low %v175_v37, %v179_v38 }
  0x2e   : > { %v1171_v5 = vcombine.high %v216_v62, %v220_v63  ;;  %v1170_v11 = vcombine.low %v216_v62, %v220_v63  ;;  %v176_v39 = vld [vmem:[%s1323_s21 + $0x18] sm:$0xff]  ;;  %v263_v53 = vld [vmem:[%s1323_s21 + $0x2d0] sm:$0xff] }
  0x2f   : > { %v272_v46 = vld [vmem:[%s1323_s21 + $0x318] sm:$0x33]  ;;  %v267_v54 = vld [vmem:[%s1323_s21 + $0x2f0] sm:$0xff] }
  0x30   : > { %833 = vmatpush1.bf16.msra.mxu0 %v1124_v6  ;;  %874 = vmatpush1.bf16.msra.mxu1 %v1126_v7  ;;  %v207_v6 = vld [vmem:[%s1323_s21 + $0x110] sm:$0xff]  ;;  %v1226_v52 = vcombine.low %v272_v46, %v272_v46  ;;  %v264_v55 = vld [vmem:[%s1323_s21 + $0x2d8] sm:$0xff] }
  0x31   : > { %1228 = vmatprep.subr.msk.bf16.mxu0 %vm793_vm1, %v1221_v8  ;;  %1230 = vmatprep.subr.msk.bf16.mxu1 %vm793_vm1, %v1223_v10  ;;  %v211_v7 = vld [vmem:[%s1323_s21 + $0x130] sm:$0xff]  ;;  %v208_v8 = vld [vmem:[%s1323_s21 + $0x118] sm:$0xff]  ;;  %v1168_v10 = vcombine.low %v215_v60, %v219_v61 }
  0x32   : > { %v1161_v12 = vcombine.high %v207_v6, %v211_v7  ;;  %v1163_v13 = vcombine.high %v208_v8, %v212_v9  ;;  %v255_v61 = vld [vmem:[%s1323_s21 + $0x290] sm:$0xff]  ;;  %v256_v63 = vld [vmem:[%s1323_s21 + $0x298] sm:$0xff] }
  0x33   : > { %v259_v62 = vld [vmem:[%s1323_s21 + $0x2b0] sm:$0xff] }
  0x34   : > { %841 = vmatpush2.bf16.msra.mxu0 %v795_v16  ;;  %882 = vmatpush2.bf16.msra.mxu1 %v801_v18  ;;  %v200_v16 = vld [vmem:[%s1323_s21 + $0xd8] sm:$0xff]  ;;  %v1160_v18 = vcombine.low %v207_v6, %v211_v7  ;;  %v247_v7 = vld [vmem:[%s1323_s21 + $0x250] sm:$0xff] }
  0x35   : > { %842 = vmatprep.subr.bf16.mxu0 %v1213_v17  ;;  %883 = vmatprep.subr.bf16.mxu1 %v1215_v19  ;;  %v204_v17 = vld [vmem:[%s1323_s21 + $0xf8] sm:$0xff]  ;;  %v1153_v19 = vcombine.high %v199_v14, %v203_v15 }
  0x36   : > { %v1155_v20 = vcombine.high %v200_v16, %v204_v17 }
  0x38   : > { %843 = vmatpush2.bf16.msra.mxu0 %v1212_v24  ;;  %884 = vmatpush2.bf16.msra.mxu1 %v1214_v25  ;;  %v196_v24 = vld [vmem:[%s1323_s21 + $0xb8] sm:$0xff]  ;;  %v1152_v25 = vcombine.low %v199_v14, %v203_v15  ;;  %v239_v15 = vld [vmem:[%s1323_s21 + $0x210] sm:$0xff] }
  0x39   : > { %844 = vmatprep.subr.bf16.mxu0 %v1205_v26  ;;  %885 = vmatprep.subr.bf16.mxu1 %v1207_v27  ;;  %v1154_v26 = vcombine.low %v200_v16, %v204_v17  ;;  %v1145_v27 = vcombine.high %v191_v21, %v195_v22  ;;  %v1147_v28 = vcombine.high %v192_v23, %v196_v24  ;;  %v243_v16 = vld [vmem:[%s1323_s21 + $0x230] sm:$0xff]  ;;  %v240_v17 = vld [vmem:[%s1323_s21 + $0x218] sm:$0xff] }
  0x3c   : > { %845 = vmatpush2.bf16.msra.mxu0 %v1204_v32  ;;  %886 = vmatpush2.bf16.msra.mxu1 %v1206_v33  ;;  %v188_v32 = vld [vmem:[%s1323_s21 + $0x78] sm:$0xff]  ;;  %v1144_v33 = vcombine.low %v191_v21, %v195_v22  ;;  %v1192_v22 = vcombine.low %v239_v15, %v243_v16 }
  0x3d   : > { %846 = vmatprep.subr.bf16.mxu0 %v1197_v34  ;;  %887 = vmatprep.subr.bf16.mxu1 %v1199_v35  ;;  %v1146_v34 = vcombine.low %v192_v23, %v196_v24  ;;  %v1137_v35 = vcombine.high %v183_v29, %v187_v30  ;;  %v1139_v36 = vcombine.high %v184_v31, %v188_v32 }
  0x40   : > { %847 = vmatpush2.bf16.msra.mxu0 %v1196_v40  ;;  %888 = vmatpush2.bf16.msra.mxu1 %v1198_v41  ;;  %v180_v40 = vld [vmem:[%s1323_s21 + $0x38] sm:$0xff]  ;;  %v1136_v41 = vcombine.low %v183_v29, %v187_v30 }
  0x41   : > { %848 = vmatprep.subr.bf16.mxu0 %v1189_v42  ;;  %889 = vmatprep.subr.bf16.mxu1 %v1191_v43  ;;  %v1138_v42 = vcombine.low %v184_v31, %v188_v32  ;;  %v1129_v43 = vcombine.high %v175_v37, %v179_v38  ;;  %v1131_v44 = vcombine.high %v176_v39, %v180_v40 }
  0x44   : > { %849 = vmatpush2.bf16.msra.mxu0 %v1188_v48  ;;  %890 = vmatpush2.bf16.msra.mxu1 %v1190_v49  ;;  %v1130_v48 = vcombine.low %v176_v39, %v180_v40  ;;  %v1225_v49 = vcombine.high %v271_v45, %v271_v45 }
  0x45   : > { %900 = vmatprep.subr.bf16.mxu0 %v1185_v50  ;;  %941 = vmatprep.subr.bf16.mxu1 %v1187_v51  ;;  %v1224_v50 = vcombine.low %v271_v45, %v271_v45  ;;  %v1227_v51 = vcombine.high %v272_v46, %v272_v46 }
  0x47   : > { %851 = vmatmul.mubr.bf16.vlgmr.msra.gmra.mxu0 %v1304_v0  ;;  %892 = vmatmul.mubr.bf16.vlgmr.msra.gmra.mxu1 %v1304_v0 }
  0x48   : > { %901 = vmatpush1.bf16.msra.mxu0 %v1184_v56  ;;  %942 = vmatpush1.bf16.msra.mxu1 %v1186_v57  ;;  %v268_v56 = vld [vmem:[%s1323_s21 + $0x2f8] sm:$0xff]  ;;  %v807_v57 = vsel %vm793_vm1, %v1224_v50, 0 }
  0x49   : > { %902 = vmatprep.subr.bf16.mxu0 %v1177_v58  ;;  %943 = vmatprep.subr.bf16.mxu1 %v1179_v59  ;;  %v1217_v58 = vcombine.high %v263_v53, %v267_v54  ;;  %v813_v59 = vsel %vm793_vm1, %v1226_v52, 0  ;;  %v1219_v60 = vcombine.high %v264_v55, %v268_v56 }
  0x4a   : > { %1233 = vmatprep.mubr.msk.bf16.mxu0 %vm789_vm0, %v1308_v1  ;;  %1235 = vmatprep.mubr.msk.bf16.mxu1 %vm789_vm0, %v1308_v1  ;;  %v1162_v1 = vcombine.low %v208_v8, %v212_v9  ;;  %v251_v8 = vld [vmem:[%s1323_s21 + $0x270] sm:$0xff]  ;;  %v248_v9 = vld [vmem:[%s1323_s21 + $0x258] sm:$0xff] }
  0x4c   : > { %903 = vmatpush1.bf16.msra.mxu0 %v1176_v2  ;;  %944 = vmatpush1.bf16.msra.mxu1 %v1178_v3  ;;  %v260_v2 = vld [vmem:[%s1323_s21 + $0x2b8] sm:$0xff]  ;;  %v1216_v3 = vcombine.low %v263_v53, %v267_v54 }
  0x4d   : > { %904 = vmatprep.subr.bf16.mxu0 %v1169_v4  ;;  %945 = vmatprep.subr.bf16.mxu1 %v1171_v5  ;;  %v1218_v4 = vcombine.low %v264_v55, %v268_v56  ;;  %v1209_v5 = vcombine.high %v255_v61, %v259_v62  ;;  %v1211_v6 = vcombine.high %v256_v63, %v260_v2 }
  0x50   : > { %905 = vmatpush1.bf16.msra.mxu0 %v1168_v10  ;;  %946 = vmatpush1.bf16.msra.mxu1 %v1170_v11  ;;  %v252_v10 = vld [vmem:[%s1323_s21 + $0x278] sm:$0xff]  ;;  %v1208_v11 = vcombine.low %v255_v61, %v259_v62 }
  0x51   : > { %906 = vmatprep.subr.bf16.mxu0 %v1161_v12  ;;  %947 = vmatprep.subr.bf16.mxu1 %v1163_v13  ;;  %v1210_v12 = vcombine.low %v256_v63, %v260_v2  ;;  %v1201_v13 = vcombine.high %v247_v7, %v251_v8  ;;  %v1203_v14 = vcombine.high %v248_v9, %v252_v10 }
  0x54   : > { %907 = vmatpush1.bf16.msra.mxu0 %v1160_v18  ;;  %948 = vmatpush1.bf16.msra.mxu1 %v1162_v1  ;;  %v244_v18 = vld [vmem:[%s1323_s21 + $0x238] sm:$0xff]  ;;  %v1200_v1 = vcombine.low %v247_v7, %v251_v8 }
  0x55   : > { %908 = vmatprep.subr.bf16.mxu0 %v1153_v19  ;;  %949 = vmatprep.subr.bf16.mxu1 %v1155_v20  ;;  %v1202_v19 = vcombine.low %v248_v9, %v252_v10  ;;  %v1193_v20 = vcombine.high %v239_v15, %v243_v16  ;;  %v1195_v21 = vcombine.high %v240_v17, %v244_v18 }
  0x56   : > { %v1194_v23 = vcombine.low %v240_v17, %v244_v18 }
  0x58   : > { %909 = vmatpush1.bf16.msra.mxu0 %v1152_v25  ;;  %950 = vmatpush1.bf16.msra.mxu1 %v1154_v26  ;;  %v1272_v25 = vmov 1983009808  }
  0x59   : > { %910 = vmatprep.subr.bf16.mxu0 %v1145_v27  ;;  %951 = vmatprep.subr.bf16.mxu1 %v1147_v28  ;;  %v1025_v26 = vunpack.c.l.s4 %v1272_v25  ;;  %v1027_v27 = vlaneseq }
  0x5c   : > { %911 = vmatpush1.bf16.msra.mxu0 %v1144_v33  ;;  %952 = vmatpush1.bf16.msra.mxu1 %v1146_v34  ;;  %v1026_v33 = vunpack.c.0.s8 %v1025_v26  ;;  %v1028_v34 = vshrl.u32 %v1027_v27, 7 }
  0x5d   : > { %912 = vmatprep.subr.bf16.mxu0 %v1137_v35  ;;  %953 = vmatprep.subr.bf16.mxu1 %v1139_v36 }
  0x60   : > { %913 = vmatpush1.bf16.msra.mxu0 %v1136_v41  ;;  %954 = vmatpush1.bf16.msra.mxu1 %v1138_v42  ;;  %v1029_v42 = vsub.s32 %v1026_v33, %v1028_v34 }
  0x61   : > { %914 = vmatprep.subr.bf16.mxu0 %v1129_v43  ;;  %955 = vmatprep.subr.bf16.mxu1 %v1131_v44 }
  0x64   : > { %915 = vmatpush1.bf16.msra.mxu0 %v1128_v47  ;;  %956 = vmatpush1.bf16.msra.mxu1 %v1130_v48 }
  0x65   : > { %1232 = vmatprep.subr.msk.bf16.mxu0 %vm793_vm1, %v1225_v49  ;;  %1234 = vmatprep.subr.msk.bf16.mxu1 %vm793_vm1, %v1227_v51 }
  0x68   : > { %923 = vmatpush2.bf16.msra.mxu0 %v807_v57  ;;  %964 = vmatpush2.bf16.msra.mxu1 %v813_v59 }
  0x69   : > { %924 = vmatprep.subr.bf16.mxu0 %v1217_v58  ;;  %965 = vmatprep.subr.bf16.mxu1 %v1219_v60 }
  0x6c   : > { %925 = vmatpush2.bf16.msra.mxu0 %v1216_v3  ;;  %966 = vmatpush2.bf16.msra.mxu1 %v1218_v4 }
  0x6d   : > { %926 = vmatprep.subr.bf16.mxu0 %v1209_v5  ;;  %967 = vmatprep.subr.bf16.mxu1 %v1211_v6 }
  0x70   : > { %927 = vmatpush2.bf16.msra.mxu0 %v1208_v11  ;;  %968 = vmatpush2.bf16.msra.mxu1 %v1210_v12 }
  0x71   : > { %928 = vmatprep.subr.bf16.mxu0 %v1201_v13  ;;  %969 = vmatprep.subr.bf16.mxu1 %v1203_v14 }
  0x74   : > { %929 = vmatpush2.bf16.msra.mxu0 %v1200_v1  ;;  %970 = vmatpush2.bf16.msra.mxu1 %v1202_v19 }
  0x75   : > { %930 = vmatprep.subr.bf16.mxu0 %v1193_v20  ;;  %971 = vmatprep.subr.bf16.mxu1 %v1195_v21 }
  0x78   : > { %931 = vmatpush2.bf16.msra.mxu0 %v1192_v22  ;;  %972 = vmatpush2.bf16.msra.mxu1 %v1194_v23 }
  0x7b   : > { %933 = vmatmul.mubr.bf16.vlgmr.msra.gmra.mxu0 %v1304_v0  ;;  %974 = vmatmul.mubr.bf16.vlgmr.msra.gmra.mxu1 %v1304_v0 }
  0x8a   : > { %v277_v24 = vpop.permute.xlu0 %276 }
 0x107   : > { %v852_v28 = vpop.f32.mrf.mxu0  ;;  %v893_v30 = vpop.f32.mrf.mxu1 }
 0x108   : > { %v853_v29 = vadd.f32 %v852_v28, %v277_v24  ;;  %v894_v31 = vadd.f32 %v893_v30, %v277_v24 }
 0x109   : > { %v854_v32 = vpop.f32.mrf.mxu0  ;;  %v895_v37 = vpop.f32.mrf.mxu1 }
 0x10a   : > { %v990_v35 = vmul.f32 0.2, %v853_v29  ;;  %v855_v36 = vadd.f32 %v854_v32, %v277_v24  ;;  %vm982_vm2 = vcmp.gt.f32.partialorder %v853_v29, 0.0  ;;  %v992_v38 = vmul.f32 0.2, %v894_v31 }
 0x10b   : > { %v896_v39 = vadd.f32 %v895_v37, %v277_v24  ;;  %v856_v40 = vpop.f32.mrf.mxu0  ;;  %vm984_vm3 = vcmp.gt.f32.partialorder %v894_v31, 0.0  ;;  %v897_v41 = vpop.f32.mrf.mxu1 }
 0x10c   : > { %vm983_vm4 = vcmp.gt.f32.partialorder %v855_v36, 0.0  ;;  %v991_v0 = vmul.f32 0.2, %v855_v36  ;;  %v998_v45 = vsel %vm982_vm2, %v853_v29, %v990_v35  ;;  %v1000_v48 = vsel %vm984_vm3, %v894_v31, %v992_v38 }
 0x10d   : > { %vm985_vm5 = vcmp.gt.f32.partialorder %v896_v39, 0.0  ;;  %v993_v43 = vmul.f32 0.2, %v896_v39  ;;  %v857_v44 = vpop.f32.mrf.mxu0  ;;  %v898_v47 = vpop.f32.mrf.mxu1 }
 0x10e   : > { %v999_v46 = vsel %vm983_vm4, %v855_v36, %v991_v0 }
 0x10f   : > { %v1236_v49 = vpack.c.bf16 %v999_v46, %v998_v45  ;;  %v1001_v50 = vsel %vm985_vm5, %v896_v39, %v993_v43 }
 0x110   : > { %v1237_v51 = vpack.c.bf16 %v1001_v50, %v1000_v48 }
 0x111   : > { %v1030_v52 = vrot.slane %v1236_v49, %v1029_v42 }
 0x112   : > { %v1037_v53 = vrot.slane %v1237_v51, %v1029_v42 }
 0x114   : > { %v1038_v54 = vcombine.low %v1030_v52, %v1037_v53 }
 0x116   : > { %1058 = vst [vmem:[%s1445_s25] sm:$0xff] %v1038_v54 }
 0x13b   : > { %v934_v55 = vpop.f32.mrf.mxu0  ;;  %v975_v57 = vpop.f32.mrf.mxu1 }
 0x13c   : > { %v935_v56 = vadd.f32 %v934_v55, %v277_v24  ;;  %v976_v58 = vadd.f32 %v975_v57, %v277_v24 }
 0x13d   : > { %v936_v59 = vpop.f32.mrf.mxu0  ;;  %v977_v62 = vpop.f32.mrf.mxu1 }
 0x13e   : > { %v994_v60 = vmul.f32 0.2, %v935_v56  ;;  %v937_v61 = vadd.f32 %v936_v59, %v277_v24  ;;  %vm986_vm6 = vcmp.gt.f32.partialorder %v935_v56, 0.0  ;;  %v996_v63 = vmul.f32 0.2, %v976_v58 }
 0x13f   : > { %v978_v2 = vadd.f32 %v977_v62, %v277_v24  ;;  %v938_v3 = vpop.f32.mrf.mxu0  ;;  %vm988_vm7 = vcmp.gt.f32.partialorder %v976_v58, 0.0  ;;  %v979_v5 = vpop.f32.mrf.mxu1 }
 0x140   : > { %vm987_vm8 = vcmp.gt.f32.partialorder %v937_v61, 0.0  ;;  %v995_v4 = vmul.f32 0.2, %v937_v61  ;;  %v1002_v8 = vsel %vm986_vm6, %v935_v56, %v994_v60  ;;  %v1004_v11 = vsel %vm988_vm7, %v976_v58, %v996_v63 }
 0x141   : > { %vm989_vm9 = vcmp.gt.f32.partialorder %v978_v2, 0.0  ;;  %v997_v6 = vmul.f32 0.2, %v978_v2  ;;  %v939_v7 = vpop.f32.mrf.mxu0  ;;  %v980_v10 = vpop.f32.mrf.mxu1 }
 0x142   : > { %v1003_v9 = vsel %vm987_vm8, %v937_v61, %v995_v4 }
 0x143   : > { %v1238_v12 = vpack.c.bf16 %v1003_v9, %v1002_v8  ;;  %v1005_v13 = vsel %vm989_vm9, %v978_v2, %v997_v6 }
 0x144   : > { %v1239_v14 = vpack.c.bf16 %v1005_v13, %v1004_v11 }
 0x145   : > { %v1047_v15 = vrot.slane %v1238_v12, %v1029_v42 }
 0x146   : > { %v1054_v16 = vrot.slane %v1239_v14, %v1029_v42 }
 0x148   : > { %v1055_v17 = vcombine.low %v1047_v15, %v1054_v16 }
 0x14a   : > { %1059 = vst [vmem:[%s1445_s25 + $0x8] sm:$0xff] %v1055_v17 }
 0x14b PF: > { %s13_s12 = sadd.s32 1, %s1269_s12  }
 0x14c   : > { %p10_p4 = scmp.ge.s32.totalorder %s13_s12, 4  }
 0x14e   :  { %12 = sbr.rel (!%p10_p4) target bundleno = 1 (0x1), region = 62 }

// kernel: conv_encoder_forward.9
= control target key start
LH: loop header
LB: loop body
LE: loop exit
PB: predicated region body
PF: predicated region fallthrough
CT: control target
= control target key end

     0   :  { %s380_s9 = smov 0   ;;  %s404_s0 = inlined_call_operand.vmem [shape: bf16[8,36], index: 0, kind: input, shape index: {}]   ;;  %s405_s1 = inlined_call_operand.vmem [shape: bf16[2,36,256], index: 1, kind: input, shape index: {}]   ;;  %s406_s2 = inlined_call_operand.vmem [shape: bf16[2,8,256], index: 2, kind: output, shape index: {}]  }
   0x1 LB: > { %s315_s10 = sadd.s32 4294967295, %s362_s9   ;;  %p319_p0 = scmp.ge.s32.totalorder %s362_s9, 1  ;;  %s362_s9 = sphi %s380_s9, %s12_s9  }
   0x2   : > { %p112_p1 = scmp.lt.s32.totalorder %s362_s9, 3 }
   0x4   : > { %p113_p2 = pnand %p319_p0, %p112_p1 }
   0x5   : > { %p134_p3 = scmp.lt.s32.totalorder (!%p113_p2), %s315_s10, 1 }
   0x6   : > { %116 = sbr.rel (%p113_p2) target bundleno = 537 (0x219), region = 28 }
   0xb   : > { %v364_v0 = vmov 0   ;;  %s408_s10 = smov (!%p134_p3, %s315_s10), 1  ;;  %vm180_vm0 = vcmask 1041408   ;;  %v145_v9 = vld [vmem:[%s404_s0] sm:$0xf]  ;;  %vm176_vm1 = vcmask 293888  }
   0xc   : > { %219 = vmatprep.mubr.bf16.mxu0 %v364_v0  ;;  %s336_s11 = smul.u32 40, %s408_s10  ;;  %s334_s17 = sshll.u32 %s408_s10, 3 }
   0xd   : > { %s143_s20 = scalar_lea.vmem %s406_s2, %s334_s17 }
   0xe   : > { %s138_s14 = scalar_lea.vmem %s405_s1, %s336_s11 }
   0xf   : > { %v150_v1 = vld [vmem:[%s138_s14 + $0x20] sm:$0x33]  ;;  %v348_v4 = vld [vmem:[%s138_s14 + $0x14] ss:$8 sps:$4 sm:$0xff]   ;;  %v350_v6 = vld [vmem:[%s138_s14 + $0x10] ss:$8 sps:$4 sm:$0xff]  }
  0x10   : > { %v328_v2 = vcombine.high %v150_v1, %v150_v1  ;;  %v327_v3 = vcombine.low %v150_v1, %v150_v1  ;;  %v351_v7 = vld [vmem:[%s138_s14 + $0x4] ss:$8 sps:$4 sm:$0xff]   ;;  %v353_v8 = vld [vmem:[%s138_s14] ss:$8 sps:$4 sm:$0xff]  }
  0x12   : > { %329 = vmatprep.subr.msk.bf16.mxu0 %vm180_vm0, %v328_v2  ;;  %v182_v5 = vsel %vm180_vm0, %v327_v3, 0 }
  0x13   : > { %198 = vmatpush1.bf16.msra.mxu0 %v182_v5 }
  0x14   : > { %199 = vmatprep.subr.bf16.mxu0 %v348_v4 }
  0x17   : > { %200 = vmatpush1.bf16.msra.mxu0 %v350_v6 }
  0x18   : > { %201 = vmatprep.subr.bf16.mxu0 %v351_v7 }
  0x1b   : > { %202 = vmatpush1.bf16.msra.mxu0 %v353_v8 }
  0x1e   : > { %330 = vmatmul.mubr.msk.bf16.vlgmr.msra.gmra.mxu0 %vm176_vm1, %v145_v9 }
  0xde   : > { %v221_v10 = vpop.f32.mrf.mxu0 }
  0xe0   : > { %v223_v11 = vpop.f32.mrf.mxu0 }
  0xe1   : > { %v228_v12 = vadd.f32 %v223_v11, %v221_v10 }
  0xe2   : > { %v225_v13 = vpop.f32.mrf.mxu0 }
  0xe3   : > { %229 = vadd.xlane.f32.xlu0 %v228_v12 }
  0xe4   : > { %v226_v14 = vpop.f32.mrf.mxu0 }
 0x16c   : > { %v230_v15 = vpop.xlane.xlu0 %229 }
 0x16d   : > { %v232_v16 = vmul.f32 0.00390625, %v230_v15 }
 0x16f   : > { %v233_v17 = vsub.f32 %v221_v10, %v232_v16  ;;  %v234_v18 = vsub.f32 %v223_v11, %v232_v16 }
 0x171   : > { %v235_v19 = vmul.f32 %v233_v17, %v233_v17  ;;  %v236_v20 = vmul.f32 %v234_v18, %v234_v18 }
 0x173   : > { %v237_v21 = vadd.f32 %v236_v20, %v235_v19 }
 0x175   : > { %238 = vadd.xlane.f32.xlu0 %v237_v21 }
 0x1fe   : > { %v239_v22 = vpop.xlane.xlu0 %238 }
 0x1ff   : > { %v240_v23 = vmul.f32 0.00390625, %v239_v22 }
 0x201   : > { %v241_v24 = vadd.f32 1e-05, %v240_v23 }
 0x203   : > { %354 = vrsqrt.f32 %v241_v24 }
 0x210   : > { %v355_v25 = vpop.eup %354 }
 0x211   : > { %v243_v26 = vmul.f32 %v355_v25, %v233_v17  ;;  %v244_v27 = vmul.f32 %v355_v25, %v234_v18 }
 0x213   : > { %vm245_vm2 = vcmp.gt.f32.partialorder %v243_v26, 0.0  ;;  %vm246_vm3 = vcmp.gt.f32.partialorder %v244_v27, 0.0  ;;  %v247_v28 = vmul.f32 0.2, %v243_v26  ;;  %v248_v29 = vmul.f32 0.2, %v244_v27 }
 0x215   : > { %v249_v30 = vsel %vm245_vm2, %v243_v26, %v247_v28  ;;  %v250_v31 = vsel %vm246_vm3, %v244_v27, %v248_v29 }
 0x216   : > { %v335_v32 = vpack.c.bf16 %v250_v31, %v249_v30 }
 0x218   : > { %259 = vst [vmem:[%s143_s20] sm:$0xff] %v335_v32 }
 0x219 PF: > { %s12_s9 = sadd.s32 1, %s362_s9  }
 0x21a   : > { %p9_p4 = scmp.ge.s32.totalorder %s12_s9, 4  }
 0x21c   :  { %11 = sbr.rel (!%p9_p4) target bundleno = 1 (0x1), region = 58 }

// kernel: conv_encoder_forward.10
= control target key start
LH: loop header
LB: loop body
LE: loop exit
PB: predicated region body
PF: predicated region fallthrough
CT: control target
= control target key end

     0   :  { %s425_s9 = smov 0   ;;  %s453_s0 = inlined_call_operand.vmem [shape: bf16[16,72], index: 0, kind: input, shape index: {}]   ;;  %s454_s1 = inlined_call_operand.vmem [shape: bf16[2,72,64], index: 1, kind: input, shape index: {}]   ;;  %s455_s2 = inlined_call_operand.vmem [shape: bf16[2,16,64], index: 2, kind: output, shape index: {}]  }
   0x1 LB: > { %s337_s10 = sadd.s32 4294967295, %s406_s9   ;;  %p341_p0 = scmp.ge.s32.totalorder %s406_s9, 1  ;;  %s406_s9 = sphi %s425_s9, %s12_s9  }
   0x2   : > { %p112_p1 = scmp.lt.s32.totalorder %s406_s9, 3 }
   0x4   : > { %p113_p2 = pnand %p341_p0, %p112_p1 }
   0x5   : > { %p134_p3 = scmp.lt.s32.totalorder (!%p113_p2), %s337_s10, 1 }
   0x6   : > { %116 = sbr.rel (%p113_p2) target bundleno = 543 (0x21f), region = 28 }
   0xb   : > { %v408_v0 = vmov 0.0   ;;  %vm409_vm0 = vmmov 0   ;;  %s457_s10 = smov (!%p134_p3, %s337_s10), 1  ;;  %vm192_vm1 = vcmask 1043456   ;;  %v395_v7 = vld [vmem:[%s453_s0] sm:$0xff]   ;;  %vm188_vm2 = vcmask 588800  }
   0xc   : > { %365 = vmatprep.subr.bf16.mxu0 %v408_v0  ;;  %375 = vmatprep.mubr.msk.bf16.mxu0 %vm409_vm0, %v408_v0  ;;  %s379_s11 = smul.u32 36, %s457_s10  ;;  %vm237_vm3 = vcmask 523264   ;;  %s356_s17 = sshll.u32 %s457_s10, 3  ;;  %vm279_vm5 = vcmask 519168  }
   0xd   : > { %s143_s20 = scalar_lea.vmem %s455_s2, %s356_s17 }
   0xe   : > { %s138_s14 = scalar_lea.vmem %s454_s1, %s379_s11 }
   0xf   : > { %v390_v1 = vld [vmem:[%s138_s14 + $0x20] ss:$0 sps:$4 sm:$0xff]   ;;  %v391_v3 = vld [vmem:[%s138_s14 + $0x18] sm:$0xff]   ;;  %v392_v4 = vld [vmem:[%s138_s14 + $0x10] sm:$0xff]  }
  0x10   : > { %v194_v2 = vsel %vm192_vm1, %v390_v1, 0  ;;  %v393_v5 = vld [vmem:[%s138_s14 + $0x8] sm:$0xff]   ;;  %v394_v6 = vld [vmem:[%s138_s14] sm:$0xff]  }
  0x11   : > { %366 = vmatpush3.bf16.msra.mxu0 %v194_v2 }
  0x12   : > { %367 = vmatprep.subr.bf16.mxu0 %v408_v0 }
  0x15   : > { %368 = vmatpush3.bf16.msra.mxu0 %v391_v3 }
  0x16   : > { %369 = vmatprep.subr.bf16.mxu0 %v408_v0 }
  0x19   : > { %370 = vmatpush3.bf16.msra.mxu0 %v392_v4 }
  0x1a   : > { %371 = vmatprep.subr.bf16.mxu0 %v408_v0 }
  0x1d   : > { %372 = vmatpush3.bf16.msra.mxu0 %v393_v5 }
  0x1e   : > { %373 = vmatprep.subr.bf16.mxu0 %v408_v0 }
  0x21   : > { %374 = vmatpush3.bf16.msra.mxu0 %v394_v6 }
  0x24   : > { %376 = vmatmul.mubr.msk.bf16.vlgmr.msra.gmra.mxu0 %vm188_vm2, %v395_v7 }
  0xe4   : > { %v230_v8 = vpop.f32.mrf.mxu0 }
  0xe5   : > { %v238_v9 = vsel %vm237_vm3, %v230_v8, 0.0 }
  0xe6   : > { %239 = vadd.xlane.f32.xlu0 %v238_v9  ;;  %v377_v10 = vpop.f32.mrf.mxu0 }
  0xe8   : > { %v233_v11 = vpop.f32.mrf.mxu0 }
  0xe9   : > { %v241_v12 = vsel %vm237_vm3, %v233_v11, 0.0 }
  0xea   : > { %242 = vadd.xlane.f32.xlu0 %v241_v12  ;;  %v378_v13 = vpop.f32.mrf.mxu0 }
 0x16f   : > { %v240_v14 = vpop.xlane.xlu0 %239 }
 0x170   : > { %v245_v15 = vmul.f32 0.015625, %v240_v14 }
 0x172   : > { %v247_v16 = vsub.f32 %v230_v8, %v245_v15 }
 0x173   : > { %v243_v17 = vpop.xlane.xlu0 %242 }
 0x174   : > { %v246_v18 = vmul.f32 0.015625, %v243_v17  ;;  %v249_v19 = vmul.f32 %v247_v16, %v247_v16 }
 0x176   : > { %v248_v20 = vsub.f32 %v233_v11, %v246_v18  ;;  %v251_v21 = vsel %vm237_vm3, %v249_v19, 0.0 }
 0x177   : > { %252 = vadd.xlane.f32.xlu1 %v251_v21 }
 0x178   : > { %v250_v22 = vmul.f32 %v248_v20, %v248_v20 }
 0x17a   : > { %v254_v23 = vsel %vm237_vm3, %v250_v22, 0.0 }
 0x17b   : > { %255 = vadd.xlane.f32.xlu1 %v254_v23 }
 0x200   : > { %v253_v24 = vpop.xlane.xlu1 %252 }
 0x201   : > { %v257_v25 = vmul.f32 0.015625, %v253_v24 }
 0x203   : > { %v259_v26 = vadd.f32 1e-05, %v257_v25 }
 0x204   : > { %v256_v27 = vpop.xlane.xlu1 %255 }
 0x205   : > { %396 = vrsqrt.f32 %v259_v26  ;;  %v258_v28 = vmul.f32 0.015625, %v256_v27 }
 0x207   : > { %v260_v29 = vadd.f32 1e-05, %v258_v28 }
 0x209   : > { %398 = vrsqrt.f32 %v260_v29 }
 0x212   : > { %v397_v30 = vpop.eup %396 }
 0x213   : > { %v263_v31 = vmul.f32 %v397_v30, %v247_v16 }
 0x215   : > { %vm265_vm4 = vcmp.gt.f32.partialorder %v263_v31, 0.0  ;;  %v267_v32 = vmul.f32 0.2, %v263_v31 }
 0x216   : > { %v399_v33 = vpop.eup %398 }
 0x217   : > { %v269_v34 = vsel %vm265_vm4, %v263_v31, %v267_v32  ;;  %v264_v35 = vmul.f32 %v399_v33, %v248_v20 }
 0x218   : > { %v357_v36 = vpack.c.bf16 %v269_v34, %v269_v34 }
 0x219   : > { %vm266_vm6 = vcmp.gt.f32.partialorder %v264_v35, 0.0  ;;  %v268_v37 = vmul.f32 0.2, %v264_v35 }
 0x21a   : > { %280 = vst.msk [vmem:[%s143_s20] sm:$0xf] %vm279_vm5, %v357_v36 }
 0x21b   : > { %v270_v38 = vsel %vm266_vm6, %v264_v35, %v268_v37 }
 0x21c   : > { %v358_v39 = vpack.c.bf16 %v270_v38, %v270_v38 }
 0x21e   : > { %281 = vst.msk [vmem:[%s143_s20 + $0x4] sm:$0xf] %vm279_vm5, %v358_v39 }
 0x21f PF: > { %s12_s9 = sadd.s32 1, %s406_s9  }
 0x220   : > { %p9_p4 = scmp.ge.s32.totalorder %s12_s9, 4  }
 0x222   :  { %11 = sbr.rel (!%p9_p4) target bundleno = 1 (0x1), region = 58 }

// kernel: conv_encoder_forward.11
= control target key start
LH: loop header
LB: loop body
LE: loop exit
PB: predicated region body
PF: predicated region fallthrough
CT: control target
= control target key end

     0   :  { %s545_s9 = smov 0   ;;  %s603_s0 = inlined_call_operand.vmem [shape: bf16[32,144], index: 0, kind: input, shape index: {}]   ;;  %s604_s1 = inlined_call_operand.vmem [shape: bf16[2,144,16], index: 1, kind: input, shape index: {}]   ;;  %s605_s2 = inlined_call_operand.vmem [shape: bf16[2,32,16], index: 2, kind: output, shape index: {}]  }
   0x1 LB: > { %s436_s10 = sadd.s32 4294967295, %s527_s9   ;;  %p440_p0 = scmp.ge.s32.totalorder %s527_s9, 1  ;;  %s527_s9 = sphi %s545_s9, %s12_s9  }
   0x2   : > { %p112_p1 = scmp.lt.s32.totalorder %s527_s9, 3 }
   0x4   : > { %p113_p2 = pnand %p440_p0, %p112_p1 }
   0x5   : > { %p134_p3 = scmp.lt.s32.totalorder (!%p113_p2), %s436_s10, 1 }
   0x6   : > { %116 = sbr.rel (%p113_p2) target bundleno = 562 (0x232), region = 28 }
   0xb   : > { %v529_v0 = vmov 0   ;;  %v509_v1 = vld [vmem:[%s603_s0 + $0x4] ss:$8 sps:$4 sm:$0xff]   ;;  %vm239_vm0 = vcmask 130048   ;;  %s607_s10 = smov (!%p134_p3, %s436_s10), 1  ;;  %vm376_vm2 = vcmask 125952  }
   0xc   : > { %246 = vmatprep.subr.bf16.mxu0 %v529_v0  ;;  %470 = vmatprep.subr.bf16.mxu1 %v529_v0  ;;  %v512_v2 = vld [vmem:[%s603_s0 + $0x14] ss:$8 sps:$4 sm:$0xff]   ;;  %s488_s15 = smul.u32 72, %s607_s10  ;;  %v507_v12 = vld [vmem:[%s603_s0] ss:$8 sps:$4 sm:$0xff]   ;;  %s465_s23 = sshll.u32 %s607_s10, 4 }
   0xd   : > { %457 = vmatprep.mubr.msk.bf16.mxu0 %vm239_vm0, %v509_v1  ;;  %458 = vmatprep.mubr.msk.bf16.mxu1 %vm239_vm0, %v512_v2  ;;  %v510_v13 = vld [vmem:[%s603_s0 + $0x10] ss:$8 sps:$4 sm:$0xff]   ;;  %s143_s26 = scalar_lea.vmem %s605_s2, %s465_s23 }
   0xe   : > { %s567_s18 = scalar_lea.vmem %s604_s1, %s488_s15 }
   0xf   : > { %v498_v3 = vld [vmem:[%s567_s18 + $0x38] sm:$0xff]   ;;  %v499_v4 = vld [vmem:[%s567_s18 + $0x30] sm:$0xff]   ;;  %v500_v5 = vld [vmem:[%s567_s18 + $0x28] sm:$0xff]  }
  0x10   : > { %247 = vmatpush1.bf16.msra.mxu0 %v498_v3  ;;  %479 = vmatpush1.bf16.msra.mxu1 %v498_v3  ;;  %v501_v6 = vld [vmem:[%s567_s18 + $0x20] sm:$0xff]   ;;  %v502_v7 = vld [vmem:[%s567_s18 + $0x18] sm:$0xff]   ;;  %v503_v8 = vld [vmem:[%s567_s18 + $0x10] sm:$0xff]  }
  0x11   : > { %248 = vmatprep.subr.bf16.mxu0 %v529_v0  ;;  %471 = vmatprep.subr.bf16.mxu1 %v529_v0  ;;  %v504_v9 = vld [vmem:[%s567_s18 + $0x8] sm:$0xff]   ;;  %v505_v10 = vld [vmem:[%s567_s18] sm:$0xff]  }
  0x12   : > { %v506_v11 = vld [vmem:[%s567_s18 + $0x40] sm:$0xff]  }
  0x14   : > { %249 = vmatpush1.bf16.msra.mxu0 %v499_v4  ;;  %480 = vmatpush1.bf16.msra.mxu1 %v499_v4 }
  0x15   : > { %250 = vmatprep.subr.bf16.mxu0 %v529_v0  ;;  %472 = vmatprep.subr.bf16.mxu1 %v529_v0 }
  0x18   : > { %251 = vmatpush1.bf16.msra.mxu0 %v500_v5  ;;  %481 = vmatpush1.bf16.msra.mxu1 %v500_v5 }
  0x19   : > { %252 = vmatprep.subr.bf16.mxu0 %v529_v0  ;;  %473 = vmatprep.subr.bf16.mxu1 %v529_v0 }
  0x1c   : > { %253 = vmatpush1.bf16.msra.mxu0 %v501_v6  ;;  %482 = vmatpush1.bf16.msra.mxu1 %v501_v6 }
  0x1d   : > { %254 = vmatprep.subr.bf16.mxu0 %v529_v0  ;;  %474 = vmatprep.subr.bf16.mxu1 %v529_v0 }
  0x20   : > { %255 = vmatpush1.bf16.msra.mxu0 %v502_v7  ;;  %483 = vmatpush1.bf16.msra.mxu1 %v502_v7 }
  0x21   : > { %256 = vmatprep.subr.bf16.mxu0 %v529_v0  ;;  %475 = vmatprep.subr.bf16.mxu1 %v529_v0 }
  0x24   : > { %257 = vmatpush1.bf16.msra.mxu0 %v503_v8  ;;  %484 = vmatpush1.bf16.msra.mxu1 %v503_v8 }
  0x25   : > { %258 = vmatprep.subr.bf16.mxu0 %v529_v0  ;;  %476 = vmatprep.subr.bf16.mxu1 %v529_v0 }
  0x28   : > { %259 = vmatpush1.bf16.msra.mxu0 %v504_v9  ;;  %485 = vmatpush1.bf16.msra.mxu1 %v504_v9 }
  0x29   : > { %260 = vmatprep.subr.bf16.mxu0 %v529_v0  ;;  %477 = vmatprep.subr.bf16.mxu1 %v529_v0 }
  0x2c   : > { %261 = vmatpush1.bf16.msra.mxu0 %v505_v10  ;;  %486 = vmatpush1.bf16.msra.mxu1 %v505_v10 }
  0x2d   : > { %276 = vmatprep.subr.bf16.mxu0 %v529_v0  ;;  %478 = vmatprep.subr.bf16.mxu1 %v529_v0 }
  0x30   : > { %277 = vmatpush2.bf16.msra.mxu0 %v506_v11  ;;  %487 = vmatpush2.bf16.msra.mxu1 %v506_v11 }
  0x33   : > { %279 = vmatmul.mubr.bf16.vlgmr.msra.gmra.mxu0 %v507_v12  ;;  %287 = vmatmul.mubr.bf16.vlgmr.msra.gmra.mxu1 %v510_v13 }
  0xf3   : > { %v280_v14 = vpop.f32.mrf.mxu0  ;;  %v288_v15 = vpop.f32.mrf.mxu1 }
  0xf4   : > { %v301_v16 = vsel %vm239_vm0, %v288_v15, 0.0  ;;  %v295_v17 = vsel %vm239_vm0, %v280_v14, 0.0 }
  0xf5   : > { %302 = vadd.xlane.f32.xlu1 %v301_v16  ;;  %v290_v18 = vpop.f32.mrf.mxu1  ;;  %296 = vadd.xlane.f32.xlu0 %v295_v17  ;;  %v282_v19 = vpop.f32.mrf.mxu0 }
  0xf7   : > { %v283_v20 = vpop.f32.mrf.mxu0  ;;  %v291_v21 = vpop.f32.mrf.mxu1 }
  0xf8   : > { %v304_v22 = vsel %vm239_vm0, %v291_v21, 0.0  ;;  %v298_v23 = vsel %vm239_vm0, %v283_v20, 0.0 }
  0xf9   : > { %305 = vadd.xlane.f32.xlu1 %v304_v22  ;;  %v293_v24 = vpop.f32.mrf.mxu1  ;;  %299 = vadd.xlane.f32.xlu0 %v298_v23  ;;  %v285_v25 = vpop.f32.mrf.mxu0 }
 0x17e   : > { %v303_v26 = vpop.xlane.xlu1 %302  ;;  %v297_v27 = vpop.xlane.xlu0 %296 }
 0x17f   : > { %v310_v28 = vmul.f32 0.0625, %v303_v26  ;;  %v308_v29 = vmul.f32 0.0625, %v297_v27 }
 0x181   : > { %v314_v30 = vsub.f32 %v288_v15, %v310_v28  ;;  %v312_v31 = vsub.f32 %v280_v14, %v308_v29 }
 0x182   : > { %v306_v32 = vpop.xlane.xlu1 %305  ;;  %v300_v33 = vpop.xlane.xlu0 %299 }
 0x183   : > { %v311_v34 = vmul.f32 0.0625, %v306_v32  ;;  %v309_v35 = vmul.f32 0.0625, %v300_v33  ;;  %v316_v36 = vmul.f32 %v312_v31, %v312_v31  ;;  %v318_v40 = vmul.f32 %v314_v30, %v314_v30 }
 0x185   : > { %v315_v37 = vsub.f32 %v291_v21, %v311_v34  ;;  %v313_v38 = vsub.f32 %v283_v20, %v309_v35  ;;  %v320_v39 = vsel %vm239_vm0, %v316_v36, 0.0  ;;  %v326_v42 = vsel %vm239_vm0, %v318_v40, 0.0 }
 0x186   : > { %321 = vadd.xlane.f32.xlu0 %v320_v39 }
 0x187   : > { %v317_v41 = vmul.f32 %v313_v38, %v313_v38  ;;  %v319_v44 = vmul.f32 %v315_v37, %v315_v37 }
 0x189   : > { %v323_v43 = vsel %vm239_vm0, %v317_v41, 0.0  ;;  %v329_v45 = vsel %vm239_vm0, %v319_v44, 0.0 }
 0x18a   : > { %327 = vadd.xlane.f32.xlu0 %v326_v42  ;;  %324 = vadd.xlane.f32.xlu1 %v323_v43 }
 0x18e   : > { %330 = vadd.xlane.f32.xlu1 %v329_v45 }
 0x20f   : > { %v322_v46 = vpop.xlane.xlu0 %321 }
 0x210   : > { %v332_v47 = vmul.f32 0.0625, %v322_v46 }
 0x212   : > { %v336_v48 = vadd.f32 1e-05, %v332_v47 }
 0x213   : > { %v325_v49 = vpop.xlane.xlu1 %324  ;;  %v328_v50 = vpop.xlane.xlu0 %327 }
 0x214   : > { %513 = vrsqrt.f32 %v336_v48  ;;  %v333_v51 = vmul.f32 0.0625, %v325_v49  ;;  %v334_v52 = vmul.f32 0.0625, %v328_v50 }
 0x216   : > { %v337_v53 = vadd.f32 1e-05, %v333_v51  ;;  %v338_v54 = vadd.f32 1e-05, %v334_v52 }
 0x217   : > { %v331_v55 = vpop.xlane.xlu1 %330 }
 0x218   : > { %515 = vrsqrt.f32 %v337_v53  ;;  %v335_v56 = vmul.f32 0.0625, %v331_v55 }
 0x219   : > { %517 = vrsqrt.f32 %v338_v54 }
 0x21a   : > { %v339_v57 = vadd.f32 1e-05, %v335_v56 }
 0x21c   : > { %519 = vrsqrt.f32 %v339_v57 }
 0x221   : > { %v514_v58 = vpop.eup %513 }
 0x222   : > { %v344_v59 = vmul.f32 %v514_v58, %v312_v31 }
 0x224   : > { %vm348_vm1 = vcmp.gt.f32.partialorder %v344_v59, 0.0  ;;  %v352_v60 = vmul.f32 0.2, %v344_v59 }
 0x225   : > { %v516_v61 = vpop.eup %515 }
 0x226   : > { %v518_v62 = vpop.eup %517  ;;  %v356_v63 = vsel %vm348_vm1, %v344_v59, %v352_v60  ;;  %v345_v0 = vmul.f32 %v516_v61, %v313_v38 }
 0x227   : > { %v466_v1 = vpack.c.bf16 %v356_v63, %v356_v63  ;;  %v346_v2 = vmul.f32 %v518_v62, %v314_v30 }
 0x228   : > { %vm349_vm3 = vcmp.gt.f32.partialorder %v345_v0, 0.0  ;;  %v353_v3 = vmul.f32 0.2, %v345_v0 }
 0x229   : > { %v520_v4 = vpop.eup %519  ;;  %377 = vst.msk [vmem:[%s143_s26] sm:$0xf] %vm376_vm2, %v466_v1  ;;  %vm350_vm4 = vcmp.gt.f32.partialorder %v346_v2, 0.0  ;;  %v354_v5 = vmul.f32 0.2, %v346_v2 }
 0x22a   : > { %v357_v6 = vsel %vm349_vm3, %v345_v0, %v353_v3  ;;  %v347_v7 = vmul.f32 %v520_v4, %v315_v37 }
 0x22b   : > { %v467_v8 = vpack.c.bf16 %v357_v6, %v357_v6  ;;  %v358_v9 = vsel %vm350_vm4, %v346_v2, %v354_v5 }
 0x22c   : > { %v468_v10 = vpack.c.bf16 %v358_v9, %v358_v9  ;;  %vm351_vm5 = vcmp.gt.f32.partialorder %v347_v7, 0.0  ;;  %v355_v11 = vmul.f32 0.2, %v347_v7 }
 0x22d   : > { %378 = vst.msk [vmem:[%s143_s26 + $0x4] sm:$0xf] %vm376_vm2, %v467_v8 }
 0x22e   : > { %379 = vst.msk [vmem:[%s143_s26 + $0x8] sm:$0xf] %vm376_vm2, %v468_v10  ;;  %v359_v12 = vsel %vm351_vm5, %v347_v7, %v355_v11 }
 0x22f   : > { %v469_v13 = vpack.c.bf16 %v359_v12, %v359_v12 }
 0x231   : > { %380 = vst.msk [vmem:[%s143_s26 + $0xc] sm:$0xf] %vm376_vm2, %v469_v13 }
 0x232 PF: > { %s12_s9 = sadd.s32 1, %s527_s9  }
 0x233   : > { %p9_p4 = scmp.ge.s32.totalorder %s12_s9, 4  }
 0x235   :  { %11 = sbr.rel (!%p9_p4) target bundleno = 1 (0x1), region = 58 }

// kernel: conv_encoder_forward.12
= control target key start
LH: loop header
LB: loop body
LE: loop exit
PB: predicated region body
PF: predicated region fallthrough
CT: control target
= control target key end

     0   :  { %s927_s9 = smov 0   ;;  %s1082_s0 = inlined_call_operand.vmem [shape: bf16[64,288], index: 0, kind: input, shape index: {}]   ;;  %s1083_s1 = inlined_call_operand.vmem [shape: bf16[2,288,4], index: 1, kind: input, shape index: {}]   ;;  %s1084_s2 = inlined_call_operand.vmem [shape: bf16[2,64,4], index: 2, kind: output, shape index: {}]  }
   0x1 LB: > { %s710_s10 = sadd.s32 4294967295, %s910_s9   ;;  %p714_p0 = scmp.ge.s32.totalorder %s910_s9, 1  ;;  %s910_s9 = sphi %s927_s9, %s12_s9  }
   0x2   : > { %p112_p1 = scmp.lt.s32.totalorder %s910_s9, 3 }
   0x4   : > { %p113_p2 = pnand %p714_p0, %p112_p1 }
   0x5   : > { %p134_p3 = scmp.lt.s32.totalorder (!%p113_p2), %s710_s10, 1 }
   0x6   : > { %116 = sbr.rel (%p113_p2) target bundleno = 578 (0x242), region = 28 }
   0xb   : > { %v872_v0 = vld [vmem:[%s1082_s0 + $0x4] ss:$12 sps:$4 sm:$0xff]   ;;  %s1086_s10 = smov (!%p134_p3, %s710_s10), 1  ;;  %v875_v1 = vld [vmem:[%s1082_s0 + $0x4c] ss:$12 sps:$4 sm:$0xff]   ;;  %vm365_vm0 = vcmask 261120  }
   0xc   : > { %410 = vmatprep.mubr.bf16.mxu0 %v872_v0  ;;  %s845_s15 = smul.u32 144, %s1086_s10  ;;  %434 = vmatprep.mubr.bf16.mxu1 %v875_v1  ;;  %v870_v19 = vld [vmem:[%s1082_s0] ss:$12 sps:$4 sm:$0xff]   ;;  %v873_v20 = vld [vmem:[%s1082_s0 + $0x48] ss:$12 sps:$4 sm:$0xff]   ;;  %vm508_vm1 = vcmask 31744  }
   0xd   : > { %v878_v21 = vld [vmem:[%s1082_s0 + $0x1c] ss:$12 sps:$4 sm:$0xff]   ;;  %v881_v24 = vld [vmem:[%s1082_s0 + $0x18] ss:$12 sps:$4 sm:$0xff]   ;;  %v882_v25 = vld [vmem:[%s1082_s0 + $0x20] ss:$12 sps:$4 sm:$0xff]  }
   0xe   : > { %s947_s18 = scalar_lea.vmem %s1083_s1, %s845_s15  ;;  %v880_v23 = vld [vmem:[%s1082_s0 + $0x8] ss:$12 sps:$4 sm:$0xff]   ;;  %v885_v27 = vld [vmem:[%s1082_s0 + $0x38] ss:$12 sps:$4 sm:$0xff]   ;;  %v886_v28 = vld [vmem:[%s1082_s0 + $0x30] ss:$12 sps:$4 sm:$0xff]  }
   0xf   : > { %v854_v2 = vld [vmem:[%s947_s18 + $0x78] sm:$0xff]   ;;  %v856_v4 = vld [vmem:[%s947_s18 + $0x70] sm:$0xff]   ;;  %v858_v6 = vld [vmem:[%s947_s18 + $0x68] sm:$0xff]   ;;  %s762_s13 = sshll.u32 %s1086_s10, 5  ;;  %vm646_vm2 = vcmask 27648  }
  0x10   : > { %v855_v3 = vld [vmem:[%s947_s18 + $0x38] sm:$0xff]   ;;  %771 = vmatprep.subr.bf16.mxu0 %v854_v2  ;;  %829 = vmatprep.subr.bf16.mxu1 %v854_v2  ;;  %v857_v5 = vld [vmem:[%s947_s18 + $0x30] sm:$0xff]   ;;  %v859_v7 = vld [vmem:[%s947_s18 + $0x28] sm:$0xff]   ;;  %s1054_s16 = scalar_lea.vmem %s1084_s2, %s762_s13 }
  0x11   : > { %772 = vmatpush3.bf16.msra.mxu0 %v855_v3  ;;  %837 = vmatpush3.bf16.msra.mxu1 %v855_v3  ;;  %v860_v8 = vld [vmem:[%s947_s18 + $0x60] sm:$0xff]   ;;  %v862_v10 = vld [vmem:[%s947_s18 + $0x58] sm:$0xff]   ;;  %v864_v12 = vld [vmem:[%s947_s18 + $0x50] sm:$0xff]  }
  0x12   : > { %773 = vmatprep.subr.bf16.mxu0 %v856_v4  ;;  %830 = vmatprep.subr.bf16.mxu1 %v856_v4  ;;  %v861_v9 = vld [vmem:[%s947_s18 + $0x20] sm:$0xff]   ;;  %v863_v11 = vld [vmem:[%s947_s18 + $0x18] sm:$0xff]   ;;  %v865_v13 = vld [vmem:[%s947_s18 + $0x10] sm:$0xff]  }
  0x13   : > { %v866_v14 = vld [vmem:[%s947_s18 + $0x48] sm:$0xff]   ;;  %v868_v16 = vld [vmem:[%s947_s18 + $0x40] sm:$0xff]   ;;  %v887_v29 = vld [vmem:[%s1082_s0 + $0x50] ss:$12 sps:$4 sm:$0xff]  }
  0x14   : > { %v867_v15 = vld [vmem:[%s947_s18 + $0x8] sm:$0xff]   ;;  %v869_v17 = vld [vmem:[%s947_s18] sm:$0xff]  }
  0x15   : > { %774 = vmatpush3.bf16.msra.mxu0 %v857_v5  ;;  %838 = vmatpush3.bf16.msra.mxu1 %v857_v5  ;;  %v876_v18 = vld [vmem:[%s947_s18 + $0x88] sm:$0xff]   ;;  %v877_v22 = vld [vmem:[%s947_s18 + $0x80] sm:$0xff]  }
  0x16   : > { %775 = vmatprep.subr.bf16.mxu0 %v858_v6  ;;  %831 = vmatprep.subr.bf16.mxu1 %v858_v6  ;;  %v883_v26 = vld [vmem:[%s1082_s0 + $0x34] ss:$12 sps:$4 sm:$0xff]  }
  0x19   : > { %776 = vmatpush3.bf16.msra.mxu0 %v859_v7  ;;  %839 = vmatpush3.bf16.msra.mxu1 %v859_v7 }
  0x1a   : > { %777 = vmatprep.subr.bf16.mxu0 %v860_v8  ;;  %832 = vmatprep.subr.bf16.mxu1 %v860_v8 }
  0x1d   : > { %778 = vmatpush3.bf16.msra.mxu0 %v861_v9  ;;  %840 = vmatpush3.bf16.msra.mxu1 %v861_v9 }
  0x1e   : > { %779 = vmatprep.subr.bf16.mxu0 %v862_v10  ;;  %833 = vmatprep.subr.bf16.mxu1 %v862_v10 }
  0x21   : > { %780 = vmatpush3.bf16.msra.mxu0 %v863_v11  ;;  %841 = vmatpush3.bf16.msra.mxu1 %v863_v11 }
  0x22   : > { %781 = vmatprep.subr.bf16.mxu0 %v864_v12  ;;  %834 = vmatprep.subr.bf16.mxu1 %v864_v12 }
  0x25   : > { %782 = vmatpush3.bf16.msra.mxu0 %v865_v13  ;;  %842 = vmatpush3.bf16.msra.mxu1 %v865_v13 }
  0x26   : > { %783 = vmatprep.subr.bf16.mxu0 %v866_v14  ;;  %835 = vmatprep.subr.bf16.mxu1 %v866_v14 }
  0x29   : > { %784 = vmatpush3.bf16.msra.mxu0 %v867_v15  ;;  %843 = vmatpush3.bf16.msra.mxu1 %v867_v15 }
  0x2a   : > { %785 = vmatprep.subr.bf16.mxu0 %v868_v16  ;;  %836 = vmatprep.subr.bf16.mxu1 %v868_v16 }
  0x2d   : > { %786 = vmatpush3.bf16.msra.mxu0 %v869_v17  ;;  %844 = vmatpush3.bf16.msra.mxu1 %v869_v17 }
  0x2e   : > { %817 = vmatprep.subr.bf16.mxu1 %v876_v18 }
  0x30   : > { %411 = vmatmul.mubr.bf16.vlgmr.msra.gmra.mxu0 %v870_v19  ;;  %435 = vmatmul.mubr.bf16.vlgmr.msra.gmra.mxu1 %v873_v20 }
  0x31   : > { %818 = vmatpush3.bf16.msra.mxu1 %v876_v18  ;;  %418 = vmatprep.mubr.bf16.mxu0 %v878_v21 }
  0x32   : > { %819 = vmatprep.subr.bf16.mxu1 %v877_v22  ;;  %821 = vmatprep.mubr.msk.bf16.mxu1 %vm365_vm0, %v880_v23 }
  0x35   : > { %820 = vmatpush3.bf16.msra.mxu1 %v877_v22 }
  0x38   : > { %419 = vmatmul.mubr.bf16.gmra.mxu0 %v881_v24  ;;  %822 = vmatmul.mubr.msk.bf16.vlgmr.msra.gmra.mxu1 %vm365_vm0, %v882_v25 }
  0x39   : > { %426 = vmatprep.mubr.bf16.mxu0 %v883_v26  ;;  %825 = vmatprep.mubr.msk.bf16.mxu1 %vm365_vm0, %v885_v27 }
  0x40   : > { %427 = vmatmul.mubr.bf16.gmra.mxu0 %v886_v28  ;;  %826 = vmatmul.mubr.msk.bf16.gmra.mxu1 %vm365_vm0, %v887_v29 }
  0xf0   : > { %v787_v30 = vpop.f32.mrf.mxu0  ;;  %v805_v31 = vpop.f32.mrf.mxu1 }
  0xf2   : > { %v788_v32 = vpop.f32.mrf.mxu0  ;;  %v806_v33 = vpop.f32.mrf.mxu1 }
  0xf3   : > { %v789_v40 = vadd.f32 %v788_v32, %v787_v30  ;;  %v807_v1 = vadd.f32 %v806_v33, %v805_v31 }
  0xf4   : > { %v790_v34 = vpop.f32.mrf.mxu0  ;;  %v808_v35 = vpop.f32.mrf.mxu1 }
  0xf6   : > { %v791_v36 = vpop.f32.mrf.mxu0  ;;  %v809_v37 = vpop.f32.mrf.mxu1 }
  0xf7   : > { %v792_v47 = vadd.f32 %v791_v36, %v790_v34  ;;  %v810_v8 = vadd.f32 %v809_v37, %v808_v35 }
  0xf8   : > { %v793_v38 = vpop.f32.mrf.mxu0  ;;  %v823_v39 = vpop.f32.mrf.mxu1 }
  0xfa   : > { %v794_v41 = vpop.f32.mrf.mxu0  ;;  %v477_v42 = vpop.f32.mrf.mxu1 }
  0xfb   : > { %v795_v43 = vadd.f32 %v794_v41, %v793_v38  ;;  %v478_v44 = vadd.f32 %v789_v40, %v477_v42 }
  0xfc   : > { %v796_v45 = vpop.f32.mrf.mxu0  ;;  %v824_v46 = vpop.f32.mrf.mxu1 }
  0xfd   : > { %v509_v48 = vsel %vm508_vm1, %v478_v44, 0.0  ;;  %v486_v49 = vadd.f32 %v823_v39, %v795_v43 }
  0xfe   : > { %v797_v50 = vpop.f32.mrf.mxu0  ;;  %v480_v51 = vpop.f32.mrf.mxu1  ;;  %510 = vadd.xlane.f32.xlu0 %v509_v48 }
  0xff   : > { %v798_v52 = vadd.f32 %v797_v50, %v796_v45  ;;  %v481_v53 = vadd.f32 %v792_v47, %v480_v51  ;;  %v515_v54 = vsel %vm508_vm1, %v486_v49, 0.0 }
 0x100   : > { %v799_v55 = vpop.f32.mrf.mxu0  ;;  %v827_v56 = vpop.f32.mrf.mxu1  ;;  %516 = vadd.xlane.f32.xlu1 %v515_v54 }
 0x101   : > { %v512_v57 = vsel %vm508_vm1, %v481_v53, 0.0  ;;  %v489_v58 = vadd.f32 %v824_v46, %v798_v52  ;;  %v502_v4 = vadd.f32 %v827_v56, %v807_v1 }
 0x102   : > { %v800_v59 = vpop.f32.mrf.mxu0  ;;  %v493_v60 = vpop.f32.mrf.mxu1  ;;  %513 = vadd.xlane.f32.xlu0 %v512_v57 }
 0x103   : > { %v801_v61 = vadd.f32 %v800_v59, %v799_v55  ;;  %v518_v62 = vsel %vm508_vm1, %v489_v58, 0.0  ;;  %v527_v12 = vsel %vm508_vm1, %v502_v4, 0.0 }
 0x104   : > { %v802_v63 = vpop.f32.mrf.mxu0  ;;  %v828_v0 = vpop.f32.mrf.mxu1  ;;  %519 = vadd.xlane.f32.xlu1 %v518_v62 }
 0x105   : > { %v494_v2 = vadd.f32 %v801_v61, %v493_v60  ;;  %v505_v10 = vadd.f32 %v828_v0, %v810_v8 }
 0x106   : > { %v803_v3 = vpop.f32.mrf.mxu0  ;;  %v496_v7 = vpop.f32.mrf.mxu1 }
 0x107   : > { %v804_v5 = vadd.f32 %v803_v3, %v802_v63  ;;  %v521_v6 = vsel %vm508_vm1, %v494_v2, 0.0  ;;  %v530_v13 = vsel %vm508_vm1, %v505_v10, 0.0 }
 0x108   : > { %522 = vadd.xlane.f32.xlu0 %v521_v6 }
 0x109   : > { %v497_v9 = vadd.f32 %v804_v5, %v496_v7 }
 0x10b   : > { %v524_v11 = vsel %vm508_vm1, %v497_v9, 0.0 }
 0x10c   : > { %525 = vadd.xlane.f32.xlu1 %v524_v11  ;;  %528 = vadd.xlane.f32.xlu0 %v527_v12 }
 0x110   : > { %531 = vadd.xlane.f32.xlu1 %v530_v13 }
 0x187   : > { %v511_v14 = vpop.xlane.xlu0 %510 }
 0x188   : > { %v534_v15 = vmul.f32 0.25, %v511_v14 }
 0x189   : > { %v517_v16 = vpop.xlane.xlu1 %516 }
 0x18a   : > { %v1009_v17 = vsub.f32 %v478_v44, %v534_v15  ;;  %v536_v18 = vmul.f32 0.25, %v517_v16 }
 0x18b   : > { %v514_v19 = vpop.xlane.xlu0 %513 }
 0x18c   : > { %v1011_v20 = vsub.f32 %v486_v49, %v536_v18  ;;  %v535_v21 = vmul.f32 0.25, %v514_v19  ;;  %v550_v22 = vmul.f32 %v1009_v17, %v1009_v17 }
 0x18d   : > { %v520_v23 = vpop.xlane.xlu1 %519 }
 0x18e   : > { %v1015_v24 = vsub.f32 %v481_v53, %v535_v21  ;;  %v537_v25 = vmul.f32 0.25, %v520_v23  ;;  %v558_v26 = vsel %vm508_vm1, %v550_v22, 0.0  ;;  %v552_v27 = vmul.f32 %v1011_v20, %v1011_v20 }
 0x18f   : > { %559 = vadd.xlane.f32.xlu0 %v558_v26 }
 0x190   : > { %v1020_v28 = vsub.f32 %v489_v58, %v537_v25  ;;  %v551_v29 = vmul.f32 %v1015_v24, %v1015_v24  ;;  %v564_v32 = vsel %vm508_vm1, %v552_v27, 0.0 }
 0x191   : > { %v523_v30 = vpop.xlane.xlu0 %522 }
 0x192   : > { %v538_v31 = vmul.f32 0.25, %v523_v30  ;;  %v561_v33 = vsel %vm508_vm1, %v551_v29, 0.0  ;;  %v553_v34 = vmul.f32 %v1020_v28, %v1020_v28 }
 0x193   : > { %565 = vadd.xlane.f32.xlu0 %v564_v32  ;;  %562 = vadd.xlane.f32.xlu1 %v561_v33 }
 0x194   : > { %v1028_v35 = vsub.f32 %v494_v2, %v538_v31  ;;  %v567_v40 = vsel %vm508_vm1, %v553_v34, 0.0 }
 0x195   : > { %v526_v36 = vpop.xlane.xlu1 %525  ;;  %v529_v37 = vpop.xlane.xlu0 %528 }
 0x196   : > { %v539_v38 = vmul.f32 0.25, %v526_v36  ;;  %v540_v39 = vmul.f32 0.25, %v529_v37  ;;  %v554_v41 = vmul.f32 %v1028_v35, %v1028_v35 }
 0x197   : > { %568 = vadd.xlane.f32.xlu1 %v567_v40 }
 0x198   : > { %v1033_v42 = vsub.f32 %v497_v9, %v539_v38  ;;  %v1035_v43 = vsub.f32 %v502_v4, %v540_v39  ;;  %v570_v44 = vsel %vm508_vm1, %v554_v41, 0.0 }
 0x199   : > { %v532_v45 = vpop.xlane.xlu1 %531  ;;  %571 = vadd.xlane.f32.xlu0 %v570_v44 }
 0x19a   : > { %v541_v46 = vmul.f32 0.25, %v532_v45  ;;  %v555_v47 = vmul.f32 %v1033_v42, %v1033_v42  ;;  %v556_v48 = vmul.f32 %v1035_v43, %v1035_v43 }
 0x19c   : > { %v1042_v49 = vsub.f32 %v505_v10, %v541_v46  ;;  %v573_v50 = vsel %vm508_vm1, %v555_v47, 0.0  ;;  %v576_v51 = vsel %vm508_vm1, %v556_v48, 0.0 }
 0x19d   : > { %574 = vadd.xlane.f32.xlu1 %v573_v50  ;;  %577 = vadd.xlane.f32.xlu0 %v576_v51 }
 0x19e   : > { %v557_v52 = vmul.f32 %v1042_v49, %v1042_v49 }
 0x1a0   : > { %v579_v53 = vsel %vm508_vm1, %v557_v52, 0.0 }
 0x1a1   : > { %580 = vadd.xlane.f32.xlu1 %v579_v53 }
 0x218   : > { %v560_v54 = vpop.xlane.xlu0 %559 }
 0x219   : > { %v582_v55 = vmul.f32 0.25, %v560_v54 }
 0x21b   : > { %v590_v56 = vadd.f32 1e-05, %v582_v55 }
 0x21c   : > { %v563_v57 = vpop.xlane.xlu1 %562  ;;  %v566_v58 = vpop.xlane.xlu0 %565 }
 0x21d   : > { %888 = vrsqrt.f32 %v590_v56  ;;  %v583_v59 = vmul.f32 0.25, %v563_v57  ;;  %v584_v60 = vmul.f32 0.25, %v566_v58 }
 0x21f   : > { %v591_v61 = vadd.f32 1e-05, %v583_v59  ;;  %v592_v62 = vadd.f32 1e-05, %v584_v60 }
 0x220   : > { %v569_v63 = vpop.xlane.xlu1 %568 }
 0x221   : > { %890 = vrsqrt.f32 %v591_v61  ;;  %v585_v0 = vmul.f32 0.25, %v569_v63 }
 0x222   : > { %892 = vrsqrt.f32 %v592_v62  ;;  %v572_v1 = vpop.xlane.xlu0 %571 }
 0x223   : > { %v593_v2 = vadd.f32 1e-05, %v585_v0  ;;  %v586_v3 = vmul.f32 0.25, %v572_v1 }
 0x225   : > { %894 = vrsqrt.f32 %v593_v2  ;;  %v594_v4 = vadd.f32 1e-05, %v586_v3 }
 0x226   : > { %v575_v5 = vpop.xlane.xlu1 %574  ;;  %v578_v6 = vpop.xlane.xlu0 %577 }
 0x227   : > { %896 = vrsqrt.f32 %v594_v4  ;;  %v587_v7 = vmul.f32 0.25, %v575_v5  ;;  %v588_v8 = vmul.f32 0.25, %v578_v6 }
 0x229   : > { %v595_v9 = vadd.f32 1e-05, %v587_v7  ;;  %v596_v10 = vadd.f32 1e-05, %v588_v8 }
 0x22a   : > { %v889_v11 = vpop.eup %888  ;;  %v581_v12 = vpop.xlane.xlu1 %580 }
 0x22b   : > { %v606_v13 = vmul.f32 %v889_v11, %v1009_v17  ;;  %898 = vrsqrt.f32 %v595_v9  ;;  %v589_v14 = vmul.f32 0.25, %v581_v12 }
 0x22c   : > { %900 = vrsqrt.f32 %v596_v10 }
 0x22d   : > { %v763_v15 = vpack.c.bf16 %v606_v13, %v606_v13  ;;  %v597_v16 = vadd.f32 1e-05, %v589_v14 }
 0x22e   : > { %v891_v18 = vpop.eup %890 }
 0x22f   : > { %v893_v19 = vpop.eup %892  ;;  %647 = vst.msk [vmem:[%s1054_s16] sm:$0xf] %vm646_vm2, %v763_v15  ;;  %v607_v17 = vmul.f32 %v891_v18, %v1015_v24  ;;  %902 = vrsqrt.f32 %v597_v16 }
 0x230   : > { %v608_v21 = vmul.f32 %v893_v19, %v1011_v20 }
 0x231   : > { %v764_v22 = vpack.c.bf16 %v607_v17, %v607_v17 }
 0x232   : > { %v895_v23 = vpop.eup %894  ;;  %v765_v25 = vpack.c.bf16 %v608_v21, %v608_v21 }
 0x233   : > { %648 = vst.msk [vmem:[%s1054_s16 + $0x4] sm:$0xf] %vm646_vm2, %v764_v22  ;;  %v609_v26 = vmul.f32 %v895_v23, %v1020_v28 }
 0x234   : > { %v897_v27 = vpop.eup %896  ;;  %649 = vst.msk [vmem:[%s1054_s16 + $0x8] sm:$0xf] %vm646_vm2, %v765_v25 }
 0x235   : > { %v766_v29 = vpack.c.bf16 %v609_v26, %v609_v26  ;;  %v610_v24 = vmul.f32 %v897_v27, %v1028_v35 }
 0x237   : > { %650 = vst.msk [vmem:[%s1054_s16 + $0xc] sm:$0xf] %vm646_vm2, %v766_v29  ;;  %v767_v30 = vpack.c.bf16 %v610_v24, %v610_v24 }
 0x238   : > { %v899_v20 = vpop.eup %898 }
 0x239   : > { %v901_v31 = vpop.eup %900  ;;  %651 = vst.msk [vmem:[%s1054_s16 + $0x10] sm:$0xf] %vm646_vm2, %v767_v30  ;;  %v611_v32 = vmul.f32 %v899_v20, %v1033_v42 }
 0x23a   : > { %v612_v33 = vmul.f32 %v901_v31, %v1035_v43 }
 0x23b   : > { %v768_v28 = vpack.c.bf16 %v611_v32, %v611_v32 }
 0x23c   : > { %v903_v34 = vpop.eup %902  ;;  %v769_v36 = vpack.c.bf16 %v612_v33, %v612_v33 }
 0x23d   : > { %652 = vst.msk [vmem:[%s1054_s16 + $0x14] sm:$0xf] %vm646_vm2, %v768_v28  ;;  %v613_v37 = vmul.f32 %v903_v34, %v1042_v49 }
 0x23e   : > { %653 = vst.msk [vmem:[%s1054_s16 + $0x18] sm:$0xf] %vm646_vm2, %v769_v36 }
 0x23f   : > { %v770_v35 = vpack.c.bf16 %v613_v37, %v613_v37 }
 0x241   : > { %654 = vst.msk [vmem:[%s1054_s16 + $0x1c] sm:$0xf] %vm646_vm2, %v770_v35 }
 0x242 PF: > { %s12_s9 = sadd.s32 1, %s910_s9  }
 0x243   : > { %p9_p4 = scmp.ge.s32.totalorder %s12_s9, 4  }
 0x245   :  { %11 = sbr.rel (!%p9_p4) target bundleno = 1 (0x1), region = 58 }

// kernel: tile.33
= control target key start
LH: loop header
LB: loop body
LE: loop exit
PB: predicated region body
PF: predicated region fallthrough
CT: control target
= control target key end

     0   :  { %s22_s0 = inlined_call_operand.vmem [shape: f32[64], index: 0, kind: input, shape index: {}]   ;;  %s23_s1 = inlined_call_operand.vmem [shape: f32[4,64], index: 1, kind: output, shape index: {}]  }
   0x1   :  { %v4_v0 = vld [vmem:[%s22_s0] ss:$0 sm:$0xff] }
   0x2   :  { %5 = vst [vmem:[%s23_s1] sm:$0xf] %v4_v0 }

// kernel: tile.42
= control target key start
LH: loop header
LB: loop body
LE: loop exit
PB: predicated region body
PF: predicated region fallthrough
CT: control target
= control target key end

     0   :  { %s7_s8 = smov 3  ;;  %vm9_vm0 = vcmask 523264   ;;  %s34_s9 = smov 64   ;;  %vm16_vm1 = vcmask 1048064   ;;  %s54_s0 = inlined_call_operand.vmem [shape: f32[4,64], index: 0, kind: input, shape index: {}]   ;;  %s55_s1 = inlined_call_operand.vmem [shape: f32[1,256], index: 1, kind: output, shape index: {}]  }
   0x1   :  { %v5_v0 = vld [vmem:[%s54_s0] sm:$0xf]  ;;  %s12_s0 = smov 3 }
   0x2   :  { %6 = vst [vmem:[#allocation1] sm:$0xf] %v5_v0 }
   0x9   :  { %v13_v1 = vld [vmem:[#allocation1 + $0x1] ss:$2 sm:%s12_s0]   ;;  %v8_v2 = vld [vmem:[#allocation1] ss:$2 sm:%s7_s8]  }
   0xa   :  { %14 = vrot.lane.b32.xlu0 %v13_v1, %s34_s9  ;;  %10 = vst.msk [vmem:[#allocation0] ss:$8 sm:$0x3] %vm9_vm0, %v8_v2  }
  0x7c   :  { %v15_v3 = vpop.permute.xlu0 %14  }
  0x7d   :  { %17 = vst.msk [vmem:[#allocation0] ss:$8 sm:$0x3] %vm16_vm1, %v15_v3  }
  0x84   :  { %v22_v4 = vld [vmem:[#allocation0] sm:$0x1]  ;;  %v27_v5 = vld [vmem:[#allocation0 + $0x8] sm:$0x1] }
  0x85   :  { %25 = vst [vmem:[%s55_s1] sm:$0x1] %v22_v4  ;;  %32 = vst [vmem:[%s55_s1 + $0x1] sm:$0x1] %v27_v5 }

// kernel: conv_encoder_forward.13
= control target key start
LH: loop header
LB: loop body
LE: loop exit
PB: predicated region body
PF: predicated region fallthrough
CT: control target
= control target key end

     0   :  { %13 = vsyncpa [#allocation3], 0  ;;  %s7770_s0 = inlined_call_operand.vmem [shape: bf16[2,1,256], index: 0, kind: input, shape index: {}]   ;;  %s7771_s1 = inlined_call_operand.vmem [shape: bf16[3,256,256], index: 1, kind: input, shape index: {}]   ;;  %s7772_s2 = inlined_call_operand.vmem [shape: f32[3,1,256], index: 2, kind: input, shape index: {}]   ;;  %s7773_s3 = inlined_call_operand.vmem [shape: bf16[3,256,256], index: 3, kind: input, shape index: {}]   ;;  %s7774_s4 = inlined_call_operand.vmem [shape: f32[3,1,256], index: 4, kind: input, shape index: {}]   ;;  %s7775_s5 = inlined_call_operand.vmem [shape: bf16[256,512], index: 5, kind: input, shape index: {}]   ;;  %s7776_s6 = inlined_call_operand.vmem [shape: bf16[512,512], index: 6, kind: input, shape index: {}]   ;;  %s7777_s7 = inlined_call_operand.vmem [shape: bf16[512,512], index: 7, kind: input, shape index: {}]   ;;  %s7778_s8 = inlined_call_operand.hbm [shape: f32[2,1,512], index: 8, kind: output, shape index: {}]  }
   0x1   :  { %15 = vsyncpa [#allocation3 + $0x1], 0  ;;  %s6045_s27 = smov 0   ;;  %s6047_s28 = smov 0  }
   0x2   :  { %s6049_s29 = smov 0   ;;  %s6051_s30 = smov 0  }
   0x3 LB: > { %s6066_s9 = sadd.s32 4294967295, %s5995_s30   ;;  %s4462_s10 = sadd.s32 4294967294, %s5995_s30   ;;  %s5995_s30 = sphi %s6051_s30, %s7784_s30   ;;  %s5991_s29 = sphi %s6049_s29, %s7783_s29   ;;  %s5987_s28 = sphi %s6047_s28, %s7782_s28   ;;  %s5983_s27 = sphi %s6045_s27, %s7781_s27  }
   0x4   : > { %s6070_s11 = sadd.s32 1, %s5995_s30   ;;  %s201_s12 = sadd.s32 1, %s5991_s29 }
   0x5   : > { %s198_s13 = ssub.s32 %s5995_s30, %s6070_s11  ;;  %p211_p0 = scmp.ne.s32.totalorder %s5991_s29, %s5987_s28 }
   0x6   : > { %p199_p1 = scmp.eq.s32.totalorder %s198_s13, 0  ;;  %p212_p2 = scmp.eq.s32.totalorder %s6066_s9, 1 }
   0x7   : > { %p217_p3 = scmp.ne.s32.totalorder %s5987_s28, %s5983_s27  ;;  %p218_p4 = scmp.eq.s32.totalorder %s4462_s10, 1 }
   0x8   : > { %s6081_s14 = scalar_select %p199_p1, %s5991_s29, %s201_s12  }
   0x9   : > { %p6083_p5 = por %p212_p2, %p211_p0  ;;  %p6087_p6 = por %p218_p4, %p217_p3 }
   0xa   : > { %p4465_p7 = scmp.ge.s32.totalorder %s5995_s30, 1  ;;  %p264_p8 = scmp.lt.s32.totalorder %s5995_s30, 3 }
   0xc   : > { %p265_p9 = pnand %p4465_p7, %p264_p8 }
   0xd   : > { %p297_p10 = scmp.lt.s32.totalorder (!%p265_p9), %s6066_s9, 1  ;;  %s294_s23 = sand.u32 (!%p265_p9), 1, %s5987_s28  }
   0xe   : > { %268 = sbr.rel (%p265_p9) target bundleno = 2186 (0x88a), region = 52  ;;  %s4466_s24 = sshll.u32 (!%p265_p9), %s294_s23, 2 }
   0xf   : > { %s296_s26 = scalar_lea.vmem (!%p265_p9), [#allocation2], %s4466_s24  ;;  %s4389_s19 = scalar_lea.sflag (!%p265_p9), [#allocation3], %s294_s23 }
  0x10   : > { %s4403_s10 = sshll.u32 (!%p265_p9), %s296_s26, 4  ;;  %s4404_s10 = int_to_ptr.vmem [resolvable:$true] %s4403_s10 }
  0x13   : > { %v5159_v0 = vld [vmem:[%s7771_s1 + $0x74] ss:$8 sps:$4 sm:$0xff]   ;;  %v5161_v1 = vld [vmem:[%s7771_s1 + $0x70] ss:$8 sps:$4 sm:$0xff]   ;;  %v5162_v2 = vld [vmem:[%s7771_s1 + $0x64] ss:$8 sps:$4 sm:$0xff]   ;;  %v340_v9 = vlaneseq }
  0x14   : > { %532 = vmatprep.subr.bf16.mxu0 %v5159_v0  ;;  %v5164_v3 = vld [vmem:[%s7771_s1 + $0x60] ss:$8 sps:$4 sm:$0xff]   ;;  %v5165_v4 = vld [vmem:[%s7771_s1 + $0x54] ss:$8 sps:$4 sm:$0xff]   ;;  %v5167_v5 = vld [vmem:[%s7771_s1 + $0x50] ss:$8 sps:$4 sm:$0xff]  }
  0x15   : > { %533 = vmatpush1.bf16.msra.mxu0 %v5161_v1  ;;  %v5168_v6 = vld [vmem:[%s7771_s1 + $0x44] ss:$8 sps:$4 sm:$0xff]   ;;  %v5997_v7 = vmov 1966171168   ;;  %v5170_v10 = vld [vmem:[%s7771_s1 + $0x40] ss:$8 sps:$4 sm:$0xff]  }
  0x16   : > { %534 = vmatprep.subr.bf16.mxu0 %v5162_v2  ;;  %v338_v8 = vunpack.c.l.s4 %v5997_v7  ;;  %s298_s20 = scalar_select %p297_p10, %s6066_s9, 1  ;;  %v5171_v11 = vld [vmem:[%s7771_s1 + $0x34] ss:$8 sps:$4 sm:$0xff]   ;;  %v6123_v13 = vshrl.u32 %v340_v9, 7  ;;  %v5173_v14 = vld [vmem:[%s7771_s1 + $0x30] ss:$8 sps:$4 sm:$0xff]  }
  0x17   : > { %v5174_v15 = vld [vmem:[%s7771_s1 + $0x24] ss:$8 sps:$4 sm:$0xff]   ;;  %v5176_v17 = vld [vmem:[%s7771_s1 + $0x20] ss:$8 sps:$4 sm:$0xff]   ;;  %v5177_v18 = vld [vmem:[%s7771_s1 + $0x14] ss:$8 sps:$4 sm:$0xff]  }
  0x18   : > { %v339_v12 = vunpack.c.0.s8 %v338_v8  ;;  %s4467_s25 = sshll.u32 %s298_s20, 1  ;;  %v5179_v19 = vld [vmem:[%s7771_s1 + $0x10] ss:$8 sps:$4 sm:$0xff]   ;;  %v5207_v21 = vld [vmem:[%s7773_s3 + $0x74] ss:$8 sps:$4 sm:$0xff]  }
  0x19   : > { %535 = vmatpush1.bf16.msra.mxu0 %v5164_v3  ;;  %s6134_s17 = scalar_lea.vmem %s7770_s0, %s4467_s25  ;;  %v5209_v22 = vld [vmem:[%s7773_s3 + $0x70] ss:$8 sps:$4 sm:$0xff]   ;;  %v5210_v23 = vld [vmem:[%s7773_s3 + $0x64] ss:$8 sps:$4 sm:$0xff]   ;;  %785 = vmatprep.subr.bf16.mxu1 %v5207_v21  ;;  %v5212_v26 = vld [vmem:[%s7773_s3 + $0x60] ss:$8 sps:$4 sm:$0xff]  }
  0x1a   : > { %536 = vmatprep.subr.bf16.mxu0 %v5165_v4  ;;  %v6137_v16 = vsub.s32 %v339_v12, %v6123_v13  ;;  %v6149_v20 = vld.sshfl [vmem:[%s6134_s17] sm:$0x11 pattern:$0x75316420]  ;;  %v5180_v24 = vld [vmem:[%s7771_s1 + $0x4] ss:$8 sps:$4 sm:$0xff]   ;;  %786 = vmatpush1.bf16.msra.mxu1 %v5209_v22 }
  0x1b   : > { %v344_v25 = vcombine.high %v6149_v20, %v6149_v20  ;;  %787 = vmatprep.subr.bf16.mxu1 %v5210_v23  ;;  %v5213_v28 = vld [vmem:[%s7773_s3 + $0x54] ss:$8 sps:$4 sm:$0xff]   ;;  %v5182_v29 = vld [vmem:[%s7771_s1] ss:$8 sps:$4 sm:$0xff]   ;;  %v5215_v31 = vld [vmem:[%s7773_s3 + $0x50] ss:$8 sps:$4 sm:$0xff]  }
  0x1c   : > { %v5183_v30 = vld [vmem:[%s7771_s1 + $0xf4] ss:$8 sps:$4 sm:$0xff]   ;;  %v5216_v32 = vld [vmem:[%s7773_s3 + $0x44] ss:$8 sps:$4 sm:$0xff]   ;;  %v5185_v33 = vld [vmem:[%s7771_s1 + $0xf0] ss:$8 sps:$4 sm:$0xff]   ;;  %v351_v0 = vrot.slane %v6149_v20, %v6137_v16 }
  0x1d   : > { %537 = vmatpush1.bf16.msra.mxu0 %v5167_v5  ;;  %v358_v27 = vrot.slane %v344_v25, %v6137_v16  ;;  %v5186_v34 = vld [vmem:[%s7771_s1 + $0xe4] ss:$8 sps:$4 sm:$0xff]   ;;  %v5218_v35 = vld [vmem:[%s7773_s3 + $0x40] ss:$8 sps:$4 sm:$0xff]   ;;  %v5219_v36 = vld [vmem:[%s7773_s3 + $0x34] ss:$8 sps:$4 sm:$0xff]  }
  0x1e   : > { %538 = vmatprep.subr.bf16.mxu0 %v5168_v6  ;;  %788 = vmatpush1.bf16.msra.mxu1 %v5212_v26  ;;  %v5188_v37 = vld [vmem:[%s7771_s1 + $0xe0] ss:$8 sps:$4 sm:$0xff]   ;;  %v5189_v38 = vld [vmem:[%s7771_s1 + $0xd4] ss:$8 sps:$4 sm:$0xff]   ;;  %v5191_v39 = vld [vmem:[%s7771_s1 + $0xd0] ss:$8 sps:$4 sm:$0xff]  }
  0x1f   : > { %564 = vmatprep.mubr.bf16.mxu0 %v358_v27  ;;  %789 = vmatprep.subr.bf16.mxu1 %v5213_v28  ;;  %v5221_v40 = vld [vmem:[%s7773_s3 + $0x30] ss:$8 sps:$4 sm:$0xff]   ;;  %v5192_v41 = vld [vmem:[%s7771_s1 + $0xc4] ss:$8 sps:$4 sm:$0xff]   ;;  %v5224_v43 = vld [vmem:[%s7773_s3 + $0x20] ss:$8 sps:$4 sm:$0xff]  }
  0x20   : > { %v5222_v42 = vld [vmem:[%s7773_s3 + $0x24] ss:$8 sps:$4 sm:$0xff]   ;;  %v5225_v44 = vld [vmem:[%s7773_s3 + $0x14] ss:$8 sps:$4 sm:$0xff]   ;;  %v5194_v45 = vld [vmem:[%s7771_s1 + $0xc0] ss:$8 sps:$4 sm:$0xff]  }
  0x21   : > { %539 = vmatpush1.bf16.msra.mxu0 %v5170_v10  ;;  %v5195_v46 = vld [vmem:[%s7771_s1 + $0xb4] ss:$8 sps:$4 sm:$0xff]   ;;  %v5227_v47 = vld [vmem:[%s7773_s3 + $0x10] ss:$8 sps:$4 sm:$0xff]   ;;  %v5228_v48 = vld [vmem:[%s7773_s3 + $0x4] ss:$8 sps:$4 sm:$0xff]  }
  0x22   : > { %540 = vmatprep.subr.bf16.mxu0 %v5171_v11  ;;  %790 = vmatpush1.bf16.msra.mxu1 %v5215_v31  ;;  %v5197_v49 = vld [vmem:[%s7771_s1 + $0xb0] ss:$8 sps:$4 sm:$0xff]   ;;  %v5198_v50 = vld [vmem:[%s7771_s1 + $0xa4] ss:$8 sps:$4 sm:$0xff]   ;;  %v5230_v51 = vld [vmem:[%s7773_s3] ss:$8 sps:$4 sm:$0xff]  }
  0x23   : > { %791 = vmatprep.subr.bf16.mxu1 %v5216_v32  ;;  %v5231_v52 = vld [vmem:[%s7773_s3 + $0xf4] ss:$8 sps:$4 sm:$0xff]   ;;  %v5200_v53 = vld [vmem:[%s7771_s1 + $0xa0] ss:$8 sps:$4 sm:$0xff]   ;;  %v5233_v55 = vld [vmem:[%s7773_s3 + $0xf0] ss:$8 sps:$4 sm:$0xff]  }
  0x24   : > { %v5201_v54 = vld [vmem:[%s7771_s1 + $0x94] ss:$8 sps:$4 sm:$0xff]   ;;  %v5234_v56 = vld [vmem:[%s7773_s3 + $0xe4] ss:$8 sps:$4 sm:$0xff]   ;;  %v5203_v57 = vld [vmem:[%s7771_s1 + $0x90] ss:$8 sps:$4 sm:$0xff]  }
  0x25   : > { %541 = vmatpush1.bf16.msra.mxu0 %v5173_v14  ;;  %v5204_v58 = vld [vmem:[%s7771_s1 + $0x84] ss:$8 sps:$4 sm:$0xff]   ;;  %v5236_v59 = vld [vmem:[%s7773_s3 + $0xe0] ss:$8 sps:$4 sm:$0xff]   ;;  %v5237_v60 = vld [vmem:[%s7773_s3 + $0xd4] ss:$8 sps:$4 sm:$0xff]  }
  0x26   : > { %542 = vmatprep.subr.bf16.mxu0 %v5174_v15  ;;  %792 = vmatpush1.bf16.msra.mxu1 %v5218_v35  ;;  %v5206_v61 = vld [vmem:[%s7771_s1 + $0x80] ss:$8 sps:$4 sm:$0xff]   ;;  %v5239_v62 = vld [vmem:[%s7773_s3 + $0xd0] ss:$8 sps:$4 sm:$0xff]   ;;  %v5240_v63 = vld [vmem:[%s7773_s3 + $0xc4] ss:$8 sps:$4 sm:$0xff]  }
  0x27   : > { %793 = vmatprep.subr.bf16.mxu1 %v5219_v36  ;;  %v5242_v1 = vld [vmem:[%s7773_s3 + $0xc0] ss:$8 sps:$4 sm:$0xff]   ;;  %v5243_v2 = vld [vmem:[%s7773_s3 + $0xb4] ss:$8 sps:$4 sm:$0xff]   ;;  %v5245_v3 = vld [vmem:[%s7773_s3 + $0xb0] ss:$8 sps:$4 sm:$0xff]  }
  0x28   : > { %v5246_v4 = vld [vmem:[%s7773_s3 + $0xa4] ss:$8 sps:$4 sm:$0xff]   ;;  %v5248_v5 = vld [vmem:[%s7773_s3 + $0xa0] ss:$8 sps:$4 sm:$0xff]   ;;  %v5249_v6 = vld [vmem:[%s7773_s3 + $0x94] ss:$8 sps:$4 sm:$0xff]  }
  0x29   : > { %543 = vmatpush1.bf16.msra.mxu0 %v5176_v17  ;;  %v5251_v7 = vld [vmem:[%s7773_s3 + $0x90] ss:$8 sps:$4 sm:$0xff]   ;;  %v5252_v8 = vld [vmem:[%s7773_s3 + $0x84] ss:$8 sps:$4 sm:$0xff]   ;;  %v5254_v10 = vld [vmem:[%s7773_s3 + $0x80] ss:$8 sps:$4 sm:$0xff]  }
  0x2a   : > { %544 = vmatprep.subr.bf16.mxu0 %v5177_v18  ;;  %794 = vmatpush1.bf16.msra.mxu1 %v5221_v40  ;;  %v5255_v11 = vld [vmem:[%s7771_s1 + $0x170] ss:$8 sps:$4 sm:$0xff]   ;;  %v5257_v12 = vld [vmem:[%s7771_s1 + $0x174] ss:$8 sps:$4 sm:$0xff]   ;;  %v5260_v14 = vld [vmem:[%s7771_s1 + $0x164] ss:$8 sps:$4 sm:$0xff]  }
  0x2b   : > { %795 = vmatprep.subr.bf16.mxu1 %v5222_v42  ;;  %v5258_v15 = vld [vmem:[%s7771_s1 + $0x160] ss:$8 sps:$4 sm:$0xff]   ;;  %v5263_v17 = vld [vmem:[%s7771_s1 + $0x154] ss:$8 sps:$4 sm:$0xff]   ;;  %v5261_v18 = vld [vmem:[%s7771_s1 + $0x150] ss:$8 sps:$4 sm:$0xff]  }
  0x2c   : > { %v5264_v20 = vld [vmem:[%s7771_s1 + $0x140] ss:$8 sps:$4 sm:$0xff]   ;;  %v5269_v21 = vld [vmem:[%s7771_s1 + $0x134] ss:$8 sps:$4 sm:$0xff]   ;;  %v5267_v22 = vld [vmem:[%s7771_s1 + $0x130] ss:$8 sps:$4 sm:$0xff]  }
  0x2d   : > { %545 = vmatpush1.bf16.msra.mxu0 %v5179_v19  ;;  %v5266_v19 = vld [vmem:[%s7771_s1 + $0x144] ss:$8 sps:$4 sm:$0xff]   ;;  %v5275_v25 = vld [vmem:[%s7771_s1 + $0x114] ss:$8 sps:$4 sm:$0xff]   ;;  %v5273_v26 = vld [vmem:[%s7771_s1 + $0x110] ss:$8 sps:$4 sm:$0xff]  }
  0x2e   : > { %546 = vmatprep.subr.bf16.mxu0 %v5180_v24  ;;  %796 = vmatpush1.bf16.msra.mxu1 %v5224_v43  ;;  %v5272_v23 = vld [vmem:[%s7771_s1 + $0x124] ss:$8 sps:$4 sm:$0xff]   ;;  %v5270_v24 = vld [vmem:[%s7771_s1 + $0x120] ss:$8 sps:$4 sm:$0xff]   ;;  %s5117_s25 = sshll.u32 %s6066_s9, 6  ;;  %s5999_s9 = smov [#allocation2]  }
  0x2f   : > { %797 = vmatprep.subr.bf16.mxu1 %v5225_v44  ;;  %v5278_v27 = vld [vmem:[%s7771_s1 + $0x104] ss:$8 sps:$4 sm:$0xff]   ;;  %v5276_v28 = vld [vmem:[%s7771_s1 + $0x100] ss:$8 sps:$4 sm:$0xff]   ;;  %s4401_s18 = scalar_lea.hbm %s7778_s8, %s5117_s25  ;;  %s5939_s20 = sshll.u32 %s5999_s9, 4  ;;  %s5940_s20 = int_to_ptr.vmem [resolvable:$false] %s5939_s20 }
  0x30   : > { %v5284_v31 = vld [vmem:[%s7771_s1 + $0x1e4] ss:$8 sps:$4 sm:$0xff]   ;;  %v5282_v32 = vld [vmem:[%s7771_s1 + $0x1e0] ss:$8 sps:$4 sm:$0xff]   ;;  %s5941_s21 = scalar_lea.vmem %s5940_s20, 128  ;;  %p5942_p0 = scmp.lt.s32.totalorder %s4404_s10, %s5940_s20 }
  0x31   : > { %547 = vmatpush1.bf16.msra.mxu0 %v5182_v29  ;;  %v5281_v29 = vld [vmem:[%s7771_s1 + $0x1f4] ss:$8 sps:$4 sm:$0xff]   ;;  %v5290_v35 = vld [vmem:[%s7771_s1 + $0x1c4] ss:$8 sps:$4 sm:$0xff]   ;;  %v5288_v36 = vld [vmem:[%s7771_s1 + $0x1c0] ss:$8 sps:$4 sm:$0xff]  }
  0x32   : > { %548 = vmatprep.subr.bf16.mxu0 %v5183_v30  ;;  %798 = vmatpush1.bf16.msra.mxu1 %v5227_v47  ;;  %v5279_v30 = vld [vmem:[%s7771_s1 + $0x1f0] ss:$8 sps:$4 sm:$0xff]  }
  0x33   : > { %799 = vmatprep.subr.bf16.mxu1 %v5228_v48 }
  0x35   : > { %549 = vmatpush2.bf16.msra.mxu0 %v5185_v33  ;;  %v5287_v33 = vld [vmem:[%s7771_s1 + $0x1d4] ss:$8 sps:$4 sm:$0xff]  }
  0x36   : > { %550 = vmatprep.subr.bf16.mxu0 %v5186_v34  ;;  %800 = vmatpush1.bf16.msra.mxu1 %v5230_v51  ;;  %v5285_v34 = vld [vmem:[%s7771_s1 + $0x1d0] ss:$8 sps:$4 sm:$0xff]  }
  0x37   : > { %801 = vmatprep.subr.bf16.mxu1 %v5231_v52 }
  0x39   : > { %551 = vmatpush2.bf16.msra.mxu0 %v5188_v37  ;;  %v6379_v37 = vsub.s32 0, %v6123_v13 }
  0x3a   : > { %552 = vmatprep.subr.bf16.mxu0 %v5189_v38  ;;  %802 = vmatpush2.bf16.msra.mxu1 %v5233_v55  ;;  %v335_v38 = vld [vmem:[%s7772_s2] sm:$0x3]  ;;  %v5291_v55 = vld [vmem:[%s7771_s1 + $0x1b0] ss:$8 sps:$4 sm:$0xff]  }
  0x3b   : > { %803 = vmatprep.subr.bf16.mxu1 %v5234_v56  ;;  %v525_v40 = vrot.slane %v335_v38, %v6379_v37  ;;  %v5296_v56 = vld [vmem:[%s7771_s1 + $0x1a4] ss:$8 sps:$4 sm:$0xff]  }
  0x3d   : > { %553 = vmatpush2.bf16.msra.mxu0 %v5191_v39  ;;  %v6385_v39 = vsub.s32 1, %v6123_v13 }
  0x3e   : > { %554 = vmatprep.subr.bf16.mxu0 %v5192_v41  ;;  %804 = vmatpush2.bf16.msra.mxu1 %v5236_v59  ;;  %v5297_v59 = vld [vmem:[%s7771_s1 + $0x190] ss:$8 sps:$4 sm:$0xff]  }
  0x3f   : > { %805 = vmatprep.subr.bf16.mxu1 %v5237_v60  ;;  %v529_v41 = vrot.slane %v335_v38, %v6385_v39  ;;  %v5302_v60 = vld [vmem:[%s7771_s1 + $0x184] ss:$8 sps:$4 sm:$0xff]  }
  0x41   : > { %555 = vmatpush2.bf16.msra.mxu0 %v5194_v45 }
  0x42   : > { %556 = vmatprep.subr.bf16.mxu0 %v5195_v46  ;;  %806 = vmatpush2.bf16.msra.mxu1 %v5239_v62  ;;  %v5303_v62 = vld [vmem:[%s7773_s3 + $0x170] ss:$8 sps:$4 sm:$0xff]  }
  0x43   : > { %807 = vmatprep.subr.bf16.mxu1 %v5240_v63  ;;  %v5305_v63 = vld [vmem:[%s7773_s3 + $0x174] ss:$8 sps:$4 sm:$0xff]  }
  0x45   : > { %557 = vmatpush2.bf16.msra.mxu0 %v5197_v49 }
  0x46   : > { %558 = vmatprep.subr.bf16.mxu0 %v5198_v50  ;;  %808 = vmatpush2.bf16.msra.mxu1 %v5242_v1  ;;  %v5306_v1 = vld [vmem:[%s7773_s3 + $0x160] ss:$8 sps:$4 sm:$0xff]  }
  0x47   : > { %809 = vmatprep.subr.bf16.mxu1 %v5243_v2  ;;  %v5311_v2 = vld [vmem:[%s7773_s3 + $0x154] ss:$8 sps:$4 sm:$0xff]  }
  0x49   : > { %559 = vmatpush2.bf16.msra.mxu0 %v5200_v53 }
  0x4a   : > { %560 = vmatprep.subr.bf16.mxu0 %v5201_v54  ;;  %810 = vmatpush2.bf16.msra.mxu1 %v5245_v3  ;;  %v5293_v54 = vld [vmem:[%s7771_s1 + $0x1b4] ss:$8 sps:$4 sm:$0xff]   ;;  %v5309_v3 = vld [vmem:[%s7773_s3 + $0x150] ss:$8 sps:$4 sm:$0xff]  }
  0x4b   : > { %811 = vmatprep.subr.bf16.mxu1 %v5246_v4  ;;  %v5314_v4 = vld [vmem:[%s7773_s3 + $0x144] ss:$8 sps:$4 sm:$0xff]  }
  0x4d   : > { %561 = vmatpush2.bf16.msra.mxu0 %v5203_v57  ;;  %v5294_v57 = vld [vmem:[%s7771_s1 + $0x1a0] ss:$8 sps:$4 sm:$0xff]  }
  0x4e   : > { %562 = vmatprep.subr.bf16.mxu0 %v5204_v58  ;;  %812 = vmatpush2.bf16.msra.mxu1 %v5248_v5  ;;  %v5299_v58 = vld [vmem:[%s7771_s1 + $0x194] ss:$8 sps:$4 sm:$0xff]   ;;  %v5312_v5 = vld [vmem:[%s7773_s3 + $0x140] ss:$8 sps:$4 sm:$0xff]  }
  0x4f   : > { %813 = vmatprep.subr.bf16.mxu1 %v5249_v6  ;;  %v5317_v6 = vld [vmem:[%s7773_s3 + $0x134] ss:$8 sps:$4 sm:$0xff]  }
  0x51   : > { %563 = vmatpush2.bf16.msra.mxu0 %v5206_v61  ;;  %v5300_v61 = vld [vmem:[%s7771_s1 + $0x180] ss:$8 sps:$4 sm:$0xff]  }
  0x52   : > { %814 = vmatpush2.bf16.msra.mxu1 %v5251_v7  ;;  %1060 = vmatprep.subr.bf16.mxu0 %v5257_v12  ;;  %v5315_v7 = vld [vmem:[%s7773_s3 + $0x130] ss:$8 sps:$4 sm:$0xff]  }
  0x53   : > { %815 = vmatprep.subr.bf16.mxu1 %v5252_v8  ;;  %v5320_v8 = vld [vmem:[%s7773_s3 + $0x124] ss:$8 sps:$4 sm:$0xff]   ;;  %v5321_v12 = vld [vmem:[%s7773_s3 + $0x110] ss:$8 sps:$4 sm:$0xff]  }
  0x54   : > { %565 = vmatmul.mubr.bf16.vlgmr.msra.gmra.mxu0 %v351_v0  ;;  %v5308_v0 = vld [vmem:[%s7773_s3 + $0x164] ss:$8 sps:$4 sm:$0xff]  }
  0x55   : > { %1061 = vmatpush1.bf16.msra.mxu0 %v5255_v11  ;;  %v5323_v11 = vld [vmem:[%s7773_s3 + $0x114] ss:$8 sps:$4 sm:$0xff]  }
  0x56   : > { %816 = vmatpush2.bf16.msra.mxu1 %v5254_v10  ;;  %1062 = vmatprep.subr.bf16.mxu0 %v5260_v14  ;;  %v5318_v10 = vld [vmem:[%s7773_s3 + $0x120] ss:$8 sps:$4 sm:$0xff]   ;;  %v5326_v14 = vld [vmem:[%s7773_s3 + $0x104] ss:$8 sps:$4 sm:$0xff]  }
  0x57   : > { %1315 = vmatprep.subr.bf16.mxu1 %v5305_v63  ;;  %v5359_v63 = vld [vmem:[%s7771_s1 + $0x254] ss:$8 sps:$4 sm:$0xff]  }
  0x59   : > { %1063 = vmatpush1.bf16.msra.mxu0 %v5258_v15  ;;  %v5324_v15 = vld [vmem:[%s7773_s3 + $0x100] ss:$8 sps:$4 sm:$0xff]  }
  0x5a   : > { %1064 = vmatprep.subr.bf16.mxu0 %v5263_v17  ;;  %v5329_v17 = vld [vmem:[%s7773_s3 + $0x1f4] ss:$8 sps:$4 sm:$0xff]  }
  0x5d   : > { %1065 = vmatpush1.bf16.msra.mxu0 %v5261_v18  ;;  %v5327_v18 = vld [vmem:[%s7773_s3 + $0x1f0] ss:$8 sps:$4 sm:$0xff]  }
  0x5e   : > { %1066 = vmatprep.subr.bf16.mxu0 %v5266_v19  ;;  %v5332_v19 = vld [vmem:[%s7773_s3 + $0x1e4] ss:$8 sps:$4 sm:$0xff]  }
  0x61   : > { %1067 = vmatpush1.bf16.msra.mxu0 %v5264_v20  ;;  %v5330_v20 = vld [vmem:[%s7773_s3 + $0x1e0] ss:$8 sps:$4 sm:$0xff]  }
  0x62   : > { %1068 = vmatprep.subr.bf16.mxu0 %v5269_v21  ;;  %v5335_v21 = vld [vmem:[%s7773_s3 + $0x1d4] ss:$8 sps:$4 sm:$0xff]  }
  0x65   : > { %1069 = vmatpush1.bf16.msra.mxu0 %v5267_v22  ;;  %v5333_v22 = vld [vmem:[%s7773_s3 + $0x1d0] ss:$8 sps:$4 sm:$0xff]  }
  0x66   : > { %1070 = vmatprep.subr.bf16.mxu0 %v5272_v23  ;;  %v5338_v23 = vld [vmem:[%s7773_s3 + $0x1c4] ss:$8 sps:$4 sm:$0xff]  }
  0x69   : > { %1071 = vmatpush1.bf16.msra.mxu0 %v5270_v24  ;;  %v5336_v24 = vld [vmem:[%s7773_s3 + $0x1c0] ss:$8 sps:$4 sm:$0xff]  }
  0x6a   : > { %1072 = vmatprep.subr.bf16.mxu0 %v5275_v25  ;;  %v5341_v25 = vld [vmem:[%s7773_s3 + $0x1b4] ss:$8 sps:$4 sm:$0xff]  }
  0x6d   : > { %1073 = vmatpush1.bf16.msra.mxu0 %v5273_v26  ;;  %v5339_v26 = vld [vmem:[%s7773_s3 + $0x1b0] ss:$8 sps:$4 sm:$0xff]  }
  0x6e   : > { %1074 = vmatprep.subr.bf16.mxu0 %v5278_v27  ;;  %v5344_v27 = vld [vmem:[%s7773_s3 + $0x1a4] ss:$8 sps:$4 sm:$0xff]  }
  0x71   : > { %1075 = vmatpush1.bf16.msra.mxu0 %v5276_v28  ;;  %v5342_v28 = vld [vmem:[%s7773_s3 + $0x1a0] ss:$8 sps:$4 sm:$0xff]  }
  0x72   : > { %1076 = vmatprep.subr.bf16.mxu0 %v5281_v29  ;;  %v5998_v29 = vmov 1983009808  }
  0x75   : > { %1077 = vmatpush2.bf16.msra.mxu0 %v5279_v30  ;;  %v830_v30 = vunpack.c.l.s4 %v5998_v29 }
  0x76   : > { %1078 = vmatprep.subr.bf16.mxu0 %v5284_v31  ;;  %v613_v31 = vld [vmem:[%s7774_s4] sm:$0x3] }
  0x79   : > { %1079 = vmatpush2.bf16.msra.mxu0 %v5282_v32  ;;  %v778_v32 = vrot.slane %v613_v31, %v6379_v37 }
  0x7a   : > { %1080 = vmatprep.subr.bf16.mxu0 %v5287_v33  ;;  %v782_v33 = vrot.slane %v613_v31, %v6385_v39 }
  0x7d   : > { %1081 = vmatpush2.bf16.msra.mxu0 %v5285_v34  ;;  %v831_v34 = vunpack.c.0.s8 %v830_v30 }
  0x7e   : > { %1082 = vmatprep.subr.bf16.mxu0 %v5290_v35 }
  0x81   : > { %1083 = vmatpush2.bf16.msra.mxu0 %v5288_v36 }
  0x82   : > { %1084 = vmatprep.subr.bf16.mxu0 %v5293_v54 }
  0x85   : > { %1085 = vmatpush2.bf16.msra.mxu0 %v5291_v55 }
  0x86   : > { %1086 = vmatprep.subr.bf16.mxu0 %v5296_v56  ;;  %v5347_v56 = vld [vmem:[%s7773_s3 + $0x194] ss:$8 sps:$4 sm:$0xff]  }
  0x89   : > { %1087 = vmatpush2.bf16.msra.mxu0 %v5294_v57  ;;  %v5350_v57 = vld [vmem:[%s7773_s3 + $0x184] ss:$8 sps:$4 sm:$0xff]  }
  0x8a   : > { %1088 = vmatprep.subr.bf16.mxu0 %v5299_v58  ;;  %v5348_v58 = vld [vmem:[%s7773_s3 + $0x180] ss:$8 sps:$4 sm:$0xff]  }
  0x8d   : > { %1089 = vmatpush2.bf16.msra.mxu0 %v5297_v59  ;;  %v5351_v59 = vld [vmem:[%s7771_s1 + $0x270] ss:$8 sps:$4 sm:$0xff]  }
  0x8e   : > { %1090 = vmatprep.subr.bf16.mxu0 %v5302_v60  ;;  %v5353_v60 = vld [vmem:[%s7771_s1 + $0x274] ss:$8 sps:$4 sm:$0xff]  }
  0x91   : > { %1091 = vmatpush2.bf16.msra.mxu0 %v5300_v61  ;;  %v5356_v61 = vld [vmem:[%s7771_s1 + $0x264] ss:$8 sps:$4 sm:$0xff]  }
  0x92   : > { %1590 = vmatprep.subr.bf16.mxu0 %v5353_v60  ;;  %v5414_v60 = vld [vmem:[%s7773_s3 + $0x220] ss:$8 sps:$4 sm:$0xff]  }
 0x114   : > { %v566_v42 = vpop.f32.mrf.mxu0 }
 0x115   : > { %v567_v43 = vadd.f32 %v566_v42, %v525_v40 }
 0x116   : > { %v568_v44 = vpop.f32.mrf.mxu0 }
 0x117   : > { %vm573_vm0 = vcmp.gt.f32.partialorder %v567_v43, 0.0  ;;  %v575_v45 = vmul.f32 0.2, %v567_v43  ;;  %v569_v46 = vadd.f32 %v568_v44, %v529_v41  ;;  %v6503_v41 = vsub.s32 %v831_v34, %v6123_v13 }
 0x118   : > { %v570_v47 = vpop.f32.mrf.mxu0 }
 0x119   : > { %vm574_vm1 = vcmp.gt.f32.partialorder %v569_v46, 0.0  ;;  %v576_v48 = vmul.f32 0.2, %v569_v46  ;;  %v577_v50 = vsel %vm573_vm0, %v567_v43, %v575_v45  ;;  %v5933_v43 = vld [vmem:[%s6134_s17] sm:$0x3]  ;;  %s5935_s17 = scalar_lea.vmem %s4404_s10, 64 }
 0x11a   : > { %v571_v49 = vpop.f32.mrf.mxu0  ;;  %v579_v53 = vpack.c.bf16 %v577_v50, %v577_v50  ;;  %v302_v44 = vunpack.c.l.bf16 %v5933_v43  ;;  %v5390_v43 = vld [vmem:[%s7771_s1 + $0x2a0] ss:$8 sps:$4 sm:$0xff]   ;;  %p5936_p11 = scmp.ne.s32.totalorder %s4404_s10, %s5935_s17  ;;  %p5943_p1 = scmp.lt.s32.totalorder %s5941_s21, %s5935_s17 }
 0x11b   : > { %v578_v51 = vsel %vm574_vm1, %v569_v46, %v576_v48  ;;  %v6508_v49 = vsub.s32 2, %v6123_v13  ;;  %v5345_v13 = vld [vmem:[%s7773_s3 + $0x190] ss:$8 sps:$4 sm:$0xff]  }
 0x11c   : > { %v580_v52 = vpack.c.bf16 %v578_v51, %v578_v51  ;;  %p5937_p12 = pnand %p5936_p11, %p6083_p5  ;;  %p5944_p2 = por %p5943_p1, %p5942_p0 }
 0x11e   : > { %817 = vmatprep.mubr.bf16.mxu1 %v580_v52  ;;  %p5938_p13 = pneg %p5937_p12 }
 0x11f   : > { %818 = vmatmul.mubr.bf16.vlgmr.msra.gmra.mxu1 %v579_v53 }
 0x120   : > { %1316 = vmatpush1.bf16.msra.mxu1 %v5303_v62  ;;  %v5354_v62 = vld [vmem:[%s7771_s1 + $0x260] ss:$8 sps:$4 sm:$0xff]   ;;  %p5945_p3 = pnand %p5944_p2, %p5938_p13 }
 0x121   : > { %1317 = vmatprep.subr.bf16.mxu1 %v5308_v0  ;;  %v5357_v0 = vld [vmem:[%s7771_s1 + $0x250] ss:$8 sps:$4 sm:$0xff]  }
 0x124   : > { %1318 = vmatpush1.bf16.msra.mxu1 %v5306_v1  ;;  %v5362_v1 = vld [vmem:[%s7771_s1 + $0x244] ss:$8 sps:$4 sm:$0xff]  }
 0x125   : > { %1319 = vmatprep.subr.bf16.mxu1 %v5311_v2  ;;  %v5360_v2 = vld [vmem:[%s7771_s1 + $0x240] ss:$8 sps:$4 sm:$0xff]  }
 0x128   : > { %1320 = vmatpush1.bf16.msra.mxu1 %v5309_v3  ;;  %v5365_v3 = vld [vmem:[%s7771_s1 + $0x234] ss:$8 sps:$4 sm:$0xff]  }
 0x129   : > { %1321 = vmatprep.subr.bf16.mxu1 %v5314_v4  ;;  %v5363_v4 = vld [vmem:[%s7771_s1 + $0x230] ss:$8 sps:$4 sm:$0xff]  }
 0x12c   : > { %1322 = vmatpush1.bf16.msra.mxu1 %v5312_v5  ;;  %v5368_v5 = vld [vmem:[%s7771_s1 + $0x224] ss:$8 sps:$4 sm:$0xff]  }
 0x12d   : > { %1323 = vmatprep.subr.bf16.mxu1 %v5317_v6  ;;  %v5366_v6 = vld [vmem:[%s7771_s1 + $0x220] ss:$8 sps:$4 sm:$0xff]  }
 0x130   : > { %1324 = vmatpush1.bf16.msra.mxu1 %v5315_v7  ;;  %v5371_v7 = vld [vmem:[%s7771_s1 + $0x214] ss:$8 sps:$4 sm:$0xff]  }
 0x131   : > { %1325 = vmatprep.subr.bf16.mxu1 %v5320_v8  ;;  %v5369_v8 = vld [vmem:[%s7771_s1 + $0x210] ss:$8 sps:$4 sm:$0xff]  }
 0x134   : > { %1326 = vmatpush1.bf16.msra.mxu1 %v5318_v10  ;;  %v5374_v10 = vld [vmem:[%s7771_s1 + $0x204] ss:$8 sps:$4 sm:$0xff]  }
 0x135   : > { %1327 = vmatprep.subr.bf16.mxu1 %v5323_v11  ;;  %v5372_v11 = vld [vmem:[%s7771_s1 + $0x200] ss:$8 sps:$4 sm:$0xff]  }
 0x138   : > { %1328 = vmatpush1.bf16.msra.mxu1 %v5321_v12  ;;  %v5377_v12 = vld [vmem:[%s7771_s1 + $0x2f4] ss:$8 sps:$4 sm:$0xff]  }
 0x139   : > { %1329 = vmatprep.subr.bf16.mxu1 %v5326_v14  ;;  %v5375_v14 = vld [vmem:[%s7771_s1 + $0x2f0] ss:$8 sps:$4 sm:$0xff]  }
 0x13c   : > { %1330 = vmatpush1.bf16.msra.mxu1 %v5324_v15  ;;  %v5380_v15 = vld [vmem:[%s7771_s1 + $0x2e4] ss:$8 sps:$4 sm:$0xff]  }
 0x13d   : > { %1331 = vmatprep.subr.bf16.mxu1 %v5329_v17  ;;  %v5378_v17 = vld [vmem:[%s7771_s1 + $0x2e0] ss:$8 sps:$4 sm:$0xff]  }
 0x140   : > { %1332 = vmatpush2.bf16.msra.mxu1 %v5327_v18  ;;  %v5383_v18 = vld [vmem:[%s7771_s1 + $0x2d4] ss:$8 sps:$4 sm:$0xff]  }
 0x141   : > { %1333 = vmatprep.subr.bf16.mxu1 %v5332_v19  ;;  %v5381_v19 = vld [vmem:[%s7771_s1 + $0x2d0] ss:$8 sps:$4 sm:$0xff]  }
 0x144   : > { %1334 = vmatpush2.bf16.msra.mxu1 %v5330_v20  ;;  %v5386_v20 = vld [vmem:[%s7771_s1 + $0x2c4] ss:$8 sps:$4 sm:$0xff]  }
 0x145   : > { %1335 = vmatprep.subr.bf16.mxu1 %v5335_v21  ;;  %v5384_v21 = vld [vmem:[%s7771_s1 + $0x2c0] ss:$8 sps:$4 sm:$0xff]  }
 0x148   : > { %1336 = vmatpush2.bf16.msra.mxu1 %v5333_v22  ;;  %v4564_v22 = vld [vmem:[%s7772_s2 + $0x2] sm:$0x3] }
 0x149   : > { %1337 = vmatprep.subr.bf16.mxu1 %v5338_v23  ;;  %v1053_v23 = vrot.slane %v4564_v22, %v6379_v37 }
 0x14c   : > { %1338 = vmatpush2.bf16.msra.mxu1 %v5336_v24  ;;  %v1057_v24 = vrot.slane %v4564_v22, %v6385_v39 }
 0x14d   : > { %1339 = vmatprep.subr.bf16.mxu1 %v5341_v25 }
 0x150   : > { %1340 = vmatpush2.bf16.msra.mxu1 %v5339_v26 }
 0x151   : > { %1341 = vmatprep.subr.bf16.mxu1 %v5344_v27 }
 0x154   : > { %1342 = vmatpush2.bf16.msra.mxu1 %v5342_v28 }
 0x155   : > { %1343 = vmatprep.subr.bf16.mxu1 %v5347_v56  ;;  %v5410_v56 = vld [vmem:[%s7773_s3 + $0x244] ss:$8 sps:$4 sm:$0xff]  }
 0x158   : > { %1344 = vmatpush2.bf16.msra.mxu1 %v5345_v13  ;;  %v5408_v13 = vld [vmem:[%s7773_s3 + $0x240] ss:$8 sps:$4 sm:$0xff]  }
 0x159   : > { %1345 = vmatprep.subr.bf16.mxu1 %v5350_v57  ;;  %v5413_v57 = vld [vmem:[%s7773_s3 + $0x234] ss:$8 sps:$4 sm:$0xff]  }
 0x15c   : > { %1346 = vmatpush2.bf16.msra.mxu1 %v5348_v58  ;;  %v5411_v58 = vld [vmem:[%s7773_s3 + $0x230] ss:$8 sps:$4 sm:$0xff]  }
 0x1df   : > { %v819_v35 = vpop.f32.mrf.mxu1 }
 0x1e0   : > { %v820_v38 = vadd.f32 %v819_v35, %v778_v32 }
 0x1e1   : > { %v821_v36 = vpop.f32.mrf.mxu1 }
 0x1e2   : > { %v822_v40 = vadd.f32 %v821_v36, %v782_v33 }
 0x1e3   : > { %v823_v42 = vpop.f32.mrf.mxu1 }
 0x1e4   : > { %v828_v45 = vcombine.low %v820_v38, %v822_v40  ;;  %v5389_v38 = vld [vmem:[%s7771_s1 + $0x2b4] ss:$8 sps:$4 sm:$0xff]   ;;  %v5387_v40 = vld [vmem:[%s7771_s1 + $0x2b0] ss:$8 sps:$4 sm:$0xff]   ;;  %v5392_v42 = vld [vmem:[%s7771_s1 + $0x2a4] ss:$8 sps:$4 sm:$0xff]  }
 0x1e5   : > { %v824_v46 = vpop.f32.mrf.mxu1 }
 0x1e6   : > { %v835_v47 = vrot.slane %v828_v45, %v6503_v41  ;;  %v5393_v45 = vld [vmem:[%s7771_s1 + $0x290] ss:$8 sps:$4 sm:$0xff]   ;;  %v5398_v46 = vld [vmem:[%s7771_s1 + $0x284] ss:$8 sps:$4 sm:$0xff]  }
 0x1e8   : > { %v837_v48 = vadd.f32 %v835_v47, %v302_v44  ;;  %v5395_v44 = vld [vmem:[%s7771_s1 + $0x294] ss:$8 sps:$4 sm:$0xff]   ;;  %v5396_v47 = vld [vmem:[%s7771_s1 + $0x280] ss:$8 sps:$4 sm:$0xff]  }
 0x1ea   : > { %v839_v50 = vmul.f32 0.2, %v837_v48  ;;  %vm838_vm2 = vcmp.gt.f32.partialorder %v837_v48, 0.0 }
 0x1ec   : > { %v6510_v51 = vsel %vm838_vm2, %v837_v48, %v839_v50  ;;  %v5399_v48 = vld [vmem:[%s7773_s3 + $0x270] ss:$8 sps:$4 sm:$0xff]   ;;  %v5401_v50 = vld [vmem:[%s7773_s3 + $0x274] ss:$8 sps:$4 sm:$0xff]  }
 0x1ed   : > { %v849_v52 = vrot.slane %v6510_v51, %v6508_v49  ;;  %v845_v53 = vrot.slane %v6510_v51, %v6379_v37  ;;  %1845 = vmatprep.subr.bf16.mxu1 %v5401_v50  ;;  %v5473_v50 = vld [vmem:[%s7775_s5 + $0x64] ss:$16 sps:$4 sm:$0xff]  }
 0x1ef   : > { %v853_v54 = vpack.c.bf16 %v849_v52, %v849_v52  ;;  %v852_v55 = vpack.c.bf16 %v845_v53, %v845_v53  ;;  %v5404_v52 = vld [vmem:[%s7773_s3 + $0x264] ss:$8 sps:$4 sm:$0xff]   ;;  %v5402_v53 = vld [vmem:[%s7773_s3 + $0x260] ss:$8 sps:$4 sm:$0xff]  }
 0x1f1   : > { %1092 = vmatprep.mubr.bf16.mxu0 %v853_v54  ;;  %v5407_v54 = vld [vmem:[%s7773_s3 + $0x254] ss:$8 sps:$4 sm:$0xff]  }
 0x1f2   : > { %1093 = vmatmul.mubr.bf16.vlgmr.msra.gmra.mxu0 %v852_v55  ;;  %v5405_v55 = vld [vmem:[%s7773_s3 + $0x250] ss:$8 sps:$4 sm:$0xff]  }
 0x1f3   : > { %1591 = vmatpush1.bf16.msra.mxu0 %v5351_v59  ;;  %v5416_v59 = vld [vmem:[%s7773_s3 + $0x224] ss:$8 sps:$4 sm:$0xff]  }
 0x1f4   : > { %1592 = vmatprep.subr.bf16.mxu0 %v5356_v61  ;;  %v5419_v61 = vld [vmem:[%s7773_s3 + $0x214] ss:$8 sps:$4 sm:$0xff]  }
 0x1f7   : > { %1593 = vmatpush1.bf16.msra.mxu0 %v5354_v62  ;;  %v5417_v62 = vld [vmem:[%s7773_s3 + $0x210] ss:$8 sps:$4 sm:$0xff]  }
 0x1f8   : > { %1594 = vmatprep.subr.bf16.mxu0 %v5359_v63  ;;  %v5422_v63 = vld [vmem:[%s7773_s3 + $0x204] ss:$8 sps:$4 sm:$0xff]  }
 0x1fb   : > { %1595 = vmatpush1.bf16.msra.mxu0 %v5357_v0  ;;  %v5420_v0 = vld [vmem:[%s7773_s3 + $0x200] ss:$8 sps:$4 sm:$0xff]  }
 0x1fc   : > { %1596 = vmatprep.subr.bf16.mxu0 %v5362_v1  ;;  %v5425_v1 = vld [vmem:[%s7773_s3 + $0x2f4] ss:$8 sps:$4 sm:$0xff]  }
 0x1ff   : > { %1597 = vmatpush1.bf16.msra.mxu0 %v5360_v2  ;;  %v5423_v2 = vld [vmem:[%s7773_s3 + $0x2f0] ss:$8 sps:$4 sm:$0xff]  }
 0x200   : > { %1598 = vmatprep.subr.bf16.mxu0 %v5365_v3  ;;  %v5428_v3 = vld [vmem:[%s7773_s3 + $0x2e4] ss:$8 sps:$4 sm:$0xff]  }
 0x203   : > { %1599 = vmatpush1.bf16.msra.mxu0 %v5363_v4  ;;  %v5426_v4 = vld [vmem:[%s7773_s3 + $0x2e0] ss:$8 sps:$4 sm:$0xff]  }
 0x204   : > { %1600 = vmatprep.subr.bf16.mxu0 %v5368_v5  ;;  %v5431_v5 = vld [vmem:[%s7773_s3 + $0x2d4] ss:$8 sps:$4 sm:$0xff]  }
 0x207   : > { %1601 = vmatpush1.bf16.msra.mxu0 %v5366_v6  ;;  %v5429_v6 = vld [vmem:[%s7773_s3 + $0x2d0] ss:$8 sps:$4 sm:$0xff]  }
 0x208   : > { %1602 = vmatprep.subr.bf16.mxu0 %v5371_v7  ;;  %v5434_v7 = vld [vmem:[%s7773_s3 + $0x2c4] ss:$8 sps:$4 sm:$0xff]  }
 0x20b   : > { %1603 = vmatpush1.bf16.msra.mxu0 %v5369_v8  ;;  %v5432_v8 = vld [vmem:[%s7773_s3 + $0x2c0] ss:$8 sps:$4 sm:$0xff]  }
 0x20c   : > { %1604 = vmatprep.subr.bf16.mxu0 %v5374_v10  ;;  %v5437_v10 = vld [vmem:[%s7773_s3 + $0x2b4] ss:$8 sps:$4 sm:$0xff]  }
 0x20f   : > { %1605 = vmatpush1.bf16.msra.mxu0 %v5372_v11  ;;  %v5435_v11 = vld [vmem:[%s7773_s3 + $0x2b0] ss:$8 sps:$4 sm:$0xff]  }
 0x210   : > { %1606 = vmatprep.subr.bf16.mxu0 %v5377_v12  ;;  %v5440_v12 = vld [vmem:[%s7773_s3 + $0x2a4] ss:$8 sps:$4 sm:$0xff]  }
 0x213   : > { %1607 = vmatpush2.bf16.msra.mxu0 %v5375_v14  ;;  %v5438_v14 = vld [vmem:[%s7773_s3 + $0x2a0] ss:$8 sps:$4 sm:$0xff]  }
 0x214   : > { %1608 = vmatprep.subr.bf16.mxu0 %v5380_v15  ;;  %v4629_v15 = vld [vmem:[%s7774_s4 + $0x2] sm:$0x3] }
 0x217   : > { %1609 = vmatpush2.bf16.msra.mxu0 %v5378_v17  ;;  %v1308_v17 = vrot.slane %v4629_v15, %v6379_v37 }
 0x218   : > { %1610 = vmatprep.subr.bf16.mxu0 %v5383_v18  ;;  %v1312_v18 = vrot.slane %v4629_v15, %v6385_v39 }
 0x21b   : > { %1611 = vmatpush2.bf16.msra.mxu0 %v5381_v19 }
 0x21c   : > { %1612 = vmatprep.subr.bf16.mxu0 %v5386_v20 }
 0x21f   : > { %1613 = vmatpush2.bf16.msra.mxu0 %v5384_v21 }
 0x220   : > { %1614 = vmatprep.subr.bf16.mxu0 %v5389_v38  ;;  %v5447_v38 = vld [vmem:[%s7775_s5 + $0xe0] ss:$16 sps:$4 sm:$0xff]  }
 0x223   : > { %1615 = vmatpush2.bf16.msra.mxu0 %v5387_v40  ;;  %v5449_v40 = vld [vmem:[%s7775_s5 + $0xe4] ss:$16 sps:$4 sm:$0xff]  }
 0x224   : > { %1616 = vmatprep.subr.bf16.mxu0 %v5392_v42  ;;  %v5452_v42 = vld [vmem:[%s7775_s5 + $0xec] ss:$16 sps:$4 sm:$0xff]  }
 0x227   : > { %1617 = vmatpush2.bf16.msra.mxu0 %v5390_v43  ;;  %v5455_v43 = vld [vmem:[%s7775_s5 + $0xc4] ss:$16 sps:$4 sm:$0xff]  }
 0x228   : > { %1618 = vmatprep.subr.bf16.mxu0 %v5395_v44  ;;  %v5453_v44 = vld [vmem:[%s7775_s5 + $0xc0] ss:$16 sps:$4 sm:$0xff]  }
 0x22b   : > { %1619 = vmatpush2.bf16.msra.mxu0 %v5393_v45  ;;  %v5461_v45 = vld [vmem:[%s7775_s5 + $0xa4] ss:$16 sps:$4 sm:$0xff]  }
 0x22c   : > { %1620 = vmatprep.subr.bf16.mxu0 %v5398_v46  ;;  %v5459_v46 = vld [vmem:[%s7775_s5 + $0xa0] ss:$16 sps:$4 sm:$0xff]  }
 0x22f   : > { %1621 = vmatpush2.bf16.msra.mxu0 %v5396_v47  ;;  %v5467_v47 = vld [vmem:[%s7775_s5 + $0x84] ss:$16 sps:$4 sm:$0xff]  }
 0x230   : > { %2298 = vmatprep.subr.bf16.mxu0 %v5449_v40  ;;  %v5504_v40 = vld [vmem:[%s7775_s5 + $0x1c8] ss:$16 sps:$4 sm:$0xff]  }
 0x2b2   : > { %v1094_v25 = vpop.f32.mrf.mxu0 }
 0x2b3   : > { %v1095_v26 = vadd.f32 %v1094_v25, %v1053_v23 }
 0x2b4   : > { %v1096_v27 = vpop.f32.mrf.mxu0 }
 0x2b5   : > { %vm1101_vm3 = vcmp.gt.f32.partialorder %v1095_v26, 0.0  ;;  %v1103_v28 = vmul.f32 0.2, %v1095_v26  ;;  %v1097_v29 = vadd.f32 %v1096_v27, %v1057_v24 }
 0x2b6   : > { %v1098_v30 = vpop.f32.mrf.mxu0 }
 0x2b7   : > { %vm1102_vm4 = vcmp.gt.f32.partialorder %v1097_v29, 0.0  ;;  %v1104_v31 = vmul.f32 0.2, %v1097_v29  ;;  %v1105_v32 = vsel %vm1101_vm3, %v1095_v26, %v1103_v28 }
 0x2b8   : > { %v1099_v33 = vpop.f32.mrf.mxu0  ;;  %v1107_v36 = vpack.c.bf16 %v1105_v32, %v1105_v32 }
 0x2b9   : > { %v1106_v34 = vsel %vm1102_vm4, %v1097_v29, %v1104_v31 }
 0x2ba   : > { %v1108_v35 = vpack.c.bf16 %v1106_v34, %v1106_v34  ;;  %v5443_v34 = vld [vmem:[%s7773_s3 + $0x294] ss:$8 sps:$4 sm:$0xff]  }
 0x2bc   : > { %1347 = vmatprep.mubr.bf16.mxu1 %v1108_v35  ;;  %v5446_v35 = vld [vmem:[%s7773_s3 + $0x284] ss:$8 sps:$4 sm:$0xff]  }
 0x2bd   : > { %1348 = vmatmul.mubr.bf16.vlgmr.msra.gmra.mxu1 %v1107_v36  ;;  %v5444_v36 = vld [vmem:[%s7773_s3 + $0x280] ss:$8 sps:$4 sm:$0xff]  }
 0x2be   : > { %1846 = vmatpush1.bf16.msra.mxu1 %v5399_v48  ;;  %v5465_v48 = vld [vmem:[%s7775_s5 + $0x80] ss:$16 sps:$4 sm:$0xff]  }
 0x2bf   : > { %1847 = vmatprep.subr.bf16.mxu1 %v5404_v52  ;;  %v5471_v52 = vld [vmem:[%s7775_s5 + $0x60] ss:$16 sps:$4 sm:$0xff]  }
 0x2c2   : > { %1848 = vmatpush1.bf16.msra.mxu1 %v5402_v53  ;;  %v5479_v53 = vld [vmem:[%s7775_s5 + $0x44] ss:$16 sps:$4 sm:$0xff]  }
 0x2c3   : > { %1849 = vmatprep.subr.bf16.mxu1 %v5407_v54  ;;  %v5477_v54 = vld [vmem:[%s7775_s5 + $0x40] ss:$16 sps:$4 sm:$0xff]  }
 0x2c6   : > { %1850 = vmatpush1.bf16.msra.mxu1 %v5405_v55  ;;  %v5485_v55 = vld [vmem:[%s7775_s5 + $0x24] ss:$16 sps:$4 sm:$0xff]  }
 0x2c7   : > { %1851 = vmatprep.subr.bf16.mxu1 %v5410_v56  ;;  %v5483_v56 = vld [vmem:[%s7775_s5 + $0x20] ss:$16 sps:$4 sm:$0xff]  }
 0x2ca   : > { %1852 = vmatpush1.bf16.msra.mxu1 %v5408_v13  ;;  %v5491_v13 = vld [vmem:[%s7775_s5 + $0x4] ss:$16 sps:$4 sm:$0xff]  }
 0x2cb   : > { %1853 = vmatprep.subr.bf16.mxu1 %v5413_v57  ;;  %v5489_v57 = vld [vmem:[%s7775_s5] ss:$16 sps:$4 sm:$0xff]  }
 0x2ce   : > { %1854 = vmatpush1.bf16.msra.mxu1 %v5411_v58  ;;  %v5497_v58 = vld [vmem:[%s7775_s5 + $0x1e4] ss:$16 sps:$4 sm:$0xff]  }
 0x2cf   : > { %1855 = vmatprep.subr.bf16.mxu1 %v5416_v59  ;;  %v5495_v59 = vld [vmem:[%s7775_s5 + $0x1e0] ss:$16 sps:$4 sm:$0xff]  }
 0x2d2   : > { %1856 = vmatpush1.bf16.msra.mxu1 %v5414_v60  ;;  %v5503_v60 = vld [vmem:[%s7775_s5 + $0x1c4] ss:$16 sps:$4 sm:$0xff]  }
 0x2d3   : > { %1857 = vmatprep.subr.bf16.mxu1 %v5419_v61  ;;  %v5501_v61 = vld [vmem:[%s7775_s5 + $0x1c0] ss:$16 sps:$4 sm:$0xff]  }
 0x2d6   : > { %1858 = vmatpush1.bf16.msra.mxu1 %v5417_v62  ;;  %v5509_v62 = vld [vmem:[%s7775_s5 + $0x1a4] ss:$16 sps:$4 sm:$0xff]  }
 0x2d7   : > { %1859 = vmatprep.subr.bf16.mxu1 %v5422_v63  ;;  %v5507_v63 = vld [vmem:[%s7775_s5 + $0x1a0] ss:$16 sps:$4 sm:$0xff]  }
 0x2da   : > { %1860 = vmatpush1.bf16.msra.mxu1 %v5420_v0  ;;  %v5515_v0 = vld [vmem:[%s7775_s5 + $0x184] ss:$16 sps:$4 sm:$0xff]  }
 0x2db   : > { %1861 = vmatprep.subr.bf16.mxu1 %v5425_v1  ;;  %v5513_v1 = vld [vmem:[%s7775_s5 + $0x180] ss:$16 sps:$4 sm:$0xff]  }
 0x2de   : > { %1862 = vmatpush2.bf16.msra.mxu1 %v5423_v2  ;;  %v4694_v2 = vld [vmem:[%s7772_s2 + $0x4] sm:$0x3] }
 0x2df   : > { %1863 = vmatprep.subr.bf16.mxu1 %v5428_v3  ;;  %v1583_v3 = vrot.slane %v4694_v2, %v6379_v37 }
 0x2e2   : > { %1864 = vmatpush2.bf16.msra.mxu1 %v5426_v4  ;;  %v1587_v4 = vrot.slane %v4694_v2, %v6385_v39 }
 0x2e3   : > { %1865 = vmatprep.subr.bf16.mxu1 %v5431_v5 }
 0x2e6   : > { %1866 = vmatpush2.bf16.msra.mxu1 %v5429_v6 }
 0x2e7   : > { %1867 = vmatprep.subr.bf16.mxu1 %v5434_v7 }
 0x2ea   : > { %1868 = vmatpush2.bf16.msra.mxu1 %v5432_v8 }
 0x2eb   : > { %1869 = vmatprep.subr.bf16.mxu1 %v5437_v10 }
 0x2ee   : > { %1870 = vmatpush2.bf16.msra.mxu1 %v5435_v11 }
 0x2ef   : > { %1871 = vmatprep.subr.bf16.mxu1 %v5440_v12 }
 0x2f2   : > { %1872 = vmatpush2.bf16.msra.mxu1 %v5438_v14 }
 0x2f3   : > { %1873 = vmatprep.subr.bf16.mxu1 %v5443_v34  ;;  %v5494_v34 = vld [vmem:[%s7775_s5 + $0xc] ss:$16 sps:$4 sm:$0xff]  }
 0x37d   : > { %v1349_v19 = vpop.f32.mrf.mxu1 }
 0x37e   : > { %v1350_v21 = vadd.f32 %v1349_v19, %v1308_v17  ;;  %v5450_v19 = vld [vmem:[%s7775_s5 + $0xe8] ss:$16 sps:$4 sm:$0xff]  }
 0x37f   : > { %v1351_v20 = vpop.f32.mrf.mxu1 }
 0x380   : > { %v1352_v22 = vadd.f32 %v1351_v20, %v1312_v18 }
 0x381   : > { %v1353_v23 = vpop.f32.mrf.mxu1 }
 0x382   : > { %v1358_v24 = vcombine.low %v1350_v21, %v1352_v22  ;;  %v5458_v21 = vld [vmem:[%s7775_s5 + $0xcc] ss:$16 sps:$4 sm:$0xff]   ;;  %v5456_v22 = vld [vmem:[%s7775_s5 + $0xc8] ss:$16 sps:$4 sm:$0xff]  }
 0x383   : > { %v1354_v25 = vpop.f32.mrf.mxu1  ;;  %v5464_v23 = vld [vmem:[%s7775_s5 + $0xac] ss:$16 sps:$4 sm:$0xff]  }
 0x384   : > { %v1365_v26 = vrot.slane %v1358_v24, %v6503_v41  ;;  %v5462_v24 = vld [vmem:[%s7775_s5 + $0xa8] ss:$16 sps:$4 sm:$0xff]   ;;  %v5470_v25 = vld [vmem:[%s7775_s5 + $0x8c] ss:$16 sps:$4 sm:$0xff]  }
 0x386   : > { %v1367_v27 = vadd.f32 %v1365_v26, %v6510_v51  ;;  %v5441_v51 = vld [vmem:[%s7773_s3 + $0x290] ss:$8 sps:$4 sm:$0xff]  }
 0x387   : > { %1874 = vmatpush2.bf16.msra.mxu1 %v5441_v51  ;;  %v5468_v26 = vld [vmem:[%s7775_s5 + $0x88] ss:$16 sps:$4 sm:$0xff]  }
 0x388   : > { %v1369_v28 = vmul.f32 0.2, %v1367_v27  ;;  %vm1368_vm5 = vcmp.gt.f32.partialorder %v1367_v27, 0.0  ;;  %1875 = vmatprep.subr.bf16.mxu1 %v5446_v35  ;;  %v5492_v51 = vld [vmem:[%s7775_s5 + $0x8] ss:$16 sps:$4 sm:$0xff]  }
 0x389   : > { %v5500_v35 = vld [vmem:[%s7775_s5 + $0x1ec] ss:$16 sps:$4 sm:$0xff]  }
 0x38a   : > { %v6720_v29 = vsel %vm1368_vm5, %v1367_v27, %v1369_v28  ;;  %v5476_v27 = vld [vmem:[%s7775_s5 + $0x6c] ss:$16 sps:$4 sm:$0xff]   ;;  %v5474_v28 = vld [vmem:[%s7775_s5 + $0x68] ss:$16 sps:$4 sm:$0xff]   ;;  %vm4385_vm5 = vcmp.lt.s32.totalorder %v340_v9, 512 }
 0x38b   : > { %v1379_v30 = vrot.slane %v6720_v29, %v6508_v49  ;;  %v1375_v31 = vrot.slane %v6720_v29, %v6379_v37  ;;  %1876 = vmatpush2.bf16.msra.mxu1 %v5444_v36  ;;  %v5498_v36 = vld [vmem:[%s7775_s5 + $0x1e8] ss:$16 sps:$4 sm:$0xff]  }
 0x38c   : > { %2339 = vmatprep.subr.bf16.mxu1 %v5452_v42  ;;  %v5512_v42 = vld [vmem:[%s7775_s5 + $0x1ac] ss:$16 sps:$4 sm:$0xff]  }
 0x38d   : > { %v1383_v32 = vpack.c.bf16 %v1379_v30, %v1379_v30  ;;  %v1382_v33 = vpack.c.bf16 %v1375_v31, %v1375_v31  ;;  %v5482_v30 = vld [vmem:[%s7775_s5 + $0x4c] ss:$16 sps:$4 sm:$0xff]   ;;  %v5480_v31 = vld [vmem:[%s7775_s5 + $0x48] ss:$16 sps:$4 sm:$0xff]  }
 0x38f   : > { %1622 = vmatprep.mubr.bf16.mxu0 %v1383_v32  ;;  %v5488_v32 = vld [vmem:[%s7775_s5 + $0x2c] ss:$16 sps:$4 sm:$0xff]  }
 0x390   : > { %1623 = vmatmul.mubr.bf16.vlgmr.msra.gmra.mxu0 %v1382_v33  ;;  %v5486_v33 = vld [vmem:[%s7775_s5 + $0x28] ss:$16 sps:$4 sm:$0xff]  }
 0x391   : > { %2299 = vmatpush1.bf16.msra.mxu0 %v5447_v38  ;;  %v5506_v38 = vld [vmem:[%s7775_s5 + $0x1cc] ss:$16 sps:$4 sm:$0xff]  }
 0x392   : > { %2300 = vmatprep.subr.bf16.mxu0 %v5455_v43  ;;  %v5510_v43 = vld [vmem:[%s7775_s5 + $0x1a8] ss:$16 sps:$4 sm:$0xff]  }
 0x395   : > { %2301 = vmatpush1.bf16.msra.mxu0 %v5453_v44  ;;  %v5518_v44 = vld [vmem:[%s7775_s5 + $0x18c] ss:$16 sps:$4 sm:$0xff]  }
 0x396   : > { %2302 = vmatprep.subr.bf16.mxu0 %v5461_v45  ;;  %v5516_v45 = vld [vmem:[%s7775_s5 + $0x188] ss:$16 sps:$4 sm:$0xff]  }
 0x399   : > { %2303 = vmatpush1.bf16.msra.mxu0 %v5459_v46  ;;  %v5521_v46 = vld [vmem:[%s7775_s5 + $0x164] ss:$16 sps:$4 sm:$0xff]  }
 0x39a   : > { %2304 = vmatprep.subr.bf16.mxu0 %v5467_v47  ;;  %v5524_v47 = vld [vmem:[%s7775_s5 + $0x16c] ss:$16 sps:$4 sm:$0xff]  }
 0x39d   : > { %2305 = vmatpush1.bf16.msra.mxu0 %v5465_v48  ;;  %v5519_v48 = vld [vmem:[%s7775_s5 + $0x160] ss:$16 sps:$4 sm:$0xff]  }
 0x39e   : > { %2306 = vmatprep.subr.bf16.mxu0 %v5473_v50  ;;  %v5522_v50 = vld [vmem:[%s7775_s5 + $0x168] ss:$16 sps:$4 sm:$0xff]  }
 0x3a1   : > { %2307 = vmatpush1.bf16.msra.mxu0 %v5471_v52  ;;  %v5527_v52 = vld [vmem:[%s7775_s5 + $0x144] ss:$16 sps:$4 sm:$0xff]  }
 0x3a2   : > { %2308 = vmatprep.subr.bf16.mxu0 %v5479_v53  ;;  %v5530_v53 = vld [vmem:[%s7775_s5 + $0x14c] ss:$16 sps:$4 sm:$0xff]  }
 0x3a5   : > { %2309 = vmatpush1.bf16.msra.mxu0 %v5477_v54  ;;  %v5525_v54 = vld [vmem:[%s7775_s5 + $0x140] ss:$16 sps:$4 sm:$0xff]  }
 0x3a6   : > { %2310 = vmatprep.subr.bf16.mxu0 %v5485_v55  ;;  %v5528_v55 = vld [vmem:[%s7775_s5 + $0x148] ss:$16 sps:$4 sm:$0xff]  }
 0x3a9   : > { %2311 = vmatpush1.bf16.msra.mxu0 %v5483_v56  ;;  %v5531_v56 = vld [vmem:[%s7775_s5 + $0x120] ss:$16 sps:$4 sm:$0xff]  }
 0x3aa   : > { %2312 = vmatprep.subr.bf16.mxu0 %v5491_v13  ;;  %v5533_v13 = vld [vmem:[%s7775_s5 + $0x124] ss:$16 sps:$4 sm:$0xff]  }
 0x3ad   : > { %2313 = vmatpush1.bf16.msra.mxu0 %v5489_v57  ;;  %v5534_v57 = vld [vmem:[%s7775_s5 + $0x128] ss:$16 sps:$4 sm:$0xff]  }
 0x3ae   : > { %2314 = vmatprep.subr.bf16.mxu0 %v5497_v58  ;;  %v5536_v58 = vld [vmem:[%s7775_s5 + $0x12c] ss:$16 sps:$4 sm:$0xff]  }
 0x3b1   : > { %2315 = vmatpush2.bf16.msra.mxu0 %v5495_v59  ;;  %v5539_v59 = vld [vmem:[%s7775_s5 + $0x104] ss:$16 sps:$4 sm:$0xff]  }
 0x3b2   : > { %2316 = vmatprep.subr.bf16.mxu0 %v5503_v60  ;;  %v5542_v60 = vld [vmem:[%s7775_s5 + $0x10c] ss:$16 sps:$4 sm:$0xff]  }
 0x3b5   : > { %2317 = vmatpush2.bf16.msra.mxu0 %v5501_v61  ;;  %v5537_v61 = vld [vmem:[%s7775_s5 + $0x100] ss:$16 sps:$4 sm:$0xff]  }
 0x3b6   : > { %2318 = vmatprep.subr.bf16.mxu0 %v5509_v62  ;;  %v5540_v62 = vld [vmem:[%s7775_s5 + $0x108] ss:$16 sps:$4 sm:$0xff]  }
 0x3b9   : > { %2319 = vmatpush2.bf16.msra.mxu0 %v5507_v63  ;;  %v5545_v63 = vld [vmem:[%s7776_s6 + $0xe4] ss:$16 sps:$4 sm:$0xff]  }
 0x3ba   : > { %2320 = vmatprep.subr.bf16.mxu0 %v5515_v0  ;;  %v5548_v0 = vld [vmem:[%s7776_s6 + $0x2e4] ss:$16 sps:$4 sm:$0xff]  }
 0x3bd   : > { %2321 = vmatpush2.bf16.msra.mxu0 %v5513_v1  ;;  %v4759_v1 = vld [vmem:[%s7774_s4 + $0x4] sm:$0x3] }
 0x3be   : > { %2322 = vmatprep.subr.bf16.mxu0 %v5521_v46  ;;  %v1838_v2 = vrot.slane %v4759_v1, %v6379_v37  ;;  %v5587_v46 = vld [vmem:[%s7776_s6 + $0x4] ss:$16 sps:$4 sm:$0xff]  }
 0x3c1   : > { %2323 = vmatpush2.bf16.msra.mxu0 %v5519_v48  ;;  %v5585_v48 = vld [vmem:[%s7776_s6] ss:$16 sps:$4 sm:$0xff]  }
 0x3c2   : > { %2324 = vmatprep.subr.bf16.mxu0 %v5527_v52  ;;  %v5593_v52 = vld [vmem:[%s7776_s6 + $0x1e4] ss:$16 sps:$4 sm:$0xff]  }
 0x3c5   : > { %2325 = vmatpush2.bf16.msra.mxu0 %v5525_v54  ;;  %v5591_v54 = vld [vmem:[%s7776_s6 + $0x1e0] ss:$16 sps:$4 sm:$0xff]  }
 0x3c6   : > { %2326 = vmatprep.subr.bf16.mxu0 %v5533_v13  ;;  %v5602_v13 = vld [vmem:[%s7776_s6 + $0x3c4] ss:$16 sps:$4 sm:$0xff]  }
 0x3c9   : > { %2327 = vmatpush2.bf16.msra.mxu0 %v5531_v56  ;;  %v5599_v56 = vld [vmem:[%s7776_s6 + $0x1c4] ss:$16 sps:$4 sm:$0xff]  }
 0x3ca   : > { %2328 = vmatprep.subr.bf16.mxu0 %v5539_v59  ;;  %v5605_v59 = vld [vmem:[%s7776_s6 + $0x1a4] ss:$16 sps:$4 sm:$0xff]  }
 0x3cd   : > { %2329 = vmatpush2.bf16.msra.mxu0 %v5537_v61  ;;  %v5603_v61 = vld [vmem:[%s7776_s6 + $0x1a0] ss:$16 sps:$4 sm:$0xff]  }
 0x3ce   : > { %3186 = vmatprep.subr.bf16.mxu0 %v5545_v63  ;;  %v5611_v63 = vld [vmem:[%s7776_s6 + $0x184] ss:$16 sps:$4 sm:$0xff]  }
 0x450   : > { %v1624_v5 = vpop.f32.mrf.mxu0 }
 0x451   : > { %v1625_v6 = vadd.f32 %v1624_v5, %v1583_v3  ;;  %v1842_v3 = vrot.slane %v4759_v1, %v6385_v39  ;;  %v5609_v1 = vld [vmem:[%s7776_s6 + $0x180] ss:$16 sps:$4 sm:$0xff]  }
 0x452   : > { %v1626_v7 = vpop.f32.mrf.mxu0 }
 0x453   : > { %vm1631_vm6 = vcmp.gt.f32.partialorder %v1625_v6, 0.0  ;;  %v1633_v8 = vmul.f32 0.2, %v1625_v6  ;;  %v1627_v10 = vadd.f32 %v1626_v7, %v1587_v4 }
 0x454   : > { %v1628_v11 = vpop.f32.mrf.mxu0 }
 0x455   : > { %vm1632_vm7 = vcmp.gt.f32.partialorder %v1627_v10, 0.0  ;;  %v1634_v12 = vmul.f32 0.2, %v1627_v10  ;;  %v1635_v14 = vsel %vm1631_vm6, %v1625_v6, %v1633_v8 }
 0x456   : > { %v1629_v15 = vpop.f32.mrf.mxu0  ;;  %v1637_v20 = vpack.c.bf16 %v1635_v14, %v1635_v14 }
 0x457   : > { %v1636_v17 = vsel %vm1632_vm7, %v1627_v10, %v1634_v12 }
 0x458   : > { %v1638_v18 = vpack.c.bf16 %v1636_v17, %v1636_v17 }
 0x45a   : > { %1877 = vmatprep.mubr.bf16.mxu1 %v1638_v18 }
 0x45b   : > { %1878 = vmatmul.mubr.bf16.vlgmr.msra.gmra.mxu1 %v1637_v20 }
 0x45c   : > { %2340 = vmatpush1.bf16.msra.mxu1 %v5450_v19 }
 0x45d   : > { %2341 = vmatprep.subr.bf16.mxu1 %v5458_v21  ;;  %v5543_v21 = vld [vmem:[%s7776_s6 + $0xe0] ss:$16 sps:$4 sm:$0xff]  }
 0x460   : > { %2342 = vmatpush1.bf16.msra.mxu1 %v5456_v22  ;;  %v5546_v22 = vld [vmem:[%s7776_s6 + $0x2e0] ss:$16 sps:$4 sm:$0xff]  }
 0x461   : > { %2343 = vmatprep.subr.bf16.mxu1 %v5464_v23  ;;  %v5557_v23 = vld [vmem:[%s7776_s6 + $0xa4] ss:$16 sps:$4 sm:$0xff]  }
 0x464   : > { %2344 = vmatpush1.bf16.msra.mxu1 %v5462_v24  ;;  %v5560_v24 = vld [vmem:[%s7776_s6 + $0x2a4] ss:$16 sps:$4 sm:$0xff]  }
 0x465   : > { %2345 = vmatprep.subr.bf16.mxu1 %v5470_v25  ;;  %v5555_v25 = vld [vmem:[%s7776_s6 + $0xa0] ss:$16 sps:$4 sm:$0xff]  }
 0x468   : > { %2346 = vmatpush1.bf16.msra.mxu1 %v5468_v26  ;;  %v5558_v26 = vld [vmem:[%s7776_s6 + $0x2a0] ss:$16 sps:$4 sm:$0xff]  }
 0x469   : > { %2347 = vmatprep.subr.bf16.mxu1 %v5476_v27  ;;  %v5563_v27 = vld [vmem:[%s7776_s6 + $0x84] ss:$16 sps:$4 sm:$0xff]  }
 0x46c   : > { %2348 = vmatpush1.bf16.msra.mxu1 %v5474_v28  ;;  %v5566_v28 = vld [vmem:[%s7776_s6 + $0x284] ss:$16 sps:$4 sm:$0xff]  }
 0x46d   : > { %2349 = vmatprep.subr.bf16.mxu1 %v5482_v30  ;;  %v5561_v30 = vld [vmem:[%s7776_s6 + $0x80] ss:$16 sps:$4 sm:$0xff]  }
 0x470   : > { %2350 = vmatpush1.bf16.msra.mxu1 %v5480_v31  ;;  %v5564_v31 = vld [vmem:[%s7776_s6 + $0x280] ss:$16 sps:$4 sm:$0xff]  }
 0x471   : > { %2351 = vmatprep.subr.bf16.mxu1 %v5488_v32  ;;  %v5569_v32 = vld [vmem:[%s7776_s6 + $0x64] ss:$16 sps:$4 sm:$0xff]  }
 0x474   : > { %2352 = vmatpush1.bf16.msra.mxu1 %v5486_v33  ;;  %v5572_v33 = vld [vmem:[%s7776_s6 + $0x264] ss:$16 sps:$4 sm:$0xff]  }
 0x475   : > { %2353 = vmatprep.subr.bf16.mxu1 %v5494_v34  ;;  %v5567_v34 = vld [vmem:[%s7776_s6 + $0x60] ss:$16 sps:$4 sm:$0xff]  }
 0x478   : > { %2354 = vmatpush1.bf16.msra.mxu1 %v5492_v51  ;;  %v5570_v51 = vld [vmem:[%s7776_s6 + $0x260] ss:$16 sps:$4 sm:$0xff]  }
 0x479   : > { %2355 = vmatprep.subr.bf16.mxu1 %v5500_v35  ;;  %v5575_v35 = vld [vmem:[%s7776_s6 + $0x44] ss:$16 sps:$4 sm:$0xff]  }
 0x47c   : > { %2356 = vmatpush2.bf16.msra.mxu1 %v5498_v36  ;;  %v5578_v36 = vld [vmem:[%s7776_s6 + $0x244] ss:$16 sps:$4 sm:$0xff]  }
 0x47d   : > { %2357 = vmatprep.subr.bf16.mxu1 %v5506_v38  ;;  %v5573_v38 = vld [vmem:[%s7776_s6 + $0x40] ss:$16 sps:$4 sm:$0xff]  }
 0x480   : > { %2358 = vmatpush2.bf16.msra.mxu1 %v5504_v40  ;;  %v5576_v40 = vld [vmem:[%s7776_s6 + $0x240] ss:$16 sps:$4 sm:$0xff]  }
 0x481   : > { %2359 = vmatprep.subr.bf16.mxu1 %v5512_v42  ;;  %v5581_v42 = vld [vmem:[%s7776_s6 + $0x24] ss:$16 sps:$4 sm:$0xff]  }
 0x484   : > { %2360 = vmatpush2.bf16.msra.mxu1 %v5510_v43  ;;  %v5584_v43 = vld [vmem:[%s7776_s6 + $0x224] ss:$16 sps:$4 sm:$0xff]  }
 0x485   : > { %2361 = vmatprep.subr.bf16.mxu1 %v5518_v44  ;;  %v5579_v44 = vld [vmem:[%s7776_s6 + $0x20] ss:$16 sps:$4 sm:$0xff]  }
 0x488   : > { %2362 = vmatpush2.bf16.msra.mxu1 %v5516_v45  ;;  %v5582_v45 = vld [vmem:[%s7776_s6 + $0x220] ss:$16 sps:$4 sm:$0xff]  }
 0x489   : > { %2363 = vmatprep.subr.bf16.mxu1 %v5524_v47  ;;  %v5590_v47 = vld [vmem:[%s7776_s6 + $0x204] ss:$16 sps:$4 sm:$0xff]  }
 0x48c   : > { %2364 = vmatpush2.bf16.msra.mxu1 %v5522_v50  ;;  %v5588_v50 = vld [vmem:[%s7776_s6 + $0x200] ss:$16 sps:$4 sm:$0xff]  }
 0x48d   : > { %2365 = vmatprep.subr.bf16.mxu1 %v5530_v53  ;;  %v5596_v53 = vld [vmem:[%s7776_s6 + $0x3e4] ss:$16 sps:$4 sm:$0xff]  }
 0x490   : > { %2366 = vmatpush2.bf16.msra.mxu1 %v5528_v55  ;;  %v5594_v55 = vld [vmem:[%s7776_s6 + $0x3e0] ss:$16 sps:$4 sm:$0xff]  }
 0x491   : > { %2367 = vmatprep.subr.bf16.mxu1 %v5536_v58  ;;  %v5600_v58 = vld [vmem:[%s7776_s6 + $0x3c0] ss:$16 sps:$4 sm:$0xff]  }
 0x494   : > { %2368 = vmatpush2.bf16.msra.mxu1 %v5534_v57  ;;  %v5597_v57 = vld [vmem:[%s7776_s6 + $0x1c0] ss:$16 sps:$4 sm:$0xff]  }
 0x495   : > { %2369 = vmatprep.subr.bf16.mxu1 %v5542_v60  ;;  %v5608_v60 = vld [vmem:[%s7776_s6 + $0x3a4] ss:$16 sps:$4 sm:$0xff]  }
 0x498   : > { %2370 = vmatpush2.bf16.msra.mxu1 %v5540_v62  ;;  %v5606_v62 = vld [vmem:[%s7776_s6 + $0x3a0] ss:$16 sps:$4 sm:$0xff]  }
 0x499   : > { %3227 = vmatprep.subr.bf16.mxu1 %v5548_v0  ;;  %v5614_v0 = vld [vmem:[%s7776_s6 + $0x384] ss:$16 sps:$4 sm:$0xff]  }
 0x51b   : > { %v1879_v4 = vpop.f32.mrf.mxu1 }
 0x51c   : > { %v1880_v6 = vadd.f32 %v1879_v4, %v1838_v2  ;;  %v5612_v2 = vld [vmem:[%s7776_s6 + $0x380] ss:$16 sps:$4 sm:$0xff]   ;;  %v5620_v4 = vld [vmem:[%s7776_s6 + $0x364] ss:$16 sps:$4 sm:$0xff]  }
 0x51d   : > { %v1881_v5 = vpop.f32.mrf.mxu1 }
 0x51e   : > { %v1882_v7 = vadd.f32 %v1881_v5, %v1842_v3  ;;  %v5617_v3 = vld [vmem:[%s7776_s6 + $0x164] ss:$16 sps:$4 sm:$0xff]   ;;  %v5615_v5 = vld [vmem:[%s7776_s6 + $0x160] ss:$16 sps:$4 sm:$0xff]  }
 0x51f   : > { %v1883_v8 = vpop.f32.mrf.mxu1 }
 0x520   : > { %v1888_v10 = vcombine.low %v1880_v6, %v1882_v7  ;;  %v5618_v6 = vld [vmem:[%s7776_s6 + $0x360] ss:$16 sps:$4 sm:$0xff]   ;;  %v5623_v7 = vld [vmem:[%s7776_s6 + $0x144] ss:$16 sps:$4 sm:$0xff]  }
 0x521   : > { %v1884_v11 = vpop.f32.mrf.mxu1  ;;  %v5626_v8 = vld [vmem:[%s7776_s6 + $0x344] ss:$16 sps:$4 sm:$0xff]  }
 0x522   : > { %v1895_v12 = vrot.slane %v1888_v10, %v6503_v41  ;;  %v5551_v41 = vld [vmem:[%s7776_s6 + $0xc4] ss:$16 sps:$4 sm:$0xff]   ;;  %v5621_v10 = vld [vmem:[%s7776_s6 + $0x140] ss:$16 sps:$4 sm:$0xff]  }
 0x523   : > { %v5624_v11 = vld [vmem:[%s7776_s6 + $0x340] ss:$16 sps:$4 sm:$0xff]  }
 0x524   : > { %v1897_v14 = vadd.f32 %v1895_v12, %v6720_v29  ;;  %v5552_v29 = vld [vmem:[%s7776_s6 + $0x2c0] ss:$16 sps:$4 sm:$0xff]   ;;  %v5629_v12 = vld [vmem:[%s7776_s6 + $0x124] ss:$16 sps:$4 sm:$0xff]  }
 0x526   : > { %vm1898_vm8 = vcmp.gt.f32.partialorder %v1897_v14, 0.0  ;;  %v1899_v15 = vmul.f32 0.2, %v1897_v14 }
 0x528   : > { %v1900_v17 = vsel %vm1898_vm8, %v1897_v14, %v1899_v15  ;;  %v5632_v14 = vld [vmem:[%s7776_s6 + $0x324] ss:$16 sps:$4 sm:$0xff]   ;;  %v5627_v15 = vld [vmem:[%s7776_s6 + $0x120] ss:$16 sps:$4 sm:$0xff]  }
 0x529   : > { %v1905_v18 = vrot.slane %v1900_v17, %v6379_v37  ;;  %v1909_v19 = vrot.slane %v1900_v17, %v6508_v49  ;;  %v5554_v37 = vld [vmem:[%s7776_s6 + $0x2c4] ss:$16 sps:$4 sm:$0xff]   ;;  %v5549_v49 = vld [vmem:[%s7776_s6 + $0xc0] ss:$16 sps:$4 sm:$0xff]  }
 0x52a   : > { %v5630_v17 = vld [vmem:[%s7776_s6 + $0x320] ss:$16 sps:$4 sm:$0xff]  }
 0x52b   : > { %v1912_v20 = vpack.c.bf16 %v1905_v18, %v1905_v18  ;;  %v1913_v39 = vpack.c.bf16 %v1909_v19, %v1909_v19  ;;  %v5635_v18 = vld [vmem:[%s7776_s6 + $0x104] ss:$16 sps:$4 sm:$0xff]  }
 0x52c   : > { %v5638_v19 = vld [vmem:[%s7776_s6 + $0x304] ss:$16 sps:$4 sm:$0xff]  }
 0x52d   : > { %2330 = vmatprep.mubr.bf16.mxu0 %v1913_v39  ;;  %2371 = vmatprep.mubr.bf16.mxu1 %v1913_v39  ;;  %v5636_v39 = vld [vmem:[%s7776_s6 + $0x300] ss:$16 sps:$4 sm:$0xff]  }
 0x52e   : > { %2331 = vmatmul.mubr.bf16.vlgmr.msra.gmra.mxu0 %v1912_v20  ;;  %2372 = vmatmul.mubr.bf16.vlgmr.msra.gmra.mxu1 %v1912_v20  ;;  %v5633_v20 = vld [vmem:[%s7776_s6 + $0x100] ss:$16 sps:$4 sm:$0xff]  }
 0x52f   : > { %3187 = vmatpush1.bf16.msra.mxu0 %v5543_v21  ;;  %3228 = vmatpush1.bf16.msra.mxu1 %v5546_v22  ;;  %v5641_v21 = vld [vmem:[%s7776_s6 + $0xec] ss:$16 sps:$4 sm:$0xff]  }
 0x530   : > { %3188 = vmatprep.subr.bf16.mxu0 %v5551_v41  ;;  %3229 = vmatprep.subr.bf16.mxu1 %v5554_v37  ;;  %v5644_v22 = vld [vmem:[%s7776_s6 + $0x2ec] ss:$16 sps:$4 sm:$0xff]  }
 0x533   : > { %3189 = vmatpush1.bf16.msra.mxu0 %v5549_v49  ;;  %3230 = vmatpush1.bf16.msra.mxu1 %v5552_v29 }
 0x534   : > { %3190 = vmatprep.subr.bf16.mxu0 %v5557_v23  ;;  %3231 = vmatprep.subr.bf16.mxu1 %v5560_v24 }
 0x537   : > { %3191 = vmatpush1.bf16.msra.mxu0 %v5555_v25  ;;  %3232 = vmatpush1.bf16.msra.mxu1 %v5558_v26 }
 0x538   : > { %3192 = vmatprep.subr.bf16.mxu0 %v5563_v27  ;;  %3233 = vmatprep.subr.bf16.mxu1 %v5566_v28 }
 0x53b   : > { %3193 = vmatpush1.bf16.msra.mxu0 %v5561_v30  ;;  %3234 = vmatpush1.bf16.msra.mxu1 %v5564_v31 }
 0x53c   : > { %3194 = vmatprep.subr.bf16.mxu0 %v5569_v32  ;;  %3235 = vmatprep.subr.bf16.mxu1 %v5572_v33 }
 0x53f   : > { %3195 = vmatpush1.bf16.msra.mxu0 %v5567_v34  ;;  %3236 = vmatpush1.bf16.msra.mxu1 %v5570_v51 }
 0x540   : > { %3196 = vmatprep.subr.bf16.mxu0 %v5575_v35  ;;  %3237 = vmatprep.subr.bf16.mxu1 %v5578_v36 }
 0x543   : > { %3197 = vmatpush1.bf16.msra.mxu0 %v5573_v38  ;;  %3238 = vmatpush1.bf16.msra.mxu1 %v5576_v40 }
 0x544   : > { %3198 = vmatprep.subr.bf16.mxu0 %v5581_v42  ;;  %3239 = vmatprep.subr.bf16.mxu1 %v5584_v43 }
 0x547   : > { %3199 = vmatpush1.bf16.msra.mxu0 %v5579_v44  ;;  %3240 = vmatpush1.bf16.msra.mxu1 %v5582_v45 }
 0x548   : > { %3200 = vmatprep.subr.bf16.mxu0 %v5587_v46  ;;  %3241 = vmatprep.subr.bf16.mxu1 %v5590_v47 }
 0x54b   : > { %3201 = vmatpush1.bf16.msra.mxu0 %v5585_v48  ;;  %3242 = vmatpush1.bf16.msra.mxu1 %v5588_v50 }
 0x54c   : > { %3202 = vmatprep.subr.bf16.mxu0 %v5593_v52  ;;  %3243 = vmatprep.subr.bf16.mxu1 %v5596_v53 }
 0x54f   : > { %3203 = vmatpush2.bf16.msra.mxu0 %v5591_v54  ;;  %3244 = vmatpush2.bf16.msra.mxu1 %v5594_v55 }
 0x550   : > { %3204 = vmatprep.subr.bf16.mxu0 %v5599_v56  ;;  %3245 = vmatprep.subr.bf16.mxu1 %v5602_v13 }
 0x553   : > { %3205 = vmatpush2.bf16.msra.mxu0 %v5597_v57  ;;  %3246 = vmatpush2.bf16.msra.mxu1 %v5600_v58 }
 0x554   : > { %3206 = vmatprep.subr.bf16.mxu0 %v5605_v59  ;;  %3247 = vmatprep.subr.bf16.mxu1 %v5608_v60 }
 0x557   : > { %3207 = vmatpush2.bf16.msra.mxu0 %v5603_v61  ;;  %3248 = vmatpush2.bf16.msra.mxu1 %v5606_v62  ;;  %v5639_v61 = vld [vmem:[%s7776_s6 + $0xe8] ss:$16 sps:$4 sm:$0xff]  }
 0x558   : > { %3208 = vmatprep.subr.bf16.mxu0 %v5611_v63  ;;  %3249 = vmatprep.subr.bf16.mxu1 %v5614_v0  ;;  %v5642_v62 = vld [vmem:[%s7776_s6 + $0x2e8] ss:$16 sps:$4 sm:$0xff]  }
 0x55b   : > { %3209 = vmatpush2.bf16.msra.mxu0 %v5609_v1  ;;  %3250 = vmatpush2.bf16.msra.mxu1 %v5612_v2 }
 0x55c   : > { %3210 = vmatprep.subr.bf16.mxu0 %v5617_v3  ;;  %3251 = vmatprep.subr.bf16.mxu1 %v5620_v4  ;;  %v5647_v3 = vld [vmem:[%s7776_s6 + $0xcc] ss:$16 sps:$4 sm:$0xff]  }
 0x55d   : > { %v5650_v4 = vld [vmem:[%s7776_s6 + $0x2cc] ss:$16 sps:$4 sm:$0xff]  }
 0x55f   : > { %3211 = vmatpush2.bf16.msra.mxu0 %v5615_v5  ;;  %3252 = vmatpush2.bf16.msra.mxu1 %v5618_v6  ;;  %v5645_v5 = vld [vmem:[%s7776_s6 + $0xc8] ss:$16 sps:$4 sm:$0xff]  }
 0x560   : > { %3212 = vmatprep.subr.bf16.mxu0 %v5623_v7  ;;  %3253 = vmatprep.subr.bf16.mxu1 %v5626_v8  ;;  %v5648_v6 = vld [vmem:[%s7776_s6 + $0x2c8] ss:$16 sps:$4 sm:$0xff]   ;;  %v5653_v7 = vld [vmem:[%s7776_s6 + $0xac] ss:$16 sps:$4 sm:$0xff]  }
 0x561   : > { %v5656_v8 = vld [vmem:[%s7776_s6 + $0x2ac] ss:$16 sps:$4 sm:$0xff]  }
 0x563   : > { %3213 = vmatpush2.bf16.msra.mxu0 %v5621_v10  ;;  %3254 = vmatpush2.bf16.msra.mxu1 %v5624_v11  ;;  %v5651_v10 = vld [vmem:[%s7776_s6 + $0xa8] ss:$16 sps:$4 sm:$0xff]  }
 0x564   : > { %3214 = vmatprep.subr.bf16.mxu0 %v5629_v12  ;;  %3255 = vmatprep.subr.bf16.mxu1 %v5632_v14  ;;  %v5654_v11 = vld [vmem:[%s7776_s6 + $0x2a8] ss:$16 sps:$4 sm:$0xff]   ;;  %v5659_v12 = vld [vmem:[%s7776_s6 + $0x8c] ss:$16 sps:$4 sm:$0xff]  }
 0x565   : > { %v5662_v14 = vld [vmem:[%s7776_s6 + $0x28c] ss:$16 sps:$4 sm:$0xff]  }
 0x567   : > { %3215 = vmatpush2.bf16.msra.mxu0 %v5627_v15  ;;  %3256 = vmatpush2.bf16.msra.mxu1 %v5630_v17  ;;  %v5657_v15 = vld [vmem:[%s7776_s6 + $0x88] ss:$16 sps:$4 sm:$0xff]  }
 0x568   : > { %3216 = vmatprep.subr.bf16.mxu0 %v5635_v18  ;;  %3257 = vmatprep.subr.bf16.mxu1 %v5638_v19  ;;  %v5660_v17 = vld [vmem:[%s7776_s6 + $0x288] ss:$16 sps:$4 sm:$0xff]   ;;  %v5665_v18 = vld [vmem:[%s7776_s6 + $0x6c] ss:$16 sps:$4 sm:$0xff]  }
 0x569   : > { %v5668_v19 = vld [vmem:[%s7776_s6 + $0x26c] ss:$16 sps:$4 sm:$0xff]  }
 0x56b   : > { %3217 = vmatpush2.bf16.msra.mxu0 %v5633_v20  ;;  %3258 = vmatpush2.bf16.msra.mxu1 %v5636_v39  ;;  %v5663_v20 = vld [vmem:[%s7776_s6 + $0x68] ss:$16 sps:$4 sm:$0xff]  }
 0x56c   : > { %3268 = vmatprep.subr.bf16.mxu0 %v5641_v21  ;;  %3309 = vmatprep.subr.bf16.mxu1 %v5644_v22  ;;  %v5666_v39 = vld [vmem:[%s7776_s6 + $0x268] ss:$16 sps:$4 sm:$0xff]   ;;  %v5671_v21 = vld [vmem:[%s7776_s6 + $0x4c] ss:$16 sps:$4 sm:$0xff]  }
 0x56d   : > { %v5674_v22 = vld [vmem:[%s7776_s6 + $0x24c] ss:$16 sps:$4 sm:$0xff]  }
 0x5ee   : > { %v2332_v41 = vpop.f32.mrf.mxu0  ;;  %v2373_v37 = vpop.f32.mrf.mxu1 }
 0x5f0   : > { %v2334_v49 = vpop.f32.mrf.mxu0  ;;  %v2375_v29 = vpop.f32.mrf.mxu1 }
 0x5f1   : > { %v2380_v23 = vadd.f32 %v2334_v49, %v2332_v41 }
 0x5f2   : > { %v2336_v24 = vpop.f32.mrf.mxu0  ;;  %v2377_v25 = vpop.f32.mrf.mxu1 }
 0x5f3   : > { %v2381_v26 = vadd.f32 %v2380_v23, %v2373_v37  ;;  %v5675_v23 = vld [vmem:[%s7776_s6 + $0x28] ss:$16 sps:$4 sm:$0xff]   ;;  %v5683_v25 = vld [vmem:[%s7776_s6 + $0xc] ss:$16 sps:$4 sm:$0xff]  }
 0x5f4   : > { %v2337_v27 = vpop.f32.mrf.mxu0  ;;  %v2378_v28 = vpop.f32.mrf.mxu1  ;;  %v5678_v24 = vld [vmem:[%s7776_s6 + $0x228] ss:$16 sps:$4 sm:$0xff]  }
 0x5f5   : > { %v2382_v30 = vadd.f32 %v2381_v26, %v2375_v29  ;;  %v5686_v26 = vld [vmem:[%s7776_s6 + $0x20c] ss:$16 sps:$4 sm:$0xff]   ;;  %v5681_v27 = vld [vmem:[%s7776_s6 + $0x8] ss:$16 sps:$4 sm:$0xff]  }
 0x5f6   : > { %v5684_v28 = vld [vmem:[%s7776_s6 + $0x208] ss:$16 sps:$4 sm:$0xff]  }
 0x5f7   : > { %v2383_v31 = vmul.f32 0.25, %v2382_v30  ;;  %v5689_v30 = vld [vmem:[%s7776_s6 + $0x1ec] ss:$16 sps:$4 sm:$0xff]  }
 0x5f9   : > { %v2384_v32 = vsub.f32 %v2332_v41, %v2383_v31  ;;  %v2385_v33 = vsub.f32 %v2334_v49, %v2383_v31  ;;  %v2386_v34 = vsub.f32 %v2373_v37, %v2383_v31  ;;  %v2387_v51 = vsub.f32 %v2375_v29, %v2383_v31  ;;  %v5669_v41 = vld [vmem:[%s7776_s6 + $0x48] ss:$16 sps:$4 sm:$0xff]   ;;  %v5677_v49 = vld [vmem:[%s7776_s6 + $0x2c] ss:$16 sps:$4 sm:$0xff]  }
 0x5fa   : > { %v5672_v37 = vld [vmem:[%s7776_s6 + $0x248] ss:$16 sps:$4 sm:$0xff]   ;;  %v5680_v29 = vld [vmem:[%s7776_s6 + $0x22c] ss:$16 sps:$4 sm:$0xff]  }
 0x5fb   : > { %v2388_v35 = vmul.f32 %v2384_v32, %v2384_v32  ;;  %v2389_v36 = vmul.f32 %v2385_v33, %v2385_v33  ;;  %v2391_v40 = vmul.f32 %v2386_v34, %v2386_v34  ;;  %v2393_v43 = vmul.f32 %v2387_v51, %v2387_v51  ;;  %v5692_v31 = vld [vmem:[%s7776_s6 + $0x3ec] ss:$16 sps:$4 sm:$0xff]  }
 0x5fd   : > { %v2390_v38 = vadd.f32 %v2389_v36, %v2388_v35  ;;  %v5693_v35 = vld [vmem:[%s7776_s6 + $0x1c8] ss:$16 sps:$4 sm:$0xff]  }
 0x5fe   : > { %v5696_v36 = vld [vmem:[%s7776_s6 + $0x3c8] ss:$16 sps:$4 sm:$0xff]  }
 0x5ff   : > { %v2392_v42 = vadd.f32 %v2391_v40, %v2390_v38  ;;  %v5701_v38 = vld [vmem:[%s7776_s6 + $0x1ac] ss:$16 sps:$4 sm:$0xff]  }
 0x600   : > { %v5704_v40 = vld [vmem:[%s7776_s6 + $0x3ac] ss:$16 sps:$4 sm:$0xff]  }
 0x601   : > { %v2394_v44 = vadd.f32 %v2393_v43, %v2392_v42  ;;  %v5699_v42 = vld [vmem:[%s7776_s6 + $0x1a8] ss:$16 sps:$4 sm:$0xff]  }
 0x602   : > { %v5702_v43 = vld [vmem:[%s7776_s6 + $0x3a8] ss:$16 sps:$4 sm:$0xff]  }
 0x603   : > { %v2395_v45 = vmul.f32 0.25, %v2394_v44  ;;  %v5707_v44 = vld [vmem:[%s7776_s6 + $0x18c] ss:$16 sps:$4 sm:$0xff]  }
 0x605   : > { %v2396_v46 = vadd.f32 1e-05, %v2395_v45  ;;  %v5710_v45 = vld [vmem:[%s7776_s6 + $0x38c] ss:$16 sps:$4 sm:$0xff]  }
 0x607   : > { %5927 = vrsqrt.f32 %v2396_v46  ;;  %v5705_v46 = vld [vmem:[%s7776_s6 + $0x188] ss:$16 sps:$4 sm:$0xff]  }
 0x614   : > { %v5928_v47 = vpop.eup %5927 }
 0x615   : > { %v2401_v48 = vmul.f32 %v5928_v47, %v2387_v51  ;;  %v2399_v50 = vmul.f32 %v5928_v47, %v2385_v33  ;;  %v2398_v52 = vmul.f32 %v5928_v47, %v2384_v32  ;;  %v2400_v53 = vmul.f32 %v5928_v47, %v2386_v34  ;;  %v5687_v32 = vld [vmem:[%s7776_s6 + $0x1e8] ss:$16 sps:$4 sm:$0xff]   ;;  %v5695_v34 = vld [vmem:[%s7776_s6 + $0x1cc] ss:$16 sps:$4 sm:$0xff]  }
 0x616   : > { %v5690_v33 = vld [vmem:[%s7776_s6 + $0x3e8] ss:$16 sps:$4 sm:$0xff]   ;;  %v5698_v51 = vld [vmem:[%s7776_s6 + $0x3cc] ss:$16 sps:$4 sm:$0xff]  }
 0x617   : > { %v2409_v54 = vmul.f32 0.2, %v2401_v48  ;;  %vm2403_vm9 = vcmp.gt.f32.partialorder %v2399_v50, 0.0  ;;  %v2407_v55 = vmul.f32 0.2, %v2399_v50  ;;  %vm2405_vm10 = vcmp.gt.f32.partialorder %v2401_v48, 0.0 }
 0x618   : > { %vm2402_vm11 = vcmp.gt.f32.partialorder %v2398_v52, 0.0  ;;  %v2406_v56 = vmul.f32 0.2, %v2398_v52  ;;  %vm2404_vm12 = vcmp.gt.f32.partialorder %v2400_v53, 0.0  ;;  %v2408_v13 = vmul.f32 0.2, %v2400_v53 }
 0x619   : > { %v2411_v57 = vsel %vm2403_vm9, %v2399_v50, %v2407_v55  ;;  %v2413_v58 = vsel %vm2405_vm10, %v2401_v48, %v2409_v54  ;;  %v5708_v47 = vld [vmem:[%s7776_s6 + $0x388] ss:$16 sps:$4 sm:$0xff]   ;;  %v5713_v48 = vld [vmem:[%s7776_s6 + $0x16c] ss:$16 sps:$4 sm:$0xff]  }
 0x61a   : > { %v2415_v59 = vpack.c.bf16 %v2411_v57, %v2411_v57  ;;  %v2417_v60 = vpack.c.bf16 %v2413_v58, %v2413_v58  ;;  %v2410_v63 = vsel %vm2402_vm11, %v2398_v52, %v2406_v56  ;;  %v2412_v0 = vsel %vm2404_vm12, %v2400_v53, %v2408_v13  ;;  %v5716_v50 = vld [vmem:[%s7776_s6 + $0x36c] ss:$16 sps:$4 sm:$0xff]   ;;  %v5711_v52 = vld [vmem:[%s7776_s6 + $0x168] ss:$16 sps:$4 sm:$0xff]  }
 0x61b   : > { %v7148_v1 = vpack.c.bf16 %v2410_v63, %v2410_v63  ;;  %v7150_v2 = vpack.c.bf16 %v2412_v0, %v2412_v0  ;;  %v5714_v53 = vld [vmem:[%s7776_s6 + $0x368] ss:$16 sps:$4 sm:$0xff]   ;;  %v5719_v54 = vld [vmem:[%s7776_s6 + $0x14c] ss:$16 sps:$4 sm:$0xff]  }
 0x61c   : > { %3218 = vmatprep.mubr.bf16.mxu0 %v2415_v59  ;;  %3259 = vmatprep.mubr.bf16.mxu1 %v2417_v60  ;;  %v5722_v55 = vld [vmem:[%s7776_s6 + $0x34c] ss:$16 sps:$4 sm:$0xff]   ;;  %v5717_v56 = vld [vmem:[%s7776_s6 + $0x148] ss:$16 sps:$4 sm:$0xff]  }
 0x61d   : > { %3219 = vmatmul.mubr.bf16.vlgmr.msra.gmra.mxu0 %v7148_v1  ;;  %3260 = vmatmul.mubr.bf16.vlgmr.msra.gmra.mxu1 %v7150_v2  ;;  %v5720_v13 = vld [vmem:[%s7776_s6 + $0x348] ss:$16 sps:$4 sm:$0xff]   ;;  %v5725_v57 = vld [vmem:[%s7776_s6 + $0x12c] ss:$16 sps:$4 sm:$0xff]  }
 0x61e   : > { %3269 = vmatpush1.bf16.msra.mxu0 %v5639_v61  ;;  %3310 = vmatpush1.bf16.msra.mxu1 %v5642_v62  ;;  %v5728_v58 = vld [vmem:[%s7776_s6 + $0x32c] ss:$16 sps:$4 sm:$0xff]   ;;  %v5729_v63 = vld [vmem:[%s7776_s6 + $0x108] ss:$16 sps:$4 sm:$0xff]  }
 0x61f   : > { %3300 = vmatprep.mubr.bf16.mxu0 %v2415_v59  ;;  %3341 = vmatprep.mubr.bf16.mxu1 %v2417_v60  ;;  %v5723_v59 = vld [vmem:[%s7776_s6 + $0x128] ss:$16 sps:$4 sm:$0xff]   ;;  %v5731_v61 = vld [vmem:[%s7776_s6 + $0x10c] ss:$16 sps:$4 sm:$0xff]  }
 0x620   : > { %3270 = vmatprep.subr.bf16.mxu0 %v5647_v3  ;;  %3311 = vmatprep.subr.bf16.mxu1 %v5650_v4  ;;  %v5726_v60 = vld [vmem:[%s7776_s6 + $0x328] ss:$16 sps:$4 sm:$0xff]   ;;  %v5734_v62 = vld [vmem:[%s7776_s6 + $0x30c] ss:$16 sps:$4 sm:$0xff]   ;;  %v5735_v3 = vld [vmem:[%s7777_s7 + $0xe0] ss:$16 sps:$4 sm:$0xff]  }
 0x621   : > { %v5732_v0 = vld [vmem:[%s7776_s6 + $0x308] ss:$16 sps:$4 sm:$0xff]   ;;  %v5737_v4 = vld [vmem:[%s7777_s7 + $0xe4] ss:$16 sps:$4 sm:$0xff]  }
 0x622   : > { %3271 = vmatpush1.bf16.msra.mxu0 %v5645_v5  ;;  %3312 = vmatpush1.bf16.msra.mxu1 %v5648_v6  ;;  %v5738_v5 = vld [vmem:[%s7777_s7 + $0x2e0] ss:$16 sps:$4 sm:$0xff]   ;;  %v5740_v6 = vld [vmem:[%s7777_s7 + $0x2e4] ss:$16 sps:$4 sm:$0xff]  }
 0x623   : > { %3272 = vmatprep.subr.bf16.mxu0 %v5653_v7  ;;  %3313 = vmatprep.subr.bf16.mxu1 %v5656_v8  ;;  %v5741_v7 = vld [vmem:[%s7777_s7 + $0xc0] ss:$16 sps:$4 sm:$0xff]  }
 0x624   : > { %v5744_v8 = vld [vmem:[%s7777_s7 + $0x2c0] ss:$16 sps:$4 sm:$0xff]  }
 0x626   : > { %3273 = vmatpush1.bf16.msra.mxu0 %v5651_v10  ;;  %3314 = vmatpush1.bf16.msra.mxu1 %v5654_v11  ;;  %v5749_v10 = vld [vmem:[%s7777_s7 + $0xa4] ss:$16 sps:$4 sm:$0xff]  }
 0x627   : > { %3274 = vmatprep.subr.bf16.mxu0 %v5659_v12  ;;  %3315 = vmatprep.subr.bf16.mxu1 %v5662_v14  ;;  %v5752_v11 = vld [vmem:[%s7777_s7 + $0x2a4] ss:$16 sps:$4 sm:$0xff]   ;;  %v5747_v12 = vld [vmem:[%s7777_s7 + $0xa0] ss:$16 sps:$4 sm:$0xff]  }
 0x628   : > { %v5750_v14 = vld [vmem:[%s7777_s7 + $0x2a0] ss:$16 sps:$4 sm:$0xff]  }
 0x62a   : > { %3275 = vmatpush1.bf16.msra.mxu0 %v5657_v15  ;;  %3316 = vmatpush1.bf16.msra.mxu1 %v5660_v17  ;;  %v5755_v15 = vld [vmem:[%s7777_s7 + $0x84] ss:$16 sps:$4 sm:$0xff]  }
 0x62b   : > { %3276 = vmatprep.subr.bf16.mxu0 %v5665_v18  ;;  %3317 = vmatprep.subr.bf16.mxu1 %v5668_v19  ;;  %v5758_v17 = vld [vmem:[%s7777_s7 + $0x284] ss:$16 sps:$4 sm:$0xff]   ;;  %v5753_v18 = vld [vmem:[%s7777_s7 + $0x80] ss:$16 sps:$4 sm:$0xff]  }
 0x62c   : > { %v5756_v19 = vld [vmem:[%s7777_s7 + $0x280] ss:$16 sps:$4 sm:$0xff]  }
 0x62e   : > { %3277 = vmatpush1.bf16.msra.mxu0 %v5663_v20  ;;  %3318 = vmatpush1.bf16.msra.mxu1 %v5666_v39  ;;  %v5761_v20 = vld [vmem:[%s7777_s7 + $0x64] ss:$16 sps:$4 sm:$0xff]  }
 0x62f   : > { %3278 = vmatprep.subr.bf16.mxu0 %v5671_v21  ;;  %3319 = vmatprep.subr.bf16.mxu1 %v5674_v22  ;;  %v5764_v39 = vld [vmem:[%s7777_s7 + $0x264] ss:$16 sps:$4 sm:$0xff]   ;;  %v5759_v21 = vld [vmem:[%s7777_s7 + $0x60] ss:$16 sps:$4 sm:$0xff]  }
 0x630   : > { %v5762_v22 = vld [vmem:[%s7777_s7 + $0x260] ss:$16 sps:$4 sm:$0xff]  }
 0x632   : > { %3279 = vmatpush1.bf16.msra.mxu0 %v5669_v41  ;;  %3320 = vmatpush1.bf16.msra.mxu1 %v5672_v37  ;;  %v5767_v41 = vld [vmem:[%s7777_s7 + $0x44] ss:$16 sps:$4 sm:$0xff]  }
 0x633   : > { %3280 = vmatprep.subr.bf16.mxu0 %v5677_v49  ;;  %3321 = vmatprep.subr.bf16.mxu1 %v5680_v29  ;;  %v5770_v37 = vld [vmem:[%s7777_s7 + $0x244] ss:$16 sps:$4 sm:$0xff]   ;;  %v5765_v49 = vld [vmem:[%s7777_s7 + $0x40] ss:$16 sps:$4 sm:$0xff]  }
 0x634   : > { %v5768_v29 = vld [vmem:[%s7777_s7 + $0x240] ss:$16 sps:$4 sm:$0xff]  }
 0x636   : > { %3281 = vmatpush1.bf16.msra.mxu0 %v5675_v23  ;;  %3322 = vmatpush1.bf16.msra.mxu1 %v5678_v24  ;;  %v5773_v23 = vld [vmem:[%s7777_s7 + $0x24] ss:$16 sps:$4 sm:$0xff]  }
 0x637   : > { %3282 = vmatprep.subr.bf16.mxu0 %v5683_v25  ;;  %3323 = vmatprep.subr.bf16.mxu1 %v5686_v26  ;;  %v5776_v24 = vld [vmem:[%s7777_s7 + $0x224] ss:$16 sps:$4 sm:$0xff]   ;;  %v5771_v25 = vld [vmem:[%s7777_s7 + $0x20] ss:$16 sps:$4 sm:$0xff]  }
 0x638   : > { %v5774_v26 = vld [vmem:[%s7777_s7 + $0x220] ss:$16 sps:$4 sm:$0xff]  }
 0x63a   : > { %3283 = vmatpush1.bf16.msra.mxu0 %v5681_v27  ;;  %3324 = vmatpush1.bf16.msra.mxu1 %v5684_v28  ;;  %v5779_v27 = vld [vmem:[%s7777_s7 + $0x4] ss:$16 sps:$4 sm:$0xff]  }
 0x63b   : > { %3284 = vmatprep.subr.bf16.mxu0 %v5689_v30  ;;  %3325 = vmatprep.subr.bf16.mxu1 %v5692_v31  ;;  %v5782_v28 = vld [vmem:[%s7777_s7 + $0x204] ss:$16 sps:$4 sm:$0xff]   ;;  %v5777_v30 = vld [vmem:[%s7777_s7] ss:$16 sps:$4 sm:$0xff]  }
 0x63c   : > { %v5780_v31 = vld [vmem:[%s7777_s7 + $0x200] ss:$16 sps:$4 sm:$0xff]  }
 0x63e   : > { %3285 = vmatpush2.bf16.msra.mxu0 %v5687_v32  ;;  %3326 = vmatpush2.bf16.msra.mxu1 %v5690_v33  ;;  %v5785_v32 = vld [vmem:[%s7777_s7 + $0x1e4] ss:$16 sps:$4 sm:$0xff]  }
 0x63f   : > { %3286 = vmatprep.subr.bf16.mxu0 %v5695_v34  ;;  %3327 = vmatprep.subr.bf16.mxu1 %v5698_v51  ;;  %v5788_v33 = vld [vmem:[%s7777_s7 + $0x3e4] ss:$16 sps:$4 sm:$0xff]   ;;  %v5783_v34 = vld [vmem:[%s7777_s7 + $0x1e0] ss:$16 sps:$4 sm:$0xff]  }
 0x640   : > { %v5786_v51 = vld [vmem:[%s7777_s7 + $0x3e0] ss:$16 sps:$4 sm:$0xff]  }
 0x642   : > { %3287 = vmatpush2.bf16.msra.mxu0 %v5693_v35  ;;  %3328 = vmatpush2.bf16.msra.mxu1 %v5696_v36  ;;  %v5791_v35 = vld [vmem:[%s7777_s7 + $0x1c4] ss:$16 sps:$4 sm:$0xff]  }
 0x643   : > { %3288 = vmatprep.subr.bf16.mxu0 %v5701_v38  ;;  %3329 = vmatprep.subr.bf16.mxu1 %v5704_v40  ;;  %v5794_v36 = vld [vmem:[%s7777_s7 + $0x3c4] ss:$16 sps:$4 sm:$0xff]   ;;  %v5789_v38 = vld [vmem:[%s7777_s7 + $0x1c0] ss:$16 sps:$4 sm:$0xff]  }
 0x644   : > { %v5792_v40 = vld [vmem:[%s7777_s7 + $0x3c0] ss:$16 sps:$4 sm:$0xff]  }
 0x646   : > { %3289 = vmatpush2.bf16.msra.mxu0 %v5699_v42  ;;  %3330 = vmatpush2.bf16.msra.mxu1 %v5702_v43  ;;  %v5797_v42 = vld [vmem:[%s7777_s7 + $0x1a4] ss:$16 sps:$4 sm:$0xff]  }
 0x647   : > { %3290 = vmatprep.subr.bf16.mxu0 %v5707_v44  ;;  %3331 = vmatprep.subr.bf16.mxu1 %v5710_v45  ;;  %v5800_v43 = vld [vmem:[%s7777_s7 + $0x3a4] ss:$16 sps:$4 sm:$0xff]   ;;  %v5795_v44 = vld [vmem:[%s7777_s7 + $0x1a0] ss:$16 sps:$4 sm:$0xff]  }
 0x648   : > { %v5798_v45 = vld [vmem:[%s7777_s7 + $0x3a0] ss:$16 sps:$4 sm:$0xff]  }
 0x64a   : > { %3291 = vmatpush2.bf16.msra.mxu0 %v5705_v46  ;;  %3332 = vmatpush2.bf16.msra.mxu1 %v5708_v47  ;;  %v5803_v46 = vld [vmem:[%s7777_s7 + $0x184] ss:$16 sps:$4 sm:$0xff]  }
 0x64b   : > { %3292 = vmatprep.subr.bf16.mxu0 %v5713_v48  ;;  %3333 = vmatprep.subr.bf16.mxu1 %v5716_v50  ;;  %v5806_v47 = vld [vmem:[%s7777_s7 + $0x384] ss:$16 sps:$4 sm:$0xff]   ;;  %v5801_v48 = vld [vmem:[%s7777_s7 + $0x180] ss:$16 sps:$4 sm:$0xff]  }
 0x64c   : > { %v5804_v50 = vld [vmem:[%s7777_s7 + $0x380] ss:$16 sps:$4 sm:$0xff]  }
 0x64e   : > { %3293 = vmatpush2.bf16.msra.mxu0 %v5711_v52  ;;  %3334 = vmatpush2.bf16.msra.mxu1 %v5714_v53  ;;  %v5809_v52 = vld [vmem:[%s7777_s7 + $0x164] ss:$16 sps:$4 sm:$0xff]  }
 0x64f   : > { %3294 = vmatprep.subr.bf16.mxu0 %v5719_v54  ;;  %3335 = vmatprep.subr.bf16.mxu1 %v5722_v55  ;;  %v5812_v53 = vld [vmem:[%s7777_s7 + $0x364] ss:$16 sps:$4 sm:$0xff]   ;;  %v5807_v54 = vld [vmem:[%s7777_s7 + $0x160] ss:$16 sps:$4 sm:$0xff]  }
 0x650   : > { %v5810_v55 = vld [vmem:[%s7777_s7 + $0x360] ss:$16 sps:$4 sm:$0xff]  }
 0x652   : > { %3295 = vmatpush2.bf16.msra.mxu0 %v5717_v56  ;;  %3336 = vmatpush2.bf16.msra.mxu1 %v5720_v13  ;;  %v5815_v56 = vld [vmem:[%s7777_s7 + $0x144] ss:$16 sps:$4 sm:$0xff]  }
 0x653   : > { %3296 = vmatprep.subr.bf16.mxu0 %v5725_v57  ;;  %3337 = vmatprep.subr.bf16.mxu1 %v5728_v58  ;;  %v5818_v13 = vld [vmem:[%s7777_s7 + $0x344] ss:$16 sps:$4 sm:$0xff]   ;;  %v5813_v57 = vld [vmem:[%s7777_s7 + $0x140] ss:$16 sps:$4 sm:$0xff]  }
 0x654   : > { %v5816_v58 = vld [vmem:[%s7777_s7 + $0x340] ss:$16 sps:$4 sm:$0xff]  }
 0x656   : > { %3297 = vmatpush2.bf16.msra.mxu0 %v5723_v59  ;;  %3338 = vmatpush2.bf16.msra.mxu1 %v5726_v60  ;;  %v5821_v59 = vld [vmem:[%s7777_s7 + $0x124] ss:$16 sps:$4 sm:$0xff]  }
 0x657   : > { %3298 = vmatprep.subr.bf16.mxu0 %v5731_v61  ;;  %3339 = vmatprep.subr.bf16.mxu1 %v5734_v62  ;;  %v5824_v60 = vld [vmem:[%s7777_s7 + $0x324] ss:$16 sps:$4 sm:$0xff]   ;;  %v5819_v61 = vld [vmem:[%s7777_s7 + $0x120] ss:$16 sps:$4 sm:$0xff]  }
 0x658   : > { %v5822_v62 = vld [vmem:[%s7777_s7 + $0x320] ss:$16 sps:$4 sm:$0xff]  }
 0x65a   : > { %3299 = vmatpush2.bf16.msra.mxu0 %v5729_v63  ;;  %3340 = vmatpush2.bf16.msra.mxu1 %v5732_v0  ;;  %v5825_v63 = vld [vmem:[%s7777_s7 + $0x100] ss:$16 sps:$4 sm:$0xff]   ;;  %v5827_v0 = vld [vmem:[%s7777_s7 + $0x104] ss:$16 sps:$4 sm:$0xff]  }
 0x65b   : > { %4156 = vmatprep.subr.bf16.mxu0 %v5737_v4  ;;  %4197 = vmatprep.subr.bf16.mxu1 %v5740_v6  ;;  %v5830_v4 = vld [vmem:[%s7777_s7 + $0x304] ss:$16 sps:$4 sm:$0xff]   ;;  %v5836_v6 = vld [vmem:[%s7777_s7 + $0x2ec] ss:$16 sps:$4 sm:$0xff]  }
 0x65d   : > { %3301 = vmatmul.mubr.bf16.vlgmr.msra.gmra.mxu0 %v7148_v1  ;;  %3342 = vmatmul.mubr.bf16.vlgmr.msra.gmra.mxu1 %v7150_v2  ;;  %v5743_v1 = vld [vmem:[%s7777_s7 + $0xc4] ss:$16 sps:$4 sm:$0xff]  }
 0x65e   : > { %v5746_v2 = vld [vmem:[%s7777_s7 + $0x2c4] ss:$16 sps:$4 sm:$0xff]   ;;  %4157 = vmatpush1.bf16.msra.mxu0 %v5735_v3  ;;  %4198 = vmatpush1.bf16.msra.mxu1 %v5738_v5  ;;  %v5828_v3 = vld [vmem:[%s7777_s7 + $0x300] ss:$16 sps:$4 sm:$0xff]   ;;  %v5833_v5 = vld [vmem:[%s7777_s7 + $0xec] ss:$16 sps:$4 sm:$0xff]  }
 0x65f   : > { %4158 = vmatprep.subr.bf16.mxu0 %v5743_v1  ;;  %4199 = vmatprep.subr.bf16.mxu1 %v5746_v2 }
 0x662   : > { %4159 = vmatpush1.bf16.msra.mxu0 %v5741_v7  ;;  %4200 = vmatpush1.bf16.msra.mxu1 %v5744_v8 }
 0x663   : > { %4160 = vmatprep.subr.bf16.mxu0 %v5749_v10  ;;  %4201 = vmatprep.subr.bf16.mxu1 %v5752_v11 }
 0x666   : > { %4161 = vmatpush1.bf16.msra.mxu0 %v5747_v12  ;;  %4202 = vmatpush1.bf16.msra.mxu1 %v5750_v14 }
 0x667   : > { %4162 = vmatprep.subr.bf16.mxu0 %v5755_v15  ;;  %4203 = vmatprep.subr.bf16.mxu1 %v5758_v17 }
 0x66a   : > { %4163 = vmatpush1.bf16.msra.mxu0 %v5753_v18  ;;  %4204 = vmatpush1.bf16.msra.mxu1 %v5756_v19 }
 0x66b   : > { %4164 = vmatprep.subr.bf16.mxu0 %v5761_v20  ;;  %4205 = vmatprep.subr.bf16.mxu1 %v5764_v39 }
 0x66e   : > { %4165 = vmatpush1.bf16.msra.mxu0 %v5759_v21  ;;  %4206 = vmatpush1.bf16.msra.mxu1 %v5762_v22 }
 0x66f   : > { %4166 = vmatprep.subr.bf16.mxu0 %v5767_v41  ;;  %4207 = vmatprep.subr.bf16.mxu1 %v5770_v37 }
 0x672   : > { %4167 = vmatpush1.bf16.msra.mxu0 %v5765_v49  ;;  %4208 = vmatpush1.bf16.msra.mxu1 %v5768_v29 }
 0x673   : > { %4168 = vmatprep.subr.bf16.mxu0 %v5773_v23  ;;  %4209 = vmatprep.subr.bf16.mxu1 %v5776_v24 }
 0x676   : > { %4169 = vmatpush1.bf16.msra.mxu0 %v5771_v25  ;;  %4210 = vmatpush1.bf16.msra.mxu1 %v5774_v26 }
 0x677   : > { %4170 = vmatprep.subr.bf16.mxu0 %v5779_v27  ;;  %4211 = vmatprep.subr.bf16.mxu1 %v5782_v28 }
 0x67a   : > { %4171 = vmatpush1.bf16.msra.mxu0 %v5777_v30  ;;  %4212 = vmatpush1.bf16.msra.mxu1 %v5780_v31 }
 0x67b   : > { %4172 = vmatprep.subr.bf16.mxu0 %v5785_v32  ;;  %4213 = vmatprep.subr.bf16.mxu1 %v5788_v33 }
 0x67e   : > { %4173 = vmatpush2.bf16.msra.mxu0 %v5783_v34  ;;  %4214 = vmatpush2.bf16.msra.mxu1 %v5786_v51 }
 0x67f   : > { %4174 = vmatprep.subr.bf16.mxu0 %v5791_v35  ;;  %4215 = vmatprep.subr.bf16.mxu1 %v5794_v36 }
 0x682   : > { %4175 = vmatpush2.bf16.msra.mxu0 %v5789_v38  ;;  %4216 = vmatpush2.bf16.msra.mxu1 %v5792_v40 }
 0x683   : > { %4176 = vmatprep.subr.bf16.mxu0 %v5797_v42  ;;  %4217 = vmatprep.subr.bf16.mxu1 %v5800_v43 }
 0x686   : > { %4177 = vmatpush2.bf16.msra.mxu0 %v5795_v44  ;;  %4218 = vmatpush2.bf16.msra.mxu1 %v5798_v45 }
 0x687   : > { %4178 = vmatprep.subr.bf16.mxu0 %v5803_v46  ;;  %4219 = vmatprep.subr.bf16.mxu1 %v5806_v47 }
 0x68a   : > { %4179 = vmatpush2.bf16.msra.mxu0 %v5801_v48  ;;  %4220 = vmatpush2.bf16.msra.mxu1 %v5804_v50 }
 0x68b   : > { %4180 = vmatprep.subr.bf16.mxu0 %v5809_v52  ;;  %4221 = vmatprep.subr.bf16.mxu1 %v5812_v53 }
 0x68e   : > { %4181 = vmatpush2.bf16.msra.mxu0 %v5807_v54  ;;  %4222 = vmatpush2.bf16.msra.mxu1 %v5810_v55 }
 0x68f   : > { %4182 = vmatprep.subr.bf16.mxu0 %v5815_v56  ;;  %4223 = vmatprep.subr.bf16.mxu1 %v5818_v13 }
 0x692   : > { %4183 = vmatpush2.bf16.msra.mxu0 %v5813_v57  ;;  %4224 = vmatpush2.bf16.msra.mxu1 %v5816_v58  ;;  %v5831_v57 = vld [vmem:[%s7777_s7 + $0xe8] ss:$16 sps:$4 sm:$0xff]  }
 0x693   : > { %4184 = vmatprep.subr.bf16.mxu0 %v5821_v59  ;;  %4225 = vmatprep.subr.bf16.mxu1 %v5824_v60  ;;  %v5834_v58 = vld [vmem:[%s7777_s7 + $0x2e8] ss:$16 sps:$4 sm:$0xff]  }
 0x696   : > { %4185 = vmatpush2.bf16.msra.mxu0 %v5819_v61  ;;  %4226 = vmatpush2.bf16.msra.mxu1 %v5822_v62 }
 0x697   : > { %4186 = vmatprep.subr.bf16.mxu0 %v5827_v0  ;;  %4227 = vmatprep.subr.bf16.mxu1 %v5830_v4  ;;  %v5842_v0 = vld [vmem:[%s7777_s7 + $0x2cc] ss:$16 sps:$4 sm:$0xff]   ;;  %v5840_v4 = vld [vmem:[%s7777_s7 + $0x2c8] ss:$16 sps:$4 sm:$0xff]  }
 0x69a   : > { %4187 = vmatpush2.bf16.msra.mxu0 %v5825_v63  ;;  %4228 = vmatpush2.bf16.msra.mxu1 %v5828_v3  ;;  %v5839_v63 = vld [vmem:[%s7777_s7 + $0xcc] ss:$16 sps:$4 sm:$0xff]   ;;  %v5837_v3 = vld [vmem:[%s7777_s7 + $0xc8] ss:$16 sps:$4 sm:$0xff]  }
 0x69b   : > { %4238 = vmatprep.subr.bf16.mxu0 %v5833_v5  ;;  %4279 = vmatprep.subr.bf16.mxu1 %v5836_v6  ;;  %v5845_v5 = vld [vmem:[%s7777_s7 + $0xac] ss:$16 sps:$4 sm:$0xff]  }
 0x69c   : > { %v5848_v6 = vld [vmem:[%s7777_s7 + $0x2ac] ss:$16 sps:$4 sm:$0xff]  }
 0x6dd   : > { %v3220_v1 = vpop.f32.mrf.mxu0  ;;  %v3261_v2 = vpop.f32.mrf.mxu1 }
 0x6de   : > { %v3262_v17 = vadd.f32 %v3261_v2, %v3220_v1  ;;  %v5843_v1 = vld [vmem:[%s7777_s7 + $0xa8] ss:$16 sps:$4 sm:$0xff]  }
 0x6df   : > { %v3222_v7 = vpop.f32.mrf.mxu0  ;;  %v3263_v8 = vpop.f32.mrf.mxu1  ;;  %v5846_v2 = vld [vmem:[%s7777_s7 + $0x2a8] ss:$16 sps:$4 sm:$0xff]  }
 0x6e0   : > { %v3264_v15 = vadd.f32 %v3263_v8, %v3222_v7  ;;  %v5851_v7 = vld [vmem:[%s7777_s7 + $0x8c] ss:$16 sps:$4 sm:$0xff]  }
 0x6e1   : > { %v3224_v10 = vpop.f32.mrf.mxu0  ;;  %v3265_v11 = vpop.f32.mrf.mxu1  ;;  %v5854_v8 = vld [vmem:[%s7777_s7 + $0x28c] ss:$16 sps:$4 sm:$0xff]  }
 0x6e2   : > { %v3350_v20 = vadd.f32 %v3264_v15, %v3262_v17  ;;  %v5849_v10 = vld [vmem:[%s7777_s7 + $0x88] ss:$16 sps:$4 sm:$0xff]  }
 0x6e3   : > { %v3225_v12 = vpop.f32.mrf.mxu0  ;;  %v3266_v14 = vpop.f32.mrf.mxu1  ;;  %v5852_v11 = vld [vmem:[%s7777_s7 + $0x288] ss:$16 sps:$4 sm:$0xff]  }
 0x6e4   : > { %v5857_v12 = vld [vmem:[%s7777_s7 + $0x6c] ss:$16 sps:$4 sm:$0xff]  }
 0x6e5   : > { %v5860_v14 = vld [vmem:[%s7777_s7 + $0x26c] ss:$16 sps:$4 sm:$0xff]  }
 0x71d   : > { %v3302_v18 = vpop.f32.mrf.mxu0  ;;  %v3343_v19 = vpop.f32.mrf.mxu1 }
 0x71e   : > { %v3344_v39 = vadd.f32 %v3343_v19, %v3302_v18  ;;  %v5863_v18 = vld [vmem:[%s7777_s7 + $0x4c] ss:$16 sps:$4 sm:$0xff]  }
 0x71f   : > { %v3304_v21 = vpop.f32.mrf.mxu0  ;;  %v3345_v22 = vpop.f32.mrf.mxu1  ;;  %v5866_v19 = vld [vmem:[%s7777_s7 + $0x24c] ss:$16 sps:$4 sm:$0xff]  }
 0x720   : > { %v3351_v41 = vadd.f32 %v3350_v20, %v3344_v39  ;;  %v3346_v37 = vadd.f32 %v3345_v22, %v3304_v21  ;;  %v5861_v20 = vld [vmem:[%s7777_s7 + $0x48] ss:$16 sps:$4 sm:$0xff]   ;;  %v5869_v21 = vld [vmem:[%s7777_s7 + $0x2c] ss:$16 sps:$4 sm:$0xff]  }
 0x721   : > { %v3306_v49 = vpop.f32.mrf.mxu0  ;;  %v3347_v29 = vpop.f32.mrf.mxu1  ;;  %v5872_v22 = vld [vmem:[%s7777_s7 + $0x22c] ss:$16 sps:$4 sm:$0xff]  }
 0x722   : > { %v3352_v23 = vadd.f32 %v3351_v41, %v3346_v37  ;;  %v5867_v41 = vld [vmem:[%s7777_s7 + $0x28] ss:$16 sps:$4 sm:$0xff]   ;;  %v5875_v49 = vld [vmem:[%s7777_s7 + $0xc] ss:$16 sps:$4 sm:$0xff]  }
 0x723   : > { %v3307_v24 = vpop.f32.mrf.mxu0  ;;  %v3348_v25 = vpop.f32.mrf.mxu1  ;;  %v5878_v29 = vld [vmem:[%s7777_s7 + $0x20c] ss:$16 sps:$4 sm:$0xff]  }
 0x724   : > { %v3353_v26 = vmul.f32 0.25, %v3352_v23  ;;  %v5873_v23 = vld [vmem:[%s7777_s7 + $0x8] ss:$16 sps:$4 sm:$0xff]   ;;  %v5881_v25 = vld [vmem:[%s7777_s7 + $0x1ec] ss:$16 sps:$4 sm:$0xff]  }
 0x725   : > { %v5876_v24 = vld [vmem:[%s7777_s7 + $0x208] ss:$16 sps:$4 sm:$0xff]  }
 0x726   : > { %v3354_v27 = vsub.f32 %v3262_v17, %v3353_v26  ;;  %v3355_v28 = vsub.f32 %v3264_v15, %v3353_v26  ;;  %v3356_v30 = vsub.f32 %v3344_v39, %v3353_v26  ;;  %v3357_v31 = vsub.f32 %v3346_v37, %v3353_v26  ;;  %v5855_v15 = vld [vmem:[%s7777_s7 + $0x68] ss:$16 sps:$4 sm:$0xff]   ;;  %v5884_v26 = vld [vmem:[%s7777_s7 + $0x3ec] ss:$16 sps:$4 sm:$0xff]  }
 0x727   : > { %v5858_v17 = vld [vmem:[%s7777_s7 + $0x268] ss:$16 sps:$4 sm:$0xff]  }
 0x728   : > { %v3358_v32 = vmul.f32 %v3354_v27, %v3354_v27  ;;  %v3359_v33 = vmul.f32 %v3355_v28, %v3355_v28  ;;  %v3361_v51 = vmul.f32 %v3356_v30, %v3356_v30  ;;  %v3363_v36 = vmul.f32 %v3357_v31, %v3357_v31  ;;  %v5864_v39 = vld [vmem:[%s7777_s7 + $0x248] ss:$16 sps:$4 sm:$0xff]  }
 0x729   : > { %v5870_v37 = vld [vmem:[%s7777_s7 + $0x228] ss:$16 sps:$4 sm:$0xff]  }
 0x72a   : > { %v3360_v34 = vadd.f32 %v3359_v33, %v3358_v32  ;;  %v5885_v32 = vld [vmem:[%s7777_s7 + $0x1c8] ss:$16 sps:$4 sm:$0xff]  }
 0x72b   : > { %v5888_v33 = vld [vmem:[%s7777_s7 + $0x3c8] ss:$16 sps:$4 sm:$0xff]  }
 0x72c   : > { %v3362_v35 = vadd.f32 %v3361_v51, %v3360_v34  ;;  %v5893_v34 = vld [vmem:[%s7777_s7 + $0x1ac] ss:$16 sps:$4 sm:$0xff]  }
 0x72d   : > { %v5896_v51 = vld [vmem:[%s7777_s7 + $0x3ac] ss:$16 sps:$4 sm:$0xff]  }
 0x72e   : > { %v3364_v38 = vadd.f32 %v3363_v36, %v3362_v35  ;;  %v5891_v35 = vld [vmem:[%s7777_s7 + $0x1a8] ss:$16 sps:$4 sm:$0xff]  }
 0x72f   : > { %v5894_v36 = vld [vmem:[%s7777_s7 + $0x3a8] ss:$16 sps:$4 sm:$0xff]  }
 0x730   : > { %v3365_v40 = vmul.f32 0.25, %v3364_v38  ;;  %v5899_v38 = vld [vmem:[%s7777_s7 + $0x18c] ss:$16 sps:$4 sm:$0xff]  }
 0x732   : > { %v3366_v42 = vadd.f32 1e-05, %v3365_v40  ;;  %v5902_v40 = vld [vmem:[%s7777_s7 + $0x38c] ss:$16 sps:$4 sm:$0xff]  }
 0x734   : > { %5929 = vrsqrt.f32 %v3366_v42  ;;  %v5897_v42 = vld [vmem:[%s7777_s7 + $0x188] ss:$16 sps:$4 sm:$0xff]  }
 0x741   : > { %v5930_v43 = vpop.eup %5929 }
 0x742   : > { %v3371_v44 = vmul.f32 %v5930_v43, %v3357_v31  ;;  %v3369_v45 = vmul.f32 %v5930_v43, %v3355_v28  ;;  %v3368_v46 = vmul.f32 %v5930_v43, %v3354_v27  ;;  %v3370_v47 = vmul.f32 %v5930_v43, %v3356_v30  ;;  %v5879_v27 = vld [vmem:[%s7777_s7 + $0x1e8] ss:$16 sps:$4 sm:$0xff]   ;;  %v5887_v30 = vld [vmem:[%s7777_s7 + $0x1cc] ss:$16 sps:$4 sm:$0xff]  }
 0x743   : > { %v5882_v28 = vld [vmem:[%s7777_s7 + $0x3e8] ss:$16 sps:$4 sm:$0xff]   ;;  %v5890_v31 = vld [vmem:[%s7777_s7 + $0x3cc] ss:$16 sps:$4 sm:$0xff]  }
 0x744   : > { %vm3373_vm13 = vcmp.gt.f32.partialorder %v3369_v45, 0.0  ;;  %v3377_v48 = vmul.f32 0.2, %v3369_v45  ;;  %vm3375_vm14 = vcmp.gt.f32.partialorder %v3371_v44, 0.0  ;;  %v3379_v50 = vmul.f32 0.2, %v3371_v44 }
 0x745   : > { %vm3372_vm15 = vcmp.gt.f32.partialorder %v3368_v46, 0.0  ;;  %v3376_v52 = vmul.f32 0.2, %v3368_v46  ;;  %vm3374_vm0 = vcmp.gt.f32.partialorder %v3370_v47, 0.0  ;;  %v3378_v53 = vmul.f32 0.2, %v3370_v47 }
 0x746   : > { %v3381_v54 = vsel %vm3373_vm13, %v3369_v45, %v3377_v48  ;;  %v3383_v55 = vsel %vm3375_vm14, %v3371_v44, %v3379_v50  ;;  %v5900_v43 = vld [vmem:[%s7777_s7 + $0x388] ss:$16 sps:$4 sm:$0xff]   ;;  %v5905_v44 = vld [vmem:[%s7777_s7 + $0x16c] ss:$16 sps:$4 sm:$0xff]  }
 0x747   : > { %v3385_v56 = vpack.c.bf16 %v3381_v54, %v3381_v54  ;;  %v3387_v13 = vpack.c.bf16 %v3383_v55, %v3383_v55  ;;  %v3380_v59 = vsel %vm3372_vm15, %v3368_v46, %v3376_v52  ;;  %v3382_v60 = vsel %vm3374_vm0, %v3370_v47, %v3378_v53  ;;  %v5908_v45 = vld [vmem:[%s7777_s7 + $0x36c] ss:$16 sps:$4 sm:$0xff]   ;;  %v5903_v46 = vld [vmem:[%s7777_s7 + $0x168] ss:$16 sps:$4 sm:$0xff]  }
 0x748   : > { %v7540_v61 = vpack.c.bf16 %v3380_v59, %v3380_v59  ;;  %v7542_v62 = vpack.c.bf16 %v3382_v60, %v3382_v60  ;;  %v5906_v47 = vld [vmem:[%s7777_s7 + $0x368] ss:$16 sps:$4 sm:$0xff]   ;;  %v5911_v48 = vld [vmem:[%s7777_s7 + $0x14c] ss:$16 sps:$4 sm:$0xff]  }
 0x749   : > { %4188 = vmatprep.mubr.bf16.mxu0 %v3385_v56  ;;  %4229 = vmatprep.mubr.bf16.mxu1 %v3387_v13  ;;  %v5914_v50 = vld [vmem:[%s7777_s7 + $0x34c] ss:$16 sps:$4 sm:$0xff]   ;;  %v5909_v52 = vld [vmem:[%s7777_s7 + $0x148] ss:$16 sps:$4 sm:$0xff]  }
 0x74a   : > { %4189 = vmatmul.mubr.bf16.vlgmr.msra.gmra.mxu0 %v7540_v61  ;;  %4230 = vmatmul.mubr.bf16.vlgmr.msra.gmra.mxu1 %v7542_v62  ;;  %v5912_v53 = vld [vmem:[%s7777_s7 + $0x348] ss:$16 sps:$4 sm:$0xff]   ;;  %v5917_v54 = vld [vmem:[%s7777_s7 + $0x12c] ss:$16 sps:$4 sm:$0xff]  }
 0x74b   : > { %4239 = vmatpush1.bf16.msra.mxu0 %v5831_v57  ;;  %4280 = vmatpush1.bf16.msra.mxu1 %v5834_v58  ;;  %v5920_v55 = vld [vmem:[%s7777_s7 + $0x32c] ss:$16 sps:$4 sm:$0xff]   ;;  %v5921_v59 = vld [vmem:[%s7777_s7 + $0x108] ss:$16 sps:$4 sm:$0xff]  }
 0x74c   : > { %4270 = vmatprep.mubr.bf16.mxu0 %v3385_v56  ;;  %4311 = vmatprep.mubr.bf16.mxu1 %v3387_v13  ;;  %v5915_v56 = vld [vmem:[%s7777_s7 + $0x128] ss:$16 sps:$4 sm:$0xff]   ;;  %v5923_v57 = vld [vmem:[%s7777_s7 + $0x10c] ss:$16 sps:$4 sm:$0xff]  }
 0x74d   : > { %4240 = vmatprep.subr.bf16.mxu0 %v5839_v63  ;;  %4281 = vmatprep.subr.bf16.mxu1 %v5842_v0  ;;  %v5918_v13 = vld [vmem:[%s7777_s7 + $0x328] ss:$16 sps:$4 sm:$0xff]   ;;  %v5926_v58 = vld [vmem:[%s7777_s7 + $0x30c] ss:$16 sps:$4 sm:$0xff]  }
 0x74e   : > { %v5924_v60 = vld [vmem:[%s7777_s7 + $0x308] ss:$16 sps:$4 sm:$0xff]  }
 0x74f   : > { %4241 = vmatpush1.bf16.msra.mxu0 %v5837_v3  ;;  %4282 = vmatpush1.bf16.msra.mxu1 %v5840_v4 }
 0x750   : > { %4242 = vmatprep.subr.bf16.mxu0 %v5845_v5  ;;  %4283 = vmatprep.subr.bf16.mxu1 %v5848_v6 }
 0x753   : > { %4243 = vmatpush1.bf16.msra.mxu0 %v5843_v1  ;;  %4284 = vmatpush1.bf16.msra.mxu1 %v5846_v2 }
 0x754   : > { %4244 = vmatprep.subr.bf16.mxu0 %v5851_v7  ;;  %4285 = vmatprep.subr.bf16.mxu1 %v5854_v8 }
 0x757   : > { %4245 = vmatpush1.bf16.msra.mxu0 %v5849_v10  ;;  %4286 = vmatpush1.bf16.msra.mxu1 %v5852_v11 }
 0x758   : > { %4246 = vmatprep.subr.bf16.mxu0 %v5857_v12  ;;  %4287 = vmatprep.subr.bf16.mxu1 %v5860_v14 }
 0x75b   : > { %4247 = vmatpush1.bf16.msra.mxu0 %v5855_v15  ;;  %4288 = vmatpush1.bf16.msra.mxu1 %v5858_v17 }
 0x75c   : > { %4248 = vmatprep.subr.bf16.mxu0 %v5863_v18  ;;  %4289 = vmatprep.subr.bf16.mxu1 %v5866_v19 }
 0x75f   : > { %4249 = vmatpush1.bf16.msra.mxu0 %v5861_v20  ;;  %4290 = vmatpush1.bf16.msra.mxu1 %v5864_v39 }
 0x760   : > { %4250 = vmatprep.subr.bf16.mxu0 %v5869_v21  ;;  %4291 = vmatprep.subr.bf16.mxu1 %v5872_v22 }
 0x763   : > { %4251 = vmatpush1.bf16.msra.mxu0 %v5867_v41  ;;  %4292 = vmatpush1.bf16.msra.mxu1 %v5870_v37 }
 0x764   : > { %4252 = vmatprep.subr.bf16.mxu0 %v5875_v49  ;;  %4293 = vmatprep.subr.bf16.mxu1 %v5878_v29 }
 0x767   : > { %4253 = vmatpush1.bf16.msra.mxu0 %v5873_v23  ;;  %4294 = vmatpush1.bf16.msra.mxu1 %v5876_v24 }
 0x768   : > { %4254 = vmatprep.subr.bf16.mxu0 %v5881_v25  ;;  %4295 = vmatprep.subr.bf16.mxu1 %v5884_v26 }
 0x76b   : > { %4255 = vmatpush2.bf16.msra.mxu0 %v5879_v27  ;;  %4296 = vmatpush2.bf16.msra.mxu1 %v5882_v28 }
 0x76c   : > { %4256 = vmatprep.subr.bf16.mxu0 %v5887_v30  ;;  %4297 = vmatprep.subr.bf16.mxu1 %v5890_v31 }
 0x76f   : > { %4257 = vmatpush2.bf16.msra.mxu0 %v5885_v32  ;;  %4298 = vmatpush2.bf16.msra.mxu1 %v5888_v33 }
 0x770   : > { %4258 = vmatprep.subr.bf16.mxu0 %v5893_v34  ;;  %4299 = vmatprep.subr.bf16.mxu1 %v5896_v51 }
 0x773   : > { %4259 = vmatpush2.bf16.msra.mxu0 %v5891_v35  ;;  %4300 = vmatpush2.bf16.msra.mxu1 %v5894_v36 }
 0x774   : > { %4260 = vmatprep.subr.bf16.mxu0 %v5899_v38  ;;  %4301 = vmatprep.subr.bf16.mxu1 %v5902_v40 }
 0x777   : > { %4261 = vmatpush2.bf16.msra.mxu0 %v5897_v42  ;;  %4302 = vmatpush2.bf16.msra.mxu1 %v5900_v43 }
 0x778   : > { %4262 = vmatprep.subr.bf16.mxu0 %v5905_v44  ;;  %4303 = vmatprep.subr.bf16.mxu1 %v5908_v45 }
 0x77b   : > { %4263 = vmatpush2.bf16.msra.mxu0 %v5903_v46  ;;  %4304 = vmatpush2.bf16.msra.mxu1 %v5906_v47 }
 0x77c   : > { %4264 = vmatprep.subr.bf16.mxu0 %v5911_v48  ;;  %4305 = vmatprep.subr.bf16.mxu1 %v5914_v50 }
 0x77f   : > { %4265 = vmatpush2.bf16.msra.mxu0 %v5909_v52  ;;  %4306 = vmatpush2.bf16.msra.mxu1 %v5912_v53 }
 0x780   : > { %4266 = vmatprep.subr.bf16.mxu0 %v5917_v54  ;;  %4307 = vmatprep.subr.bf16.mxu1 %v5920_v55 }
 0x783   : > { %4267 = vmatpush2.bf16.msra.mxu0 %v5915_v56  ;;  %4308 = vmatpush2.bf16.msra.mxu1 %v5918_v13 }
 0x784   : > { %4268 = vmatprep.subr.bf16.mxu0 %v5923_v57  ;;  %4309 = vmatprep.subr.bf16.mxu1 %v5926_v58 }
 0x787   : > { %4269 = vmatpush2.bf16.msra.mxu0 %v5921_v59  ;;  %4310 = vmatpush2.bf16.msra.mxu1 %v5924_v60 }
 0x78a   : > { %4271 = vmatmul.mubr.bf16.vlgmr.msra.gmra.mxu0 %v7540_v61  ;;  %4312 = vmatmul.mubr.bf16.vlgmr.msra.gmra.mxu1 %v7542_v62 }
 0x80a   : > { %v4190_v63 = vpop.f32.mrf.mxu0  ;;  %v4231_v0 = vpop.f32.mrf.mxu1 }
 0x80b   : > { %v4232_v8 = vadd.f32 %v4231_v0, %v4190_v63 }
 0x80c   : > { %v4192_v3 = vpop.f32.mrf.mxu0  ;;  %v4233_v4 = vpop.f32.mrf.mxu1 }
 0x80d   : > { %v4234_v7 = vadd.f32 %v4233_v4, %v4192_v3 }
 0x80e   : > { %v4194_v5 = vpop.f32.mrf.mxu0  ;;  %v4235_v6 = vpop.f32.mrf.mxu1 }
 0x80f   : > { %v4320_v12 = vadd.f32 %v4234_v7, %v4232_v8 }
 0x810   : > { %v4195_v1 = vpop.f32.mrf.mxu0  ;;  %v4236_v2 = vpop.f32.mrf.mxu1 }
 0x84a   : > { %v4272_v10 = vpop.f32.mrf.mxu0  ;;  %v4313_v11 = vpop.f32.mrf.mxu1 }
 0x84b   : > { %v4314_v14 = vadd.f32 %v4313_v11, %v4272_v10 }
 0x84c   : > { %v4274_v15 = vpop.f32.mrf.mxu0  ;;  %v4315_v17 = vpop.f32.mrf.mxu1 }
 0x84d   : > { %v4321_v18 = vadd.f32 %v4320_v12, %v4314_v14  ;;  %v4316_v61 = vadd.f32 %v4315_v17, %v4274_v15 }
 0x84e   : > { %v4276_v19 = vpop.f32.mrf.mxu0  ;;  %v4317_v62 = vpop.f32.mrf.mxu1 }
 0x84f   : > { %v4322_v20 = vadd.f32 %v4321_v18, %v4316_v61 }
 0x850   : > { %v4277_v39 = vpop.f32.mrf.mxu0  ;;  %v4318_v21 = vpop.f32.mrf.mxu1 }
 0x851   : > { %v4323_v22 = vmul.f32 0.25, %v4322_v20 }
 0x853   : > { %v4324_v41 = vsub.f32 %v4232_v8, %v4323_v22  ;;  %v4325_v37 = vsub.f32 %v4234_v7, %v4323_v22  ;;  %v4326_v49 = vsub.f32 %v4314_v14, %v4323_v22  ;;  %v4327_v29 = vsub.f32 %v4316_v61, %v4323_v22 }
 0x855   : > { %v4328_v23 = vmul.f32 %v4324_v41, %v4324_v41  ;;  %v4329_v24 = vmul.f32 %v4325_v37, %v4325_v37  ;;  %v4331_v26 = vmul.f32 %v4326_v49, %v4326_v49  ;;  %v4333_v28 = vmul.f32 %v4327_v29, %v4327_v29 }
 0x857   : > { %v4330_v25 = vadd.f32 %v4329_v24, %v4328_v23 }
 0x859   : > { %v4332_v27 = vadd.f32 %v4331_v26, %v4330_v25 }
 0x85b   : > { %v4334_v30 = vadd.f32 %v4333_v28, %v4332_v27 }
 0x85d   : > { %v4335_v31 = vmul.f32 0.25, %v4334_v30 }
 0x85f   : > { %v4336_v32 = vadd.f32 1e-05, %v4335_v31 }
 0x861   : > { %5931 = vrsqrt.f32 %v4336_v32 }
 0x86e   : > { %v5932_v33 = vpop.eup %5931 }
 0x86f   : > { %v4338_v34 = vmul.f32 %v5932_v33, %v4324_v41  ;;  %v4339_v51 = vmul.f32 %v5932_v33, %v4325_v37  ;;  %v4340_v35 = vmul.f32 %v5932_v33, %v4326_v49  ;;  %v4341_v36 = vmul.f32 %v5932_v33, %v4327_v29 }
 0x871   : > { %vm4344_vm1 = vcmp.gt.f32.partialorder %v4340_v35, 0.0  ;;  %vm4345_vm2 = vcmp.gt.f32.partialorder %v4341_v36, 0.0  ;;  %v4346_v38 = vmul.f32 0.2, %v4338_v34  ;;  %v4347_v40 = vmul.f32 0.2, %v4339_v51 }
 0x872   : > { %v4348_v42 = vmul.f32 0.2, %v4340_v35  ;;  %v4349_v43 = vmul.f32 0.2, %v4341_v36  ;;  %vm4342_vm3 = vcmp.gt.f32.partialorder %v4338_v34, 0.0  ;;  %vm4343_vm4 = vcmp.gt.f32.partialorder %v4339_v51, 0.0 }
 0x873   : > { %v4350_v44 = vsel %vm4342_vm3, %v4338_v34, %v4346_v38  ;;  %v4351_v45 = vsel %vm4343_vm4, %v4339_v51, %v4347_v40 }
 0x874   : > { %v4352_v46 = vsel %vm4344_vm1, %v4340_v35, %v4348_v42  ;;  %v4353_v47 = vsel %vm4345_vm2, %v4341_v36, %v4349_v43  ;;  %v4358_v48 = vcombine.low %v4350_v44, %v4351_v45 }
 0x875   : > { %v4359_v50 = vcombine.low %v4352_v46, %v4353_v47 }
 0x876   : > { %v4366_v52 = vrot.slane %v4358_v48, %v6137_v16 }
 0x877   : > { %v4373_v53 = vrot.slane %v4359_v50, %v6137_v16 }
 0x879   : > { %v4374_v54 = vcombine.low %v4366_v52, %v4373_v53 }
 0x87b   : > { %v4381_v55 = vrot.slane %v4374_v54, %v6137_v16 }
 0x87d   : > { %4387 = vst.msk [vmem:[%s296_s26] sm:$0xf] %vm4385_vm5, %v4381_v55 }
 0x87e   : > { %5948 = shalt.err (!%p5945_p3)
}
 0x87f   : > { %s5949_s22 = scalar_lea.hbm %s4401_s18, 64  ;;  %s5953_s25 = scalar_lea.hbm %s7778_s8, 128 }
 0x880   : > { %p5950_p4 = scmp.ne.s32.totalorder %s4401_s18, %s5949_s22  ;;  %p5954_p9 = scmp.lt.s32.totalorder %s4401_s18, %s7778_s8 }
 0x881   : > { %p5955_p10 = scmp.lt.s32.totalorder %s5953_s25, %s5949_s22 }
 0x882   : > { %p5951_p7 = pnand %p5950_p4, %p6083_p5 }
 0x883   : > { %p5956_p11 = por %p5955_p10, %p5954_p9 }
 0x884   : > { %p5952_p8 = pneg %p5951_p7 }
 0x886   : > { %p5957_p12 = pnand %p5956_p11, %p5952_p8 }
 0x888   : > { %5960 = shalt.err (!%p5957_p12)
}
 0x889   : > { %5118 = dma.vmem_to_hbm [thread:$0]  (%p6083_p5), %s4404_s10, 64, %s4401_s18, %s4389_s19  }
 0x88a PF: > { %p5124_p13 = scmp.ge.s32.totalorder %s5995_s30, 2  ;;  %s4415_s13 = sand.u32 1, %s5983_s27  }
 0x88b   : > { %s4416_s17 = scalar_lea.sflag [#allocation3], %s4415_s13 }
 0x88c   : > { %p5121_p0 = pnand %p5124_p13, %p6087_p6 }
 0x88e   : > { %p5122_p1 = pneg %p5121_p0 }
 0x890   : > { %5978 = dma.done.wait (%p5122_p1), %s4416_s17, 64  }
 0x891   : > { %5980 = vsyncadd (%p5122_p1), %s4416_s17, 4294967232  ;;  %p18_p2 = scmp.ge.s32.totalorder %s6070_s11, 4   ;;  %s7781_s27 = smov %s5987_s28 }
 0x892   : > { %s7782_s28 = smov %s5991_s29  ;;  %s7783_s29 = smov %s6081_s14 }
 0x893   : > { %s7784_s30 = smov %s6070_s11  ;;  %20 = sbr.rel (!%p18_p2) target bundleno = 3 (0x3), region = 95 }
 0x898   :  { %4421 = vsyncpa [#allocation3], 1 }
 0x899   :  { %4423 = vsyncpa [#allocation3 + $0x1], 1 }

</bundles_post_ra>
